<compile_context>
chip_gen: v5e
topology: v5e:2x2
jax: 0.10.0
libtpu: 0.0.40
codegen_flags: <defaults>
</compile_context>

<pallas_src>
import jax
import jax.numpy as jnp
from jax import lax
from jax.experimental import pallas as pl
from jax.experimental.pallas import tpu as pltpu

EPS = 1e-5  # BatchNorm2d default


def fusion_kernel(rgb_ref, edge_ref, w_ref, b_ref, gamma_ref, beta_ref, out_ref):
    # rgb_ref / edge_ref : (M, C)   full channel range, f32, resident across grid
    # w_ref              : (2C, TCO) conv1x1 weight tile, bf16 (rgb rows first)
    # b_ref/gamma_ref/beta_ref : (1, TCO) f32
    # out_ref            : (M, TCO) f32
    M, C = rgb_ref.shape
    tile_co = out_ref.shape[1]
    co = pl.multiple_of(pl.program_id(0) * tile_co, 128)

    # 1x1 conv over concatenated channels == two bf16 matmuls summed (f32 acc).
    rgb_bf = rgb_ref[...].astype(jnp.bfloat16)
    edge_bf = edge_ref[...].astype(jnp.bfloat16)
    s = jnp.dot(rgb_bf, w_ref[:C, :], preferred_element_type=jnp.float32)
    s = s + jnp.dot(edge_bf, w_ref[C:, :], preferred_element_type=jnp.float32)
    s = s + b_ref[...]
    attn = jax.nn.sigmoid(s)                                    # (M, TCO) f32

    # Blend tile sliced from the resident full blocks (aligned dynamic slice).
    rgb_t = rgb_ref[:, pl.ds(co, tile_co)]
    edge_t = edge_ref[:, pl.ds(co, tile_co)]
    fused = attn * (rgb_t - edge_t) + edge_t                    # f32 blend

    # BatchNorm2d, training mode: biased batch stats over rows of M, one pass.
    inv_m = 1.0 / M
    mean = jnp.sum(fused, axis=0, keepdims=True) * inv_m
    var = jnp.sum(fused * fused, axis=0, keepdims=True) * inv_m - mean * mean
    scale = gamma_ref[...] * lax.rsqrt(var + EPS)               # (1, TCO)
    out_ref[...] = (fused - mean) * scale + beta_ref[...]


def _pick_tile_co(C):
    # v6e: 256 fills the 2x256x256 MXU and halves per-step overhead.
    # v5e: 128 matches the 4x128x128 MXU. v7x: 128 keeps grid=10 -> even 5/5
    # split across the 2 TensorCores.
    try:
        kind = jax.devices()[0].device_kind.lower()
    except Exception:
        kind = ""
    if "v6" in kind and C % 256 == 0:
        return 256
    return 128


def robust_fusion(rgb, edge, w, b, gamma, beta, *, tile_co=None):
    """rgb, edge: (N, C, H, W) f32.  w: (C, 2C).  b/gamma/beta: (C,)."""
    N, C, H, W = rgb.shape
    if tile_co is None:
        tile_co = _pick_tile_co(C)
    assert C % tile_co == 0 and tile_co % 128 == 0
    M = N * H * W
    assert M % 8 == 0

    # Layout plumbing (kept to preserve the NCHW module boundary).
    rgb_f = jnp.transpose(rgb, (0, 2, 3, 1)).reshape(M, C)
    edge_f = jnp.transpose(edge, (0, 2, 3, 1)).reshape(M, C)
    # Weight dominates HBM traffic -> stream it as bf16 (native MXU dtype).
    w_t = jnp.transpose(w, (1, 0)).astype(jnp.bfloat16)         # (2C, C)
    b2 = b.reshape(1, C)
    g2 = gamma.reshape(1, C)
    be2 = beta.reshape(1, C)

    cost = pl.CostEstimate(
        flops=2 * M * (2 * C) * C + 12 * M * C,
        transcendentals=M * C,
        bytes_accessed=2 * M * C * 4 + (2 * C) * C * 2 + M * C * 4 + 3 * C * 4,
    )

    out_flat = pl.pallas_call(
        fusion_kernel,
        out_shape=jax.ShapeDtypeStruct((M, C), jnp.float32),
        grid_spec=pltpu.PrefetchScalarGridSpec(
            num_scalar_prefetch=0,
            grid=(C // tile_co,),
            in_specs=[
                pl.BlockSpec((M, C), lambda j: (0, 0)),             # rgb (resident)
                pl.BlockSpec((M, C), lambda j: (0, 0)),             # edge (resident)
                pl.BlockSpec((2 * C, tile_co), lambda j: (0, j)),   # weight tile (bf16)
                pl.BlockSpec((1, tile_co), lambda j: (0, j)),       # bias tile
                pl.BlockSpec((1, tile_co), lambda j: (0, j)),       # gamma tile
                pl.BlockSpec((1, tile_co), lambda j: (0, j)),       # beta tile
            ],
            out_specs=pl.BlockSpec((M, tile_co), lambda j: (0, j)),
        ),
        compiler_params=pltpu.CompilerParams(
            dimension_semantics=("parallel",)),
        cost_estimate=cost,
    )(rgb_f, edge_f, w_t, b2, g2, be2)

    out = out_flat.reshape(N, H, W, C)
    return jnp.transpose(out, (0, 3, 1, 2))                     # back to NCHW


def reference(rgb, edge, w, b, gamma, beta):
    """Pure-JAX reference matching the PyTorch forward (training-mode BN, f32)."""
    mixed = jnp.concatenate([rgb, edge], axis=1)                       # (N, 2C, H, W)
    s = jnp.einsum('nchw,oc->nohw', mixed, w) + b[None, :, None, None]
    attn = jax.nn.sigmoid(s)
    fused = attn * rgb + (1.0 - attn) * edge
    mean = fused.mean(axis=(0, 2, 3), keepdims=True)
    var = ((fused - mean) ** 2).mean(axis=(0, 2, 3), keepdims=True)    # biased
    return (gamma[None, :, None, None] * (fused - mean) /
            jnp.sqrt(var + EPS) + beta[None, :, None, None])


if __name__ == "__main__":
    # Channel count is fixed by the module (1280); keep batch/spatial small.
    N, C, H, W = 2, 1280, 8, 8

    key = jax.random.PRNGKey(0)
    k_rgb, k_edge, k_w, k_b, k_g, k_be = jax.random.split(key, 6)

    rgb = jax.random.normal(k_rgb, (N, C, H, W), dtype=jnp.float32)
    edge = jax.random.normal(k_edge, (N, C, H, W), dtype=jnp.float32)

    # Conv2d(2C, C, 1) weight (C, 2C) + bias (C,); BN affine params (C,).
    w = jax.random.normal(k_w, (C, 2 * C), dtype=jnp.float32) * (1.0 / jnp.sqrt(2.0 * C))
    b = jax.random.normal(k_b, (C,), dtype=jnp.float32) * 0.02
    gamma = 1.0 + 0.1 * jax.random.normal(k_g, (C,), dtype=jnp.float32)
    beta = 0.1 * jax.random.normal(k_be, (C,), dtype=jnp.float32)

    out = robust_fusion(rgb, edge, w, b, gamma, beta)
    out = jax.block_until_ready(out)

    ref = reference(rgb, edge, w, b, gamma, beta)
    assert out.shape == (N, C, H, W)
    # bf16 matmul operands (f32 accumulation) vs. pure-f32 reference.
    assert jnp.max(jnp.abs(out - ref)) < 2e-2, "mismatch vs reference"

    # TODO(synk): BN running_mean/running_var buffer updates (a training-time
    # side effect, not part of the returned tensor) are not modeled.
    print("KERNEL_OK")
</pallas_src>

<mosaic_0001>
module attributes {stable_mosaic.version = 11 : i64} {
  func.func @fusion_kernel(%arg0: i32, %arg1: memref<128x1280xf32, #tpu.memory_space<vmem>>, %arg2: memref<128x1280xf32, #tpu.memory_space<vmem>>, %arg3: memref<2560x128xbf16, #tpu.memory_space<vmem>>, %arg4: memref<1x128xf32, #tpu.memory_space<vmem>>, %arg5: memref<1x128xf32, #tpu.memory_space<vmem>>, %arg6: memref<1x128xf32, #tpu.memory_space<vmem>>, %arg7: memref<128x128xf32, #tpu.memory_space<vmem>>) attributes {dimension_semantics = [#tpu.dimension_semantics<parallel>], iteration_bounds = array<i64: 10>, scalar_prefetch = 0 : i64, scratch_operands = 0 : i64, tpu.core_type = #tpu.core_type<tc>, window_params = [{pipeline_mode = #tpu.pipeline_mode<synchronous>, transform_indices = @transform_0, window_bounds = array<i64: 128, 1280>}, {pipeline_mode = #tpu.pipeline_mode<synchronous>, transform_indices = @transform_1, window_bounds = array<i64: 128, 1280>}, {transform_indices = @transform_2, window_bounds = array<i64: 2560, 128>}, {transform_indices = @transform_3, window_bounds = array<i64: 1, 128>}, {transform_indices = @transform_4, window_bounds = array<i64: 1, 128>}, {transform_indices = @transform_5, window_bounds = array<i64: 1, 128>}, {transform_indices = @transform_6, window_bounds = array<i64: 128, 128>}]} {
    %c128_i32 = arith.constant 128 : i32
    %0 = arith.muli %arg0, %c128_i32 : i32
    %1 = tpu.assume_multiple %0, 128 : i32
    %c0 = arith.constant 0 : index
    %c0_0 = arith.constant 0 : index
    %2 = vector.load %arg1[%c0, %c0_0] : memref<128x1280xf32, #tpu.memory_space<vmem>>, vector<128x1280xf32>
    %3 = arith.truncf %2 : vector<128x1280xf32> to vector<128x1280xbf16>
    %c0_1 = arith.constant 0 : index
    %c0_2 = arith.constant 0 : index
    %4 = vector.load %arg2[%c0_1, %c0_2] : memref<128x1280xf32, #tpu.memory_space<vmem>>, vector<128x1280xf32>
    %5 = arith.truncf %4 : vector<128x1280xf32> to vector<128x1280xbf16>
    %c0_3 = arith.constant 0 : index
    %c0_4 = arith.constant 0 : index
    %6 = vector.load %arg3[%c0_3, %c0_4] : memref<2560x128xbf16, #tpu.memory_space<vmem>>, vector<1280x128xbf16>
    %cst = arith.constant dense<0.000000e+00> : vector<128x128xf32>
    %7 = tpu.matmul %3, %6, %cst {dimension_numbers = #tpu.dot_dimension_numbers<[1], [0], [0], [1], [0, 0, 1, 1], [], []>} : vector<128x1280xbf16>, vector<1280x128xbf16>, vector<128x128xf32> -> vector<128x128xf32>
    %c1280 = arith.constant 1280 : index
    %c0_5 = arith.constant 0 : index
    %8 = vector.load %arg3[%c1280, %c0_5] : memref<2560x128xbf16, #tpu.memory_space<vmem>>, vector<1280x128xbf16>
    %cst_6 = arith.constant dense<0.000000e+00> : vector<128x128xf32>
    %9 = tpu.matmul %5, %8, %cst_6 {dimension_numbers = #tpu.dot_dimension_numbers<[1], [0], [0], [1], [0, 0, 1, 1], [], []>} : vector<128x1280xbf16>, vector<1280x128xbf16>, vector<128x128xf32> -> vector<128x128xf32>
    %10 = arith.addf %7, %9 : vector<128x128xf32>
    %c0_7 = arith.constant 0 : index
    %c0_8 = arith.constant 0 : index
    %11 = vector.load %arg4[%c0_7, %c0_8] : memref<1x128xf32, #tpu.memory_space<vmem>>, vector<1x128xf32>
    %12 = vector.broadcast %11 : vector<1x128xf32> to vector<128x128xf32>
    %13 = arith.addf %10, %12 : vector<128x128xf32>
    %14 = arith.negf %13 : vector<128x128xf32>
    %15 = math.exp %14 : vector<128x128xf32>
    %cst_9 = arith.constant 1.000000e+00 : f32
    %16 = vector.broadcast %cst_9 : f32 to vector<128x128xf32>
    %17 = arith.addf %16, %15 : vector<128x128xf32>
    %18 = arith.divf %16, %17 : vector<128x128xf32>
    %c0_10 = arith.constant 0 : index
    %19 = arith.index_cast %1 : i32 to index
    %20 = vector.load %arg1[%c0_10, %19] : memref<128x1280xf32, #tpu.memory_space<vmem>>, vector<128x128xf32>
    %c0_11 = arith.constant 0 : index
    %21 = arith.index_cast %1 : i32 to index
    %22 = vector.load %arg2[%c0_11, %21] : memref<128x1280xf32, #tpu.memory_space<vmem>>, vector<128x128xf32>
    %23 = arith.subf %20, %22 : vector<128x128xf32>
    %24 = arith.mulf %18, %23 : vector<128x128xf32>
    %25 = arith.addf %24, %22 : vector<128x128xf32>
    %cst_12 = arith.constant dense<0.000000e+00> : vector<128xf32>
    %26 = vector.multi_reduction <add>, %25, %cst_12 [0] : vector<128x128xf32> to vector<128xf32>
    %27 = vector.shape_cast %26 : vector<128xf32> to vector<1x128xf32>
    %cst_13 = arith.constant 7.812500e-03 : f32
    %28 = vector.broadcast %cst_13 : f32 to vector<1x128xf32>
    %29 = arith.mulf %27, %28 : vector<1x128xf32>
    %30 = arith.mulf %25, %25 : vector<128x128xf32>
    %cst_14 = arith.constant dense<0.000000e+00> : vector<128xf32>
    %31 = vector.multi_reduction <add>, %30, %cst_14 [0] : vector<128x128xf32> to vector<128xf32>
    %32 = vector.shape_cast %31 : vector<128xf32> to vector<1x128xf32>
    %cst_15 = arith.constant 7.812500e-03 : f32
    %33 = vector.broadcast %cst_15 : f32 to vector<1x128xf32>
    %34 = arith.mulf %32, %33 : vector<1x128xf32>
    %35 = arith.mulf %29, %29 : vector<1x128xf32>
    %36 = arith.subf %34, %35 : vector<1x128xf32>
    %c0_16 = arith.constant 0 : index
    %c0_17 = arith.constant 0 : index
    %37 = vector.load %arg5[%c0_16, %c0_17] : memref<1x128xf32, #tpu.memory_space<vmem>>, vector<1x128xf32>
    %cst_18 = arith.constant 9.99999974E-6 : f32
    %38 = vector.broadcast %cst_18 : f32 to vector<1x128xf32>
    %39 = arith.addf %36, %38 : vector<1x128xf32>
    %40 = math.rsqrt %39 : vector<1x128xf32>
    %41 = arith.mulf %37, %40 : vector<1x128xf32>
    %42 = vector.broadcast %29 : vector<1x128xf32> to vector<128x128xf32>
    %43 = arith.subf %25, %42 : vector<128x128xf32>
    %44 = vector.broadcast %41 : vector<1x128xf32> to vector<128x128xf32>
    %45 = arith.mulf %43, %44 : vector<128x128xf32>
    %c0_19 = arith.constant 0 : index
    %c0_20 = arith.constant 0 : index
    %46 = vector.load %arg6[%c0_19, %c0_20] : memref<1x128xf32, #tpu.memory_space<vmem>>, vector<1x128xf32>
    %47 = vector.broadcast %46 : vector<1x128xf32> to vector<128x128xf32>
    %48 = arith.addf %45, %47 : vector<128x128xf32>
    %c0_21 = arith.constant 0 : index
    %c0_22 = arith.constant 0 : index
    %49 = vector.load %arg7[%c0_21, %c0_22] : memref<128x128xf32, #tpu.memory_space<vmem>>, vector<128x128xf32>
    tpu.vector_store %arg7[%c0_21, %c0_22], %48 {strides = array<i32>} : memref<128x128xf32, #tpu.memory_space<vmem>>, vector<128x128xf32>,
    return
  }
  func.func @transform_0(%arg0: i32) -> (i32, i32) {
    %c0_i32 = arith.constant 0 : i32
    %c0_i32_0 = arith.constant 0 : i32
    %c0_i32_1 = arith.constant 0 : i32
    return %c0_i32, %c0_i32_0 : i32, i32
  }
  func.func @transform_1(%arg0: i32) -> (i32, i32) {
    %c0_i32 = arith.constant 0 : i32
    %c0_i32_0 = arith.constant 0 : i32
    %c0_i32_1 = arith.constant 0 : i32
    return %c0_i32, %c0_i32_0 : i32, i32
  }
  func.func @transform_2(%arg0: i32) -> (i32, i32) {
    %c0_i32 = arith.constant 0 : i32
    %c0_i32_0 = arith.constant 0 : i32
    return %c0_i32, %arg0 : i32, i32
  }
  func.func @transform_3(%arg0: i32) -> (i32, i32) {
    %c0_i32 = arith.constant 0 : i32
    %c0_i32_0 = arith.constant 0 : i32
    return %c0_i32, %arg0 : i32, i32
  }
  func.func @transform_4(%arg0: i32) -> (i32, i32) {
    %c0_i32 = arith.constant 0 : i32
    %c0_i32_0 = arith.constant 0 : i32
    return %c0_i32, %arg0 : i32, i32
  }
  func.func @transform_5(%arg0: i32) -> (i32, i32) {
    %c0_i32 = arith.constant 0 : i32
    %c0_i32_0 = arith.constant 0 : i32
    return %c0_i32, %arg0 : i32, i32
  }
  func.func @transform_6(%arg0: i32) -> (i32, i32) {
    %c0_i32 = arith.constant 0 : i32
    %c0_i32_0 = arith.constant 0 : i32
    return %c0_i32, %arg0 : i32, i32
  }
}

</mosaic_0001>

<bundles_post_ra>
// kernel: tpu_custom_call.1
= control target key start
LH: loop header
LB: loop body
LE: loop exit
PB: predicated region body
PF: predicated region fallthrough
CT: control target
= control target key end

     0   :  { %s6193_s0 = inlined_call_operand.hbm [shape: f32[128,1280], index: 0, kind: input, shape index: {}]   ;;  %s6194_s1 = inlined_call_operand.hbm [shape: f32[128,1280], index: 1, kind: input, shape index: {}]   ;;  %s6195_s2 = inlined_call_operand.hbm [shape: bf16[2560,1280], index: 2, kind: input, shape index: {}]   ;;  %s6196_s3 = inlined_call_operand.hbm [shape: f32[1,1280], index: 3, kind: input, shape index: {}]   ;;  %s6197_s4 = inlined_call_operand.hbm [shape: f32[1,1280], index: 4, kind: input, shape index: {}]   ;;  %s6198_s5 = inlined_call_operand.hbm [shape: f32[1,1280], index: 5, kind: input, shape index: {}]   ;;  %s6199_s6 = inlined_call_operand.hbm [shape: f32[128,1280], index: 6, kind: output, shape index: {}]  }
   0x1   :  { %6207 = sst [smem:[#allocation20_spill]] %s6193_s0 }
   0x2   :  { %6208 = sst [smem:[#allocation21_spill]] %s6195_s2 }
   0x3   :  { %11 = vsyncpa [#allocation3], 0 }
   0x4   :  { %12 = vsyncpa [#allocation6], 0 }
   0x5   :  { %13 = vsyncpa [#allocation4], 0 }
   0x6   :  { %15 = vsyncpa [#allocation4 + $0x1], 0  ;;  %s5148_s21 = smov 0   ;;  %s5150_s22 = smov 0  }
   0x7   :  { %s5152_s23 = smov 0   ;;  %s5154_s24 = smov 0  }
   0x8 LB: > { %6209 = sst [smem:[#allocation16_spill]] %s5097_s23  ;;  %s5169_s25 = sadd.s32 4294967295, %s5101_s24   ;;  %s5101_s24 = sphi %s5154_s24, %s6249_s24   ;;  %s5097_s23 = sphi %s5152_s23, %s6251_s23   ;;  %s5093_s22 = sphi %s5150_s22, %s6253_s22   ;;  %s5089_s21 = sphi %s5148_s21, %s6252_s21  }
   0x9   : > { %s3854_s26 = sadd.s32 4294967294, %s5101_s24   ;;  %s5173_s27 = sadd.s32 1, %s5101_s24  }
   0xa   : > { %6210 = sst [smem:[#allocation17_spill]] %s5173_s27  ;;  %s70_s28 = sadd.s32 1, %s5097_s23 }
   0xb   : > { %s67_s29 = ssub.s32 %s5101_s24, %s5173_s27  ;;  %p77_p0 = scmp.ne.s32.totalorder %s5097_s23, %s5093_s22 }
   0xc   : > { %p68_p1 = scmp.eq.s32.totalorder %s67_s29, 0  ;;  %p78_p2 = scmp.eq.s32.totalorder %s5101_s24, 0 }
   0xd   : > { %p83_p3 = scmp.ne.s32.totalorder %s5093_s22, %s5089_s21  ;;  %p6204_p4 = scmp.eq.s32.totalorder %s5169_s25, 0 }
   0xe   : > { %s5185_s30 = scalar_select %p68_p1, %s5097_s23, %s70_s28  }
   0xf   : > { %p5187_p5 = por %p78_p2, %p77_p0  ;;  %p5193_p6 = por %p6204_p4, %p83_p3 }
  0x10   : > { %6211 = sst [smem:[#allocation18_spill]] %s5185_s30  ;;  %p185_p7 = scmp.eq.s32.totalorder %s5169_s25, 9 }
  0x11   : > { %p191_p8 = scmp.eq.s32.totalorder %s3854_s26, 9  ;;  %p3855_p9 = scmp.ge.s32.totalorder %s5101_s24, 1 }
  0x12   : > { %p198_p10 = scmp.lt.s32.totalorder %s5101_s24, 11  ;;  %p5200_p11 = por %p185_p7, %p77_p0 }
  0x13   : > { %p5204_p12 = por %p191_p8, %p83_p3  ;;  %s6218_s0 = sld [smem:[#allocation20_spill]] }
  0x14   : > { %p5208_p13 = pnand %p3855_p9, %p198_p10  ;;  %s5103_s15 = smov [#allocation2]  }
  0x15   : > { %s6215_s10 = scalar_select %p5204_p12, 1, 0 }
  0x16   : > { %p4707_p0 = pneg %p5208_p13  ;;  %s211_s16 = sshll.u32 %s5103_s15, 4  ;;  %s212_s16 = int_to_ptr.vmem [resolvable:$true] %s211_s16 }
  0x17   : > { %6216 = sst [smem:[#allocation19_spill]] %s6215_s10  ;;  %p4733_p2 = scmp.lt.s32.totalorder %s5101_s24, 10 }
  0x18   : > { %p5219_p1 = pnand %p4707_p0, %p6204_p4  ;;  %s6202_s18 = smov 1280  }
  0x19   : > { %s209_s14 = sshll.u32 %s6218_s0, 4  ;;  %s6203_s19 = smov 80   ;;  %s210_s14 = int_to_ptr.hbm [resolvable:$true] %s209_s14 }
  0x1a   : > { %4710 = dma.hbm_to_vmem [thread:$0]  (!%p5219_p1), %s210_s14, 20480, %s212_s16, [#allocation3], %s6202_s18, %s6202_s18, %s6203_s19  }
  0x1b   : > { %p5231_p3 = pnand %p4733_p2, %p5187_p5  ;;  %s239_s26 = sand.u32 1, %s5101_s24  }
  0x1c   : > { %s5237_s28 = sand.u32 1, %s5097_s23   ;;  %s3859_s12 = sshll.u32 %s5101_s24, 2 }
  0x1d   : > { %s4687_s29 = smul.u32 1280, %s5237_s28  ;;  %s6221_s2 = sld [smem:[#allocation21_spill]] }
  0x1e   : > { %s5244_s7 = scalar_lea.sflag [#allocation3], %s239_s26  ;;  %p4881_p7 = pneg %p5231_p3 }
  0x1f   : > { %s243_s27 = scalar_lea.vmem [#allocation7], %s4687_s29 }
  0x20   : > { %s250_s14 = sshll.u32 %s243_s27, 4  ;;  %s251_s14 = int_to_ptr.vmem [resolvable:$true] %s250_s14 }
  0x23   : > { %s247_s0 = scalar_lea.hbm %s6221_s2, %s3859_s12 }
  0x24   : > { %s248_s30 = sshll.u32 %s247_s0, 4  ;;  %s4884_s0 = scalar_lea.hbm %s6221_s2, 12800  ;;  %s249_s30 = int_to_ptr.hbm [resolvable:$true] %s248_s30 }
  0x25   : > { %s4877_s16 = sshra.s32 %s249_s30, 4  ;;  %s4878_s16 = int_to_ptr.hbm [resolvable:$true] %s4877_s16 }
  0x26   : > { %s4879_s18 = scalar_lea.hbm %s4878_s16, 1280  ;;  %p4885_p10 = scmp.lt.s32.totalorder %s4878_s16, %s6221_s2 }
  0x27   : > { %p4880_p5 = scmp.ne.s32.totalorder %s4878_s16, %s4879_s18  ;;  %p4886_p0 = scmp.lt.s32.totalorder %s4884_s0, %s4879_s18 }
  0x29   : > { %p4882_p8 = pnand %p4881_p7, %p4880_p5  ;;  %p4887_p2 = por %p4886_p0, %p4885_p10 }
  0x2b   : > { %p4883_p9 = pneg %p4882_p8 }
  0x2d   : > { %p4888_p4 = pnand %p4887_p2, %p4883_p9 }
  0x2f   : > { %4891 = shalt.err (!%p4888_p4)
}
  0x30   : > { %s5106_s26 = smov 640   ;;  %s5107_s12 = smov 64  }
  0x31   : > { %s5108_s15 = smov 4   ;;  %s266_s23 = scalar_lea.hbm %s6196_s3, %s5101_s24 }
  0x32   : > { %4717 = dma.hbm_to_vmem [thread:$0]  (!%p5231_p3), %s249_s30, 20480, %s251_s14, %s5244_s7, %s5106_s26, %s5107_s12, %s5108_s15  }
  0x33   : > { %s268_s29 = sshll.u32 %s266_s23, 4  ;;  %s263_s16 = scalar_lea.vmem [#allocation8], %s5237_s28  ;;  %s269_s29 = int_to_ptr.hbm [resolvable:$true] %s268_s29 }
  0x34   : > { %s270_s18 = sshll.u32 %s263_s16, 4  ;;  %s4907_s0 = sshra.s32 %s269_s29, 4  ;;  %s271_s18 = int_to_ptr.vmem [resolvable:$true] %s270_s18  ;;  %s4908_s0 = int_to_ptr.hbm [resolvable:$true] %s4907_s0 }
  0x35   : > { %s4909_s27 = scalar_lea.hbm %s4908_s0, 1  ;;  %s4914_s30 = scalar_lea.hbm %s6196_s3, 10 }
  0x36   : > { %p4910_p4 = scmp.ne.s32.totalorder %s4908_s0, %s4909_s27  ;;  %p4915_p9 = scmp.lt.s32.totalorder %s4908_s0, %s6196_s3 }
  0x37   : > { %p4916_p10 = scmp.lt.s32.totalorder %s4914_s30, %s4909_s27 }
  0x38   : > { %p4912_p5 = pnand %p4910_p4, %p4881_p7 }
  0x39   : > { %p4917_p0 = por %p4916_p10, %p4915_p9 }
  0x3a   : > { %p4913_p8 = pneg %p4912_p5 }
  0x3c   : > { %p4918_p2 = pnand %p4917_p0, %p4913_p8 }
  0x3e   : > { %4921 = shalt.err (!%p4918_p2)
}
  0x3f   : > { %4720 = dma.hbm_to_vmem [thread:$0]  (!%p5231_p3), %s269_s29, 16, %s271_s18, %s5244_s7  }
  0x40   : > { %s283_s2 = scalar_lea.hbm %s6197_s4, %s5101_s24  ;;  %s280_s15 = scalar_lea.vmem [#allocation9], %s5237_s28 }
  0x41   : > { %s285_s10 = sshll.u32 %s283_s2, 4  ;;  %s287_s19 = sshll.u32 %s280_s15, 4  ;;  %s286_s10 = int_to_ptr.hbm [resolvable:$true] %s285_s10  ;;  %s288_s19 = int_to_ptr.vmem [resolvable:$true] %s287_s19 }
  0x42   : > { %s4937_s13 = sshra.s32 %s286_s10, 4  ;;  %s4944_s29 = scalar_lea.hbm %s6197_s4, 10  ;;  %s4938_s13 = int_to_ptr.hbm [resolvable:$true] %s4937_s13 }
  0x43   : > { %s4939_s16 = scalar_lea.hbm %s4938_s13, 1  ;;  %p4945_p9 = scmp.lt.s32.totalorder %s4938_s13, %s6197_s4 }
  0x44   : > { %p4940_p4 = scmp.ne.s32.totalorder %s4938_s13, %s4939_s16  ;;  %p4946_p10 = scmp.lt.s32.totalorder %s4944_s29, %s4939_s16 }
  0x46   : > { %p4942_p5 = pnand %p4940_p4, %p4881_p7  ;;  %p4947_p0 = por %p4946_p10, %p4945_p9 }
  0x48   : > { %p4943_p8 = pneg %p4942_p5 }
  0x4a   : > { %p4948_p2 = pnand %p4947_p0, %p4943_p8 }
  0x4c   : > { %4951 = shalt.err (!%p4948_p2)
}
  0x4d   : > { %4723 = dma.hbm_to_vmem [thread:$0]  (!%p5231_p3), %s286_s10, 16, %s288_s19, %s5244_s7  }
  0x4e   : > { %s223_s23 = sshll.u32 %s6194_s1, 4  ;;  %s5109_s12 = smov [#allocation5]   ;;  %s224_s23 = int_to_ptr.hbm [resolvable:$true] %s223_s23 }
  0x4f   : > { %s225_s2 = sshll.u32 %s5109_s12, 4  ;;  %s6222_s15 = smov 80   ;;  %s226_s2 = int_to_ptr.vmem [resolvable:$true] %s225_s2 }
  0x50   : > { %s6223_s13 = smov 1280   ;;  %s300_s27 = scalar_lea.hbm %s6198_s5, %s5101_s24 }
  0x51   : > { %4713 = dma.hbm_to_vmem [thread:$0]  (!%p5219_p1), %s224_s23, 20480, %s226_s2, [#allocation6], %s6223_s13, %s6223_s13, %s6222_s15  }
  0x52   : > { %s297_s29 = scalar_lea.vmem [#allocation10], %s5237_s28  ;;  %s302_s19 = sshll.u32 %s300_s27, 4  ;;  %s303_s19 = int_to_ptr.hbm [resolvable:$true] %s302_s19 }
  0x53   : > { %s304_s10 = sshll.u32 %s297_s29, 4  ;;  %s4997_s18 = sshra.s32 %s303_s19, 4  ;;  %s305_s10 = int_to_ptr.vmem [resolvable:$true] %s304_s10  ;;  %s4998_s18 = int_to_ptr.hbm [resolvable:$true] %s4997_s18 }
  0x54   : > { %s4999_s30 = scalar_lea.hbm %s4998_s18, 1  ;;  %s5004_s26 = scalar_lea.hbm %s6198_s5, 10 }
  0x55   : > { %p5000_p4 = scmp.ne.s32.totalorder %s4998_s18, %s4999_s30  ;;  %p5005_p1 = scmp.lt.s32.totalorder %s4998_s18, %s6198_s5 }
  0x56   : > { %p5006_p9 = scmp.lt.s32.totalorder %s5004_s26, %s4999_s30 }
  0x57   : > { %p5002_p5 = pnand %p5000_p4, %p4881_p7 }
  0x58   : > { %p5007_p10 = por %p5006_p9, %p5005_p1 }
  0x59   : > { %p5003_p8 = pneg %p5002_p5 }
  0x5b   : > { %p5008_p0 = pnand %p5007_p10, %p5003_p8 }
  0x5d   : > { %5011 = shalt.err (!%p5008_p0)
}
  0x5e   : > { %4726 = dma.hbm_to_vmem [thread:$0]  (!%p5231_p3), %s303_s19, 16, %s305_s10, %s5244_s7  }
  0x5f   : > { %313 = sbr.rel (%p5208_p13) target bundleno = 1015 (0x3f7), region = 44  ;;  %p6224_p7 = scmp.eq.s32.totalorder (!%p5208_p13), %s5169_s25, 0 }
  0x64   : > { %5072 = dma.done.wait (%p6224_p7), [#allocation3], 20480   ;;  %p6225_p2 = pmov %p6224_p7 }
  0x66   : > { %5074 = vsyncadd (%p6225_p2), [#allocation3], 4294946816  ;;  %p6226_p4 = pmov %p6225_p2 }
  0x67   : > { %p6227_p5 = pmov %p6225_p2 }
  0x68   : > { %5076 = dma.done.wait (%p6226_p4), [#allocation6], 20480  }
  0x69   : > { %5078 = vsyncadd (%p6227_p5), [#allocation6], 4294946816  ;;  %s325_s20 = sand.u32 1, %s5169_s25   ;;  %s5331_s28 = sand.u32 1, %s5093_s22  }
  0x6a   : > { %s4688_s11 = smul.u32 1280, %s5331_s28  ;;  %s326_s7 = scalar_lea.sflag [#allocation3], %s325_s20 }
  0x6c   : > { %s5334_s2 = scalar_lea.vmem [#allocation7], %s4688_s11 }
  0x6d   : > { %5080 = dma.done.wait (%p5193_p6), %s326_s7, 20528  }
  0x6e   : > { %5082 = vsyncadd (%p5193_p6), %s326_s7, 4294946768  ;;  %v4614_v0 = vld [vmem:[%s5334_s2 + $0x2b8] sm:$0xff]  ;;  %v4613_v4 = vld [vmem:[%s5334_s2 + $0x2b0] sm:$0xff]  ;;  %s338_s8 = scalar_lea.vmem [#allocation8], %s5331_s28  ;;  %s356_s15 = scalar_lea.vmem [#allocation10], %s5331_s28 }
  0x6f   : > { %v4622_v1 = vld [vmem:[%s5334_s2 + $0x2f8] sm:$0xff]  ;;  %1679 = vmatpush.bf16.msra.mxu0 %v4614_v0  ;;  %v4621_v5 = vld [vmem:[%s5334_s2 + $0x2f0] sm:$0xff]  ;;  %v4612_v8 = vld [vmem:[%s5334_s2 + $0x2a8] sm:$0xff]  ;;  %s3864_s13 = sshll.u32 %s5169_s25, 7  ;;  %s347_s10 = scalar_lea.vmem [#allocation9], %s5331_s28 }
  0x70   : > { %v4630_v2 = vld [vmem:[%s5334_s2 + $0x338] sm:$0xff]  ;;  %1728 = vmatpush.bf16.msra.mxu1 %v4622_v1  ;;  %v4629_v6 = vld [vmem:[%s5334_s2 + $0x330] sm:$0xff]  ;;  %v4620_v9 = vld [vmem:[%s5334_s2 + $0x2e8] sm:$0xff]  ;;  %s5711_s16 = sshra.s32 %s3864_s13, 7  ;;  %s3863_s19 = sshll.u32 %s5331_s28, 7 }
  0x71   : > { %v4638_v3 = vld [vmem:[%s5334_s2 + $0x378] sm:$0xff]  ;;  %1777 = vmatpush.bf16.msra.mxu2 %v4630_v2  ;;  %v4637_v7 = vld [vmem:[%s5334_s2 + $0x370] sm:$0xff]  ;;  %v4628_v10 = vld [vmem:[%s5334_s2 + $0x328] sm:$0xff]  ;;  %s4521_s0 = sshll.u32 %s5711_s16, 3  ;;  %s6142_s18 = scalar_lea.vmem [#allocation11], %s3863_s19 }
  0x72   : > { %1826 = vmatpush.bf16.msra.mxu3 %v4638_v3  ;;  %v4636_v11 = vld [vmem:[%s5334_s2 + $0x368] sm:$0xff]  ;;  %v4611_v12 = vld [vmem:[%s5334_s2 + $0x2a0] sm:$0xff]  ;;  %v4610_v16 = vld [vmem:[%s5334_s2 + $0x298] sm:$0xff]  ;;  %s5737_s27 = scalar_lea.vmem [#allocation2], %s4521_s0  ;;  %s5740_s29 = scalar_lea.vmem [#allocation5], %s4521_s0 }
  0x73   : > { %1680 = vmatpush.bf16.msra.mxu0 %v4613_v4  ;;  %v4619_v13 = vld [vmem:[%s5334_s2 + $0x2e0] sm:$0xff]  ;;  %v4618_v17 = vld [vmem:[%s5334_s2 + $0x2d8] sm:$0xff]  ;;  %v4609_v20 = vld [vmem:[%s5334_s2 + $0x290] sm:$0xff]  ;;  %s4524_s30 = sshll.u32 %s5169_s25, 3  ;;  %s3707_s25 = sshll.u32 %s6142_s18, 4  ;;  %s3708_s25 = int_to_ptr.vmem [resolvable:$true] %s3707_s25 }
  0x74   : > { %1729 = vmatpush.bf16.msra.mxu1 %v4621_v5  ;;  %v4627_v14 = vld [vmem:[%s5334_s2 + $0x320] sm:$0xff]  ;;  %v4626_v18 = vld [vmem:[%s5334_s2 + $0x318] sm:$0xff]  ;;  %v4617_v21 = vld [vmem:[%s5334_s2 + $0x2d0] sm:$0xff]  ;;  %s3706_s26 = scalar_lea.hbm %s6199_s6, %s4524_s30  ;;  %s3696_s12 = scalar_lea.sflag [#allocation4], %s5331_s28 }
  0x75   : > { %1778 = vmatpush.bf16.msra.mxu2 %v4629_v6  ;;  %v4635_v15 = vld [vmem:[%s5334_s2 + $0x360] sm:$0xff]  ;;  %v4634_v19 = vld [vmem:[%s5334_s2 + $0x358] sm:$0xff]  ;;  %v4625_v22 = vld [vmem:[%s5334_s2 + $0x310] sm:$0xff]  ;;  %s3709_s23 = sshll.u32 %s3706_s26, 4  ;;  %s3710_s23 = int_to_ptr.hbm [resolvable:$true] %s3709_s23 }
  0x76   : > { %1827 = vmatpush.bf16.msra.mxu3 %v4637_v7  ;;  %v4633_v23 = vld [vmem:[%s5334_s2 + $0x350] sm:$0xff]  ;;  %v4608_v24 = vld [vmem:[%s5334_s2 + $0x288] sm:$0xff]  ;;  %v4607_v28 = vld [vmem:[%s5334_s2 + $0x280] sm:$0xff]  ;;  %s5041_s20 = sshra.s32 %s3710_s23, 4  ;;  %s5042_s20 = int_to_ptr.hbm [resolvable:$true] %s5041_s20 }
  0x77   : > { %1681 = vmatpush.bf16.msra.mxu0 %v4612_v8  ;;  %v4616_v25 = vld [vmem:[%s5334_s2 + $0x2c8] sm:$0xff]  ;;  %v4615_v29 = vld [vmem:[%s5334_s2 + $0x2c0] sm:$0xff]  ;;  %v649_v33 = vld [vmem:[#allocation5 + $0x50] sm:$0xff]  ;;  %s5043_s11 = scalar_lea.hbm %s5042_s20, 128  ;;  %p5048_p8 = scmp.lt.s32.totalorder %s5042_s20, %s6199_s6 }
  0x78   : > { %1730 = vmatpush.bf16.msra.mxu1 %v4620_v9  ;;  %v4624_v26 = vld [vmem:[%s5334_s2 + $0x308] sm:$0xff]  ;;  %v4623_v30 = vld [vmem:[%s5334_s2 + $0x300] sm:$0xff]  ;;  %v650_v35 = vld [vmem:[#allocation5 + $0x58] sm:$0xff]  ;;  %p5044_p6 = scmp.ne.s32.totalorder %s5042_s20, %s5043_s11 }
  0x79   : > { %1779 = vmatpush.bf16.msra.mxu2 %v4628_v10  ;;  %v4632_v27 = vld [vmem:[%s5334_s2 + $0x348] sm:$0xff]  ;;  %v4631_v31 = vld [vmem:[%s5334_s2 + $0x340] sm:$0xff]  ;;  %v641_v36 = vld [vmem:[#allocation5 + $0x10] sm:$0xff] }
  0x7a   : > { %1828 = vmatpush.bf16.msra.mxu3 %v4636_v11  ;;  %v639_v32 = vld [vmem:[#allocation5] sm:$0xff]  ;;  %v640_v34 = vld [vmem:[#allocation5 + $0x8] sm:$0xff]  ;;  %v642_v38 = vld [vmem:[#allocation5 + $0x18] sm:$0xff]  ;;  %p5045_p13 = pnand %p5044_p6, %p5200_p11 }
  0x7b   : > { %1682 = vmatpush.bf16.msra.mxu0 %v4611_v12  ;;  %v651_v37 = vld [vmem:[#allocation5 + $0x60] sm:$0xff]  ;;  %v652_v39 = vld [vmem:[#allocation5 + $0x68] sm:$0xff]  ;;  %v4662_v40 = vld [vmem:[%s5334_s2 + $0x438] sm:$0xff]  ;;  %v799_v42 = vpack.c.bf16 %v649_v33, %v639_v32  ;;  %v800_v43 = vpack.c.bf16 %v650_v35, %v640_v34 }
  0x7c   : > { %1731 = vmatpush.bf16.msra.mxu1 %v4619_v13  ;;  %v4646_v41 = vld [vmem:[%s5334_s2 + $0x3b8] sm:$0xff]  ;;  %v801_v44 = vpack.c.bf16 %v651_v37, %v641_v36  ;;  %v802_v45 = vpack.c.bf16 %v652_v39, %v642_v38  ;;  %v4661_v48 = vld [vmem:[%s5334_s2 + $0x430] sm:$0xff]  ;;  %v4660_v52 = vld [vmem:[%s5334_s2 + $0x428] sm:$0xff]  ;;  %p5046_p3 = pneg %p5045_p13 }
  0x7d   : > { %1780 = vmatpush.bf16.msra.mxu2 %v4627_v14  ;;  %v4670_v46 = vld [vmem:[%s5334_s2 + $0x478] sm:$0xff]  ;;  %v4645_v49 = vld [vmem:[%s5334_s2 + $0x3b0] sm:$0xff]  ;;  %v4644_v53 = vld [vmem:[%s5334_s2 + $0x3a8] sm:$0xff] }
  0x7e   : > { %1829 = vmatpush.bf16.msra.mxu3 %v4635_v15  ;;  %v4654_v47 = vld [vmem:[%s5334_s2 + $0x3f8] sm:$0xff]  ;;  %v4669_v50 = vld [vmem:[%s5334_s2 + $0x470] sm:$0xff]  ;;  %v4668_v54 = vld [vmem:[%s5334_s2 + $0x468] sm:$0xff] }
  0x7f   : > { %1683 = vmatpush.bf16.msra.mxu0 %v4610_v16  ;;  %v4653_v51 = vld [vmem:[%s5334_s2 + $0x3f0] sm:$0xff]  ;;  %v4652_v55 = vld [vmem:[%s5334_s2 + $0x3e8] sm:$0xff]  ;;  %v659_v56 = vld [vmem:[#allocation5 + $0xa0] sm:$0xff] }
  0x80   : > { %1732 = vmatpush.bf16.msra.mxu1 %v4618_v17  ;;  %v669_v57 = vld [vmem:[#allocation5 + $0xf0] sm:$0xff]  ;;  %v660_v58 = vld [vmem:[#allocation5 + $0xa8] sm:$0xff]  ;;  %v670_v59 = vld [vmem:[#allocation5 + $0xf8] sm:$0xff] }
  0x81   : > { %1781 = vmatpush.bf16.msra.mxu2 %v4626_v18  ;;  %v661_v60 = vld [vmem:[#allocation5 + $0xb0] sm:$0xff]  ;;  %v671_v61 = vld [vmem:[#allocation5 + $0x100] sm:$0xff]  ;;  %v662_v62 = vld [vmem:[#allocation5 + $0xb8] sm:$0xff]  ;;  %v809_v0 = vpack.c.bf16 %v669_v57, %v659_v56  ;;  %v810_v1 = vpack.c.bf16 %v670_v59, %v660_v58 }
  0x82   : > { %1830 = vmatpush.bf16.msra.mxu3 %v4634_v19  ;;  %v672_v63 = vld [vmem:[#allocation5 + $0x108] sm:$0xff]  ;;  %v811_v2 = vpack.c.bf16 %v671_v61, %v661_v60  ;;  %v4659_v4 = vld [vmem:[%s5334_s2 + $0x420] sm:$0xff]  ;;  %v689_v9 = vld [vmem:[#allocation5 + $0x190] sm:$0xff] }
  0x83   : > { %1684 = vmatpush.bf16.msra.mxu0 %v4609_v20  ;;  %v812_v3 = vpack.c.bf16 %v672_v63, %v662_v62  ;;  %v4643_v5 = vld [vmem:[%s5334_s2 + $0x3a0] sm:$0xff]  ;;  %v680_v10 = vld [vmem:[#allocation5 + $0x148] sm:$0xff]  ;;  %v690_v11 = vld [vmem:[#allocation5 + $0x198] sm:$0xff] }
  0x84   : > { %1733 = vmatpush.bf16.msra.mxu1 %v4617_v21  ;;  %v4667_v6 = vld [vmem:[%s5334_s2 + $0x460] sm:$0xff]  ;;  %v681_v12 = vld [vmem:[#allocation5 + $0x150] sm:$0xff]  ;;  %v682_v14 = vld [vmem:[#allocation5 + $0x158] sm:$0xff]  ;;  %v820_v17 = vpack.c.bf16 %v690_v11, %v680_v10 }
  0x85   : > { %1782 = vmatpush.bf16.msra.mxu2 %v4625_v22  ;;  %v4651_v7 = vld [vmem:[%s5334_s2 + $0x3e0] sm:$0xff]  ;;  %v692_v15 = vld [vmem:[#allocation5 + $0x1a8] sm:$0xff]  ;;  %v4658_v20 = vld [vmem:[%s5334_s2 + $0x418] sm:$0xff] }
  0x86   : > { %1831 = vmatpush.bf16.msra.mxu3 %v4633_v23  ;;  %v679_v8 = vld [vmem:[#allocation5 + $0x140] sm:$0xff]  ;;  %v822_v19 = vpack.c.bf16 %v692_v15, %v682_v14  ;;  %v4642_v21 = vld [vmem:[%s5334_s2 + $0x398] sm:$0xff]  ;;  %v4657_v36 = vld [vmem:[%s5334_s2 + $0x410] sm:$0xff] }
  0x87   : > { %1685 = vmatpush.bf16.msra.mxu0 %v4608_v24  ;;  %v691_v13 = vld [vmem:[#allocation5 + $0x1a0] sm:$0xff]  ;;  %v819_v16 = vpack.c.bf16 %v689_v9, %v679_v8  ;;  %v4666_v22 = vld [vmem:[%s5334_s2 + $0x458] sm:$0xff]  ;;  %v4641_v37 = vld [vmem:[%s5334_s2 + $0x390] sm:$0xff] }
  0x88   : > { %1734 = vmatpush.bf16.msra.mxu1 %v4616_v25  ;;  %v821_v18 = vpack.c.bf16 %v691_v13, %v681_v12  ;;  %v4650_v23 = vld [vmem:[%s5334_s2 + $0x3d8] sm:$0xff]  ;;  %v699_v24 = vld [vmem:[#allocation5 + $0x1e0] sm:$0xff]  ;;  %v709_v25 = vld [vmem:[#allocation5 + $0x230] sm:$0xff] }
  0x89   : > { %1783 = vmatpush.bf16.msra.mxu2 %v4624_v26  ;;  %v700_v26 = vld [vmem:[#allocation5 + $0x1e8] sm:$0xff]  ;;  %v829_v32 = vpack.c.bf16 %v709_v25, %v699_v24  ;;  %v4665_v38 = vld [vmem:[%s5334_s2 + $0x450] sm:$0xff]  ;;  %v739_v56 = vld [vmem:[#allocation5 + $0x320] sm:$0xff] }
  0x8a   : > { %1832 = vmatpush.bf16.msra.mxu3 %v4632_v27  ;;  %v710_v27 = vld [vmem:[#allocation5 + $0x238] sm:$0xff]  ;;  %v4649_v39 = vld [vmem:[%s5334_s2 + $0x3d0] sm:$0xff]  ;;  %v740_v58 = vld [vmem:[#allocation5 + $0x328] sm:$0xff] }
  0x8b   : > { %1686 = vmatpush.bf16.msra.mxu0 %v4607_v28  ;;  %v701_v28 = vld [vmem:[#allocation5 + $0x1f0] sm:$0xff]  ;;  %v830_v33 = vpack.c.bf16 %v710_v27, %v700_v26  ;;  %v750_v59 = vld [vmem:[#allocation5 + $0x378] sm:$0xff]  ;;  %v751_v61 = vld [vmem:[#allocation5 + $0x380] sm:$0xff] }
  0x8c   : > { %1735 = vmatpush.bf16.msra.mxu1 %v4615_v29  ;;  %v711_v29 = vld [vmem:[#allocation5 + $0x240] sm:$0xff]  ;;  %v749_v57 = vld [vmem:[#allocation5 + $0x370] sm:$0xff]  ;;  %v742_v62 = vld [vmem:[#allocation5 + $0x338] sm:$0xff] }
  0x8d   : > { %1784 = vmatpush.bf16.msra.mxu2 %v4623_v30  ;;  %v702_v30 = vld [vmem:[#allocation5 + $0x1f8] sm:$0xff]  ;;  %v831_v34 = vpack.c.bf16 %v711_v29, %v701_v28  ;;  %v741_v60 = vld [vmem:[#allocation5 + $0x330] sm:$0xff]  ;;  %v752_v63 = vld [vmem:[#allocation5 + $0x388] sm:$0xff] }
  0x8e   : > { %1833 = vmatpush.bf16.msra.mxu3 %v4631_v31  ;;  %1687 = vmatmul.bf16.vlgmr.msra.gmra.mxu0 %v799_v42  ;;  %v712_v31 = vld [vmem:[#allocation5 + $0x248] sm:$0xff]  ;;  %v759_v8 = vld [vmem:[#allocation5 + $0x3c0] sm:$0xff]  ;;  %v769_v9 = vld [vmem:[#allocation5 + $0x410] sm:$0xff] }
  0x8f   : > { %1875 = vmatpush.bf16.msrb.mxu0 %v4646_v41  ;;  %1736 = vmatmul.bf16.vlgmr.msra.gmra.mxu1 %v800_v43  ;;  %v832_v35 = vpack.c.bf16 %v712_v31, %v702_v30  ;;  %v729_v41 = vld [vmem:[#allocation5 + $0x2d0] sm:$0xff]  ;;  %v720_v42 = vld [vmem:[#allocation5 + $0x288] sm:$0xff]  ;;  %v730_v43 = vld [vmem:[#allocation5 + $0x2d8] sm:$0xff] }
  0x90   : > { %1785 = vmatmul.bf16.vlgmr.msra.gmra.mxu2 %v801_v44  ;;  %1924 = vmatpush.bf16.msrb.mxu1 %v4654_v47  ;;  %v721_v44 = vld [vmem:[#allocation5 + $0x290] sm:$0xff]  ;;  %v732_v47 = vld [vmem:[#allocation5 + $0x2e8] sm:$0xff]  ;;  %v770_v11 = vld [vmem:[#allocation5 + $0x418] sm:$0xff] }
  0x91   : > { %1973 = vmatpush.bf16.msrb.mxu2 %v4662_v40  ;;  %1834 = vmatmul.bf16.vlgmr.msra.gmra.mxu3 %v802_v45  ;;  %v719_v40 = vld [vmem:[#allocation5 + $0x280] sm:$0xff]  ;;  %v760_v10 = vld [vmem:[#allocation5 + $0x3c8] sm:$0xff]  ;;  %v761_v12 = vld [vmem:[#allocation5 + $0x3d0] sm:$0xff] }
  0x92   : > { %2022 = vmatpush.bf16.msrb.mxu3 %v4670_v46  ;;  %v731_v45 = vld [vmem:[#allocation5 + $0x2e0] sm:$0xff]  ;;  %v722_v46 = vld [vmem:[#allocation5 + $0x298] sm:$0xff]  ;;  %v772_v15 = vld [vmem:[#allocation5 + $0x428] sm:$0xff] }
  0x93   : > { %1876 = vmatpush.bf16.msrb.mxu0 %v4645_v49  ;;  %v840_v49 = vpack.c.bf16 %v730_v43, %v720_v42  ;;  %v771_v13 = vld [vmem:[#allocation5 + $0x420] sm:$0xff]  ;;  %v762_v14 = vld [vmem:[#allocation5 + $0x3d8] sm:$0xff]  ;;  %v789_v25 = vld [vmem:[#allocation5 + $0x4b0] sm:$0xff] }
  0x94   : > { %1925 = vmatpush.bf16.msrb.mxu1 %v4653_v51  ;;  %v842_v51 = vpack.c.bf16 %v732_v47, %v722_v46  ;;  %v779_v24 = vld [vmem:[#allocation5 + $0x460] sm:$0xff]  ;;  %v780_v26 = vld [vmem:[#allocation5 + $0x468] sm:$0xff]  ;;  %v790_v27 = vld [vmem:[#allocation5 + $0x4b8] sm:$0xff] }
  0x95   : > { %1974 = vmatpush.bf16.msrb.mxu2 %v4661_v48  ;;  %v839_v48 = vpack.c.bf16 %v729_v41, %v719_v40  ;;  %v781_v28 = vld [vmem:[#allocation5 + $0x470] sm:$0xff]  ;;  %v791_v29 = vld [vmem:[#allocation5 + $0x4c0] sm:$0xff]  ;;  %v782_v30 = vld [vmem:[#allocation5 + $0x478] sm:$0xff] }
  0x96   : > { %2023 = vmatpush.bf16.msrb.mxu3 %v4669_v50  ;;  %v841_v50 = vpack.c.bf16 %v731_v45, %v721_v44  ;;  %v792_v31 = vld [vmem:[#allocation5 + $0x4c8] sm:$0xff]  ;;  %v643_v40 = vld [vmem:[#allocation5 + $0x20] sm:$0xff]  ;;  %v653_v41 = vld [vmem:[#allocation5 + $0x70] sm:$0xff] }
  0x97   : > { %1877 = vmatpush.bf16.msrb.mxu0 %v4644_v53  ;;  %v4640_v53 = vld [vmem:[%s5334_s2 + $0x388] sm:$0xff]  ;;  %v654_v43 = vld [vmem:[#allocation5 + $0x78] sm:$0xff]  ;;  %v645_v44 = vld [vmem:[#allocation5 + $0x30] sm:$0xff] }
  0x98   : > { %1926 = vmatpush.bf16.msrb.mxu1 %v4652_v55  ;;  %v4648_v55 = vld [vmem:[%s5334_s2 + $0x3c8] sm:$0xff]  ;;  %v655_v45 = vld [vmem:[#allocation5 + $0x80] sm:$0xff]  ;;  %v646_v46 = vld [vmem:[#allocation5 + $0x38] sm:$0xff] }
  0x99   : > { %1975 = vmatpush.bf16.msrb.mxu2 %v4660_v52  ;;  %v4656_v52 = vld [vmem:[%s5334_s2 + $0x408] sm:$0xff] }
  0x9a   : > { %2024 = vmatpush.bf16.msrb.mxu3 %v4668_v54  ;;  %v4664_v54 = vld [vmem:[%s5334_s2 + $0x448] sm:$0xff] }
  0x9b   : > { %1878 = vmatpush.bf16.msrb.mxu0 %v4643_v5  ;;  %v4639_v5 = vld [vmem:[%s5334_s2 + $0x380] sm:$0xff]  ;;  %v644_v42 = vld [vmem:[#allocation5 + $0x28] sm:$0xff] }
  0x9c   : > { %1927 = vmatpush.bf16.msrb.mxu1 %v4651_v7  ;;  %v4647_v7 = vld [vmem:[%s5334_s2 + $0x3c0] sm:$0xff]  ;;  %v656_v47 = vld [vmem:[#allocation5 + $0x88] sm:$0xff] }
  0x9d   : > { %1976 = vmatpush.bf16.msrb.mxu2 %v4659_v4  ;;  %v4655_v4 = vld [vmem:[%s5334_s2 + $0x400] sm:$0xff] }
  0x9e   : > { %1692 = vmatmul.bf16.gmra.mxu0 %v809_v0  ;;  %2025 = vmatpush.bf16.msrb.mxu3 %v4667_v6  ;;  %v849_v0 = vpack.c.bf16 %v749_v57, %v739_v56  ;;  %v4663_v6 = vld [vmem:[%s5334_s2 + $0x440] sm:$0xff]  ;;  %v4676_v56 = vld [vmem:[%s5334_s2 + $0x4a8] sm:$0xff] }
  0x9f   : > { %1741 = vmatmul.bf16.gmra.mxu1 %v810_v1  ;;  %1879 = vmatpush.bf16.msrb.mxu0 %v4642_v21  ;;  %v850_v1 = vpack.c.bf16 %v750_v59, %v740_v58  ;;  %v4678_v21 = vld [vmem:[%s5334_s2 + $0x4b8] sm:$0xff]  ;;  %v4540_v57 = vld [vmem:[%s5334_s2 + $0x68] sm:$0xff] }
  0xa0   : > { %1790 = vmatmul.bf16.gmra.mxu2 %v811_v2  ;;  %1928 = vmatpush.bf16.msrb.mxu1 %v4650_v23  ;;  %v851_v2 = vpack.c.bf16 %v751_v61, %v741_v60  ;;  %v4686_v23 = vld [vmem:[%s5334_s2 + $0x4f8] sm:$0xff] }
  0xa1   : > { %1839 = vmatmul.bf16.gmra.mxu3 %v812_v3  ;;  %1977 = vmatpush.bf16.msrb.mxu2 %v4658_v20  ;;  %v852_v3 = vpack.c.bf16 %v752_v63, %v742_v62  ;;  %v4534_v20 = vld [vmem:[%s5334_s2 + $0x38] sm:$0xff] }
  0xa2   : > { %2026 = vmatpush.bf16.msrb.mxu3 %v4666_v22  ;;  %v4542_v22 = vld [vmem:[%s5334_s2 + $0x78] sm:$0xff] }
  0xa3   : > { %1880 = vmatpush.bf16.msrb.mxu0 %v4641_v37  ;;  %v4677_v37 = vld [vmem:[%s5334_s2 + $0x4b0] sm:$0xff] }
  0xa4   : > { %1929 = vmatpush.bf16.msrb.mxu1 %v4649_v39  ;;  %v4685_v39 = vld [vmem:[%s5334_s2 + $0x4f0] sm:$0xff] }
  0xa5   : > { %1978 = vmatpush.bf16.msrb.mxu2 %v4657_v36  ;;  %v4533_v36 = vld [vmem:[%s5334_s2 + $0x30] sm:$0xff] }
  0xa6   : > { %2027 = vmatpush.bf16.msrb.mxu3 %v4665_v38  ;;  %v4541_v38 = vld [vmem:[%s5334_s2 + $0x70] sm:$0xff] }
  0xa7   : > { %1881 = vmatpush.bf16.msrb.mxu0 %v4640_v53  ;;  %v806_v53 = vpack.c.bf16 %v656_v47, %v646_v46 }
  0xa8   : > { %1930 = vmatpush.bf16.msrb.mxu1 %v4648_v55  ;;  %v4532_v55 = vld [vmem:[%s5334_s2 + $0x28] sm:$0xff] }
  0xa9   : > { %1979 = vmatpush.bf16.msrb.mxu2 %v4656_v52  ;;  %v805_v52 = vpack.c.bf16 %v655_v45, %v645_v44 }
  0xaa   : > { %2028 = vmatpush.bf16.msrb.mxu3 %v4664_v54 }
  0xab   : > { %1882 = vmatpush.bf16.msrb.mxu0 %v4639_v5  ;;  %v674_v5 = vld [vmem:[#allocation5 + $0x118] sm:$0xff] }
  0xac   : > { %1931 = vmatpush.bf16.msrb.mxu1 %v4647_v7  ;;  %v675_v7 = vld [vmem:[#allocation5 + $0x120] sm:$0xff] }
  0xad   : > { %1980 = vmatpush.bf16.msrb.mxu2 %v4655_v4  ;;  %v664_v4 = vld [vmem:[#allocation5 + $0xc8] sm:$0xff] }
  0xae   : > { %1697 = vmatmul.bf16.gmra.mxu0 %v819_v16  ;;  %2029 = vmatpush.bf16.msrb.mxu3 %v4663_v6  ;;  %v859_v16 = vpack.c.bf16 %v769_v9, %v759_v8  ;;  %v665_v6 = vld [vmem:[#allocation5 + $0xd0] sm:$0xff]  ;;  %v666_v8 = vld [vmem:[#allocation5 + $0xd8] sm:$0xff]  ;;  %v676_v9 = vld [vmem:[#allocation5 + $0x128] sm:$0xff] }
  0xaf   : > { %1746 = vmatmul.bf16.gmra.mxu1 %v820_v17  ;;  %v860_v17 = vpack.c.bf16 %v770_v11, %v760_v10  ;;  %2071 = vmatpush.bf16.msra.mxu0 %v4678_v21  ;;  %v4531_v21 = vld [vmem:[%s5334_s2 + $0x20] sm:$0xff] }
  0xb0   : > { %1795 = vmatmul.bf16.gmra.mxu2 %v821_v18  ;;  %v861_v18 = vpack.c.bf16 %v771_v13, %v761_v12  ;;  %2120 = vmatpush.bf16.msra.mxu1 %v4686_v23  ;;  %v814_v13 = vpack.c.bf16 %v674_v5, %v664_v4  ;;  %v4539_v23 = vld [vmem:[%s5334_s2 + $0x60] sm:$0xff]  ;;  %v706_v5 = vld [vmem:[#allocation5 + $0x218] sm:$0xff] }
  0xb1   : > { %1844 = vmatmul.bf16.gmra.mxu3 %v822_v19  ;;  %v862_v19 = vpack.c.bf16 %v772_v15, %v762_v14  ;;  %2649 = vmatpush.bf16.msra.mxu2 %v4534_v20  ;;  %v715_v4 = vld [vmem:[#allocation5 + $0x260] sm:$0xff] }
  0xb2   : > { %2698 = vmatpush.bf16.msra.mxu3 %v4542_v22  ;;  %v4675_v22 = vld [vmem:[%s5334_s2 + $0x4a0] sm:$0xff] }
  0xb3   : > { %2072 = vmatpush.bf16.msra.mxu0 %v4677_v37  ;;  %v695_v37 = vld [vmem:[#allocation5 + $0x1c0] sm:$0xff] }
  0xb4   : > { %2121 = vmatpush.bf16.msra.mxu1 %v4685_v39  ;;  %v696_v39 = vld [vmem:[#allocation5 + $0x1c8] sm:$0xff] }
  0xb5   : > { %2650 = vmatpush.bf16.msra.mxu2 %v4533_v36  ;;  %v685_v36 = vld [vmem:[#allocation5 + $0x170] sm:$0xff] }
  0xb6   : > { %2699 = vmatpush.bf16.msra.mxu3 %v4541_v38  ;;  %v686_v38 = vld [vmem:[#allocation5 + $0x178] sm:$0xff]  ;;  %v825_v47 = vpack.c.bf16 %v695_v37, %v685_v36  ;;  %v735_v36 = vld [vmem:[#allocation5 + $0x300] sm:$0xff] }
  0xb7   : > { %2073 = vmatpush.bf16.msra.mxu0 %v4676_v56  ;;  %v726_v37 = vld [vmem:[#allocation5 + $0x2b8] sm:$0xff] }
  0xb9   : > { %2651 = vmatpush.bf16.msra.mxu2 %v4532_v55 }
  0xba   : > { %2700 = vmatpush.bf16.msra.mxu3 %v4540_v57 }
  0xbb   : > { %2074 = vmatpush.bf16.msra.mxu0 %v4675_v22 }
  0xbd   : > { %2652 = vmatpush.bf16.msra.mxu2 %v4531_v21  ;;  %v4537_v21 = vld [vmem:[%s5334_s2 + $0x50] sm:$0xff] }
  0xbe   : > { %1702 = vmatmul.bf16.gmra.mxu0 %v829_v32  ;;  %v869_v32 = vpack.c.bf16 %v789_v25, %v779_v24  ;;  %2701 = vmatpush.bf16.msra.mxu3 %v4539_v23 }
  0xbf   : > { %1751 = vmatmul.bf16.gmra.mxu1 %v830_v33  ;;  %v870_v33 = vpack.c.bf16 %v790_v27, %v780_v26 }
  0xc0   : > { %1800 = vmatmul.bf16.gmra.mxu2 %v831_v34  ;;  %v871_v34 = vpack.c.bf16 %v791_v29, %v781_v28 }
  0xc1   : > { %1849 = vmatmul.bf16.gmra.mxu3 %v832_v35  ;;  %v872_v35 = vpack.c.bf16 %v792_v31, %v782_v30  ;;  %v4683_v31 = vld [vmem:[%s5334_s2 + $0x4e0] sm:$0xff] }
  0xce   : > { %1707 = vmatmul.bf16.gmra.mxu0 %v839_v48  ;;  %v803_v48 = vpack.c.bf16 %v653_v41, %v643_v40 }
  0xcf   : > { %1756 = vmatmul.bf16.gmra.mxu1 %v840_v49  ;;  %v804_v49 = vpack.c.bf16 %v654_v43, %v644_v42 }
  0xd0   : > { %1805 = vmatmul.bf16.gmra.mxu2 %v841_v50 }
  0xd1   : > { %1854 = vmatmul.bf16.gmra.mxu3 %v842_v51 }
  0xde   : > { %1712 = vmatmul.bf16.gmra.mxu0 %v849_v0 }
  0xdf   : > { %1761 = vmatmul.bf16.gmra.mxu1 %v850_v1  ;;  %v4684_v1 = vld [vmem:[%s5334_s2 + $0x4e8] sm:$0xff] }
  0xe0   : > { %1810 = vmatmul.bf16.gmra.mxu2 %v851_v2  ;;  %v663_v2 = vld [vmem:[#allocation5 + $0xc0] sm:$0xff]  ;;  %2122 = vmatpush.bf16.msra.mxu1 %v4684_v1  ;;  %v704_v1 = vld [vmem:[#allocation5 + $0x208] sm:$0xff] }
  0xe1   : > { %1859 = vmatmul.bf16.gmra.mxu3 %v852_v3  ;;  %v673_v3 = vld [vmem:[#allocation5 + $0x110] sm:$0xff] }
  0xe2   : > { %v813_v12 = vpack.c.bf16 %v673_v3, %v663_v2  ;;  %v714_v2 = vld [vmem:[#allocation5 + $0x258] sm:$0xff]  ;;  %v705_v3 = vld [vmem:[#allocation5 + $0x210] sm:$0xff] }
  0xe4   : > { %2123 = vmatpush.bf16.msra.mxu1 %v4683_v31  ;;  %v723_v31 = vld [vmem:[#allocation5 + $0x2a0] sm:$0xff] }
  0xee   : > { %1717 = vmatmul.bf16.gmra.mxu0 %v859_v16 }
  0xef   : > { %1766 = vmatmul.bf16.gmra.mxu1 %v860_v17  ;;  %v815_v17 = vpack.c.bf16 %v675_v7, %v665_v6  ;;  %v716_v6 = vld [vmem:[#allocation5 + $0x268] sm:$0xff] }
  0xf0   : > { %1815 = vmatmul.bf16.gmra.mxu2 %v861_v18  ;;  %v816_v18 = vpack.c.bf16 %v676_v9, %v666_v8 }
  0xf1   : > { %1864 = vmatmul.bf16.gmra.mxu3 %v862_v19 }
  0xfe   : > { %1722 = vmatmul.bf16.gmra.mxu0 %v869_v32  ;;  %v683_v32 = vld [vmem:[#allocation5 + $0x160] sm:$0xff] }
  0xff   : > { %1771 = vmatmul.bf16.gmra.mxu1 %v870_v33  ;;  %v693_v33 = vld [vmem:[#allocation5 + $0x1b0] sm:$0xff] }
 0x100   : > { %1820 = vmatmul.bf16.gmra.mxu2 %v871_v34  ;;  %v684_v34 = vld [vmem:[#allocation5 + $0x168] sm:$0xff]  ;;  %v823_v42 = vpack.c.bf16 %v693_v33, %v683_v32  ;;  %v733_v32 = vld [vmem:[#allocation5 + $0x2f0] sm:$0xff] }
 0x101   : > { %1869 = vmatmul.bf16.gmra.mxu3 %v872_v35  ;;  %v694_v35 = vld [vmem:[#allocation5 + $0x1b8] sm:$0xff]  ;;  %v724_v33 = vld [vmem:[#allocation5 + $0x2a8] sm:$0xff] }
 0x102   : > { %v824_v43 = vpack.c.bf16 %v694_v35, %v684_v34  ;;  %v734_v34 = vld [vmem:[#allocation5 + $0x2f8] sm:$0xff]  ;;  %v725_v35 = vld [vmem:[#allocation5 + $0x2b0] sm:$0xff] }
 0x10b   : > { %v1688_v50 = vpop.f32.mrf.mxu0 }
 0x10c   : > { %v1737_v51 = vpop.f32.mrf.mxu1 }
 0x10d   : > { %v1738_v54 = vadd.f32 %v1737_v51, %v1688_v50  ;;  %v4530_v51 = vld [vmem:[%s5334_s2 + $0x18] sm:$0xff] }
 0x10e   : > { %1883 = vmatmul.bf16.vlgmr.msrb.gmra.mxu0 %v803_v48  ;;  %v826_v48 = vpack.c.bf16 %v696_v39, %v686_v38  ;;  %2653 = vmatpush.bf16.msra.mxu2 %v4530_v51  ;;  %v736_v38 = vld [vmem:[#allocation5 + $0x308] sm:$0xff] }
 0x10f   : > { %1932 = vmatmul.bf16.vlgmr.msrb.gmra.mxu1 %v804_v49  ;;  %v4528_v51 = vld [vmem:[%s5334_s2 + $0x8] sm:$0xff] }
 0x110   : > { %1981 = vmatmul.bf16.vlgmr.msrb.gmra.mxu2 %v805_v52  ;;  %v4674_v52 = vld [vmem:[%s5334_s2 + $0x498] sm:$0xff] }
 0x111   : > { %2030 = vmatmul.bf16.vlgmr.msrb.gmra.mxu3 %v806_v53  ;;  %v4538_v53 = vld [vmem:[%s5334_s2 + $0x58] sm:$0xff]  ;;  %2075 = vmatpush.bf16.msra.mxu0 %v4674_v52  ;;  %v4672_v52 = vld [vmem:[%s5334_s2 + $0x488] sm:$0xff] }
 0x112   : > { %2702 = vmatpush.bf16.msra.mxu3 %v4538_v53  ;;  %v4536_v53 = vld [vmem:[%s5334_s2 + $0x48] sm:$0xff] }
 0x113   : > { %v1786_v58 = vpop.f32.mrf.mxu2  ;;  %v1690_v61 = vpop.f32.mrf.mxu0 }
 0x114   : > { %v1835_v59 = vpop.f32.mrf.mxu3  ;;  %v1787_v60 = vadd.f32 %v1786_v58, %v1738_v54  ;;  %v1739_v62 = vpop.f32.mrf.mxu1 }
 0x115   : > { %v1740_v63 = vadd.f32 %v1739_v62, %v1690_v61  ;;  %v4682_v61 = vld [vmem:[%s5334_s2 + $0x4d8] sm:$0xff]  ;;  %v703_v62 = vld [vmem:[#allocation5 + $0x200] sm:$0xff] }
 0x116   : > { %v5415_v0 = vadd.f32 %v1835_v59, %v1787_v60  ;;  %2124 = vmatpush.bf16.msra.mxu1 %v4682_v61  ;;  %2703 = vmatpush.bf16.msra.mxu3 %v4537_v21  ;;  %v4527_v21 = vld [vmem:[%s5334_s2] sm:$0xff] }
 0x11a   : > { %2704 = vmatpush.bf16.msra.mxu3 %v4536_v53 }
 0x11b   : > { %v1788_v10 = vpop.f32.mrf.mxu2  ;;  %v1693_v15 = vpop.f32.mrf.mxu0 }
 0x11c   : > { %v1837_v11 = vpop.f32.mrf.mxu3  ;;  %v1789_v14 = vadd.f32 %v1788_v10, %v1740_v63  ;;  %v1742_v16 = vpop.f32.mrf.mxu1  ;;  %v713_v63 = vld [vmem:[#allocation5 + $0x250] sm:$0xff]  ;;  %v834_v10 = vpack.c.bf16 %v714_v2, %v704_v1  ;;  %v744_v2 = vld [vmem:[#allocation5 + $0x348] sm:$0xff] }
 0x11d   : > { %v1743_v19 = vadd.f32 %v1742_v16, %v1693_v15  ;;  %v833_v9 = vpack.c.bf16 %v713_v63, %v703_v62  ;;  %v836_v15 = vpack.c.bf16 %v716_v6, %v706_v5  ;;  %v4680_v62 = vld [vmem:[%s5334_s2 + $0x4c8] sm:$0xff]  ;;  %v743_v63 = vld [vmem:[#allocation5 + $0x340] sm:$0xff]  ;;  %v753_v1 = vld [vmem:[#allocation5 + $0x390] sm:$0xff] }
 0x11e   : > { %v5418_v20 = vadd.f32 %v1837_v11, %v1789_v14  ;;  %1888 = vmatmul.bf16.gmra.mxu0 %v813_v12  ;;  %v835_v14 = vpack.c.bf16 %v715_v4, %v705_v3  ;;  %v754_v3 = vld [vmem:[#allocation5 + $0x398] sm:$0xff]  ;;  %v745_v4 = vld [vmem:[#allocation5 + $0x350] sm:$0xff]  ;;  %v755_v5 = vld [vmem:[#allocation5 + $0x3a0] sm:$0xff] }
 0x11f   : > { %1937 = vmatmul.bf16.gmra.mxu1 %v814_v13  ;;  %v746_v6 = vld [vmem:[#allocation5 + $0x358] sm:$0xff] }
 0x120   : > { %1986 = vmatmul.bf16.gmra.mxu2 %v815_v17 }
 0x121   : > { %2035 = vmatmul.bf16.gmra.mxu3 %v816_v18  ;;  %v4529_v18 = vld [vmem:[%s5334_s2 + $0x10] sm:$0xff] }
 0x122   : > { %2654 = vmatpush.bf16.msra.mxu2 %v4529_v18 }
 0x123   : > { %v1791_v24 = vpop.f32.mrf.mxu2  ;;  %v1695_v27 = vpop.f32.mrf.mxu0 }
 0x124   : > { %v1840_v25 = vpop.f32.mrf.mxu3  ;;  %v1792_v26 = vadd.f32 %v1791_v24, %v1743_v19  ;;  %v1744_v28 = vpop.f32.mrf.mxu1  ;;  %v4673_v19 = vld [vmem:[%s5334_s2 + $0x490] sm:$0xff] }
 0x125   : > { %v1745_v29 = vadd.f32 %v1744_v28, %v1695_v27  ;;  %2076 = vmatpush.bf16.msra.mxu0 %v4673_v19 }
 0x126   : > { %v5423_v30 = vadd.f32 %v1840_v25, %v1792_v26  ;;  %2655 = vmatpush.bf16.msra.mxu2 %v4528_v51 }
 0x129   : > { %2077 = vmatpush.bf16.msra.mxu0 %v4672_v52 }
 0x12a   : > { %2656 = vmatpush.bf16.msra.mxu2 %v4527_v21 }
 0x12b   : > { %v1793_v40 = vpop.f32.mrf.mxu2  ;;  %v1698_v45 = vpop.f32.mrf.mxu0 }
 0x12c   : > { %v1842_v41 = vpop.f32.mrf.mxu3  ;;  %v1794_v44 = vadd.f32 %v1793_v40, %v1745_v29  ;;  %v1747_v46 = vpop.f32.mrf.mxu1  ;;  %v4681_v29 = vld [vmem:[%s5334_s2 + $0x4d0] sm:$0xff] }
 0x12d   : > { %v1748_v49 = vadd.f32 %v1747_v46, %v1698_v45  ;;  %2125 = vmatpush.bf16.msra.mxu1 %v4681_v29  ;;  %v845_v46 = vpack.c.bf16 %v735_v36, %v725_v35  ;;  %v773_v35 = vld [vmem:[#allocation5 + $0x430] sm:$0xff]  ;;  %v764_v36 = vld [vmem:[#allocation5 + $0x3e8] sm:$0xff] }
 0x12e   : > { %v5426_v50 = vadd.f32 %v1842_v41, %v1794_v44  ;;  %1893 = vmatmul.bf16.gmra.mxu0 %v823_v42  ;;  %v843_v41 = vpack.c.bf16 %v733_v32, %v723_v31  ;;  %v844_v42 = vpack.c.bf16 %v734_v34, %v724_v33  ;;  %v4679_v33 = vld [vmem:[%s5334_s2 + $0x4c0] sm:$0xff] }
 0x12f   : > { %1942 = vmatmul.bf16.gmra.mxu1 %v824_v43  ;;  %v763_v34 = vld [vmem:[#allocation5 + $0x3e0] sm:$0xff] }
 0x130   : > { %1991 = vmatmul.bf16.gmra.mxu2 %v825_v47  ;;  %v846_v47 = vpack.c.bf16 %v736_v38, %v726_v37  ;;  %v774_v37 = vld [vmem:[#allocation5 + $0x438] sm:$0xff]  ;;  %v765_v38 = vld [vmem:[#allocation5 + $0x3f0] sm:$0xff] }
 0x131   : > { %2040 = vmatmul.bf16.gmra.mxu3 %v826_v48  ;;  %2126 = vmatpush.bf16.msra.mxu1 %v4680_v62 }
 0x133   : > { %v1796_v54 = vpop.f32.mrf.mxu2  ;;  %v1700_v57 = vpop.f32.mrf.mxu0 }
 0x134   : > { %v1845_v55 = vpop.f32.mrf.mxu3  ;;  %v1797_v56 = vadd.f32 %v1796_v54, %v1748_v49  ;;  %v1749_v58 = vpop.f32.mrf.mxu1 }
 0x135   : > { %v1750_v59 = vadd.f32 %v1749_v58, %v1700_v57  ;;  %2127 = vmatpush.bf16.msra.mxu1 %v4679_v33 }
 0x136   : > { %v5431_v60 = vadd.f32 %v1845_v55, %v1797_v56 }
 0x13b   : > { %v1798_v7 = vpop.f32.mrf.mxu2  ;;  %v1703_v12 = vpop.f32.mrf.mxu0 }
 0x13c   : > { %v1847_v8 = vpop.f32.mrf.mxu3  ;;  %v1799_v11 = vadd.f32 %v1798_v7, %v1750_v59  ;;  %v1752_v13 = vpop.f32.mrf.mxu1  ;;  %v756_v7 = vld [vmem:[#allocation5 + $0x3a8] sm:$0xff] }
 0x13d   : > { %v1753_v16 = vadd.f32 %v1752_v13, %v1703_v12 }
 0x13e   : > { %v5434_v17 = vadd.f32 %v1847_v8, %v1799_v11  ;;  %1898 = vmatmul.bf16.gmra.mxu0 %v833_v9  ;;  %v854_v11 = vpack.c.bf16 %v754_v3, %v744_v2 }
 0x13f   : > { %1947 = vmatmul.bf16.gmra.mxu1 %v834_v10  ;;  %v853_v10 = vpack.c.bf16 %v753_v1, %v743_v63 }
 0x140   : > { %1996 = vmatmul.bf16.gmra.mxu2 %v835_v14 }
 0x141   : > { %2045 = vmatmul.bf16.gmra.mxu3 %v836_v15  ;;  %v855_v15 = vpack.c.bf16 %v755_v5, %v745_v4  ;;  %v4558_v4 = vld [vmem:[%s5334_s2 + $0xf8] sm:$0xff]  ;;  %v783_v5 = vld [vmem:[#allocation5 + $0x480] sm:$0xff] }
 0x142   : > { %2796 = vmatpush.bf16.msrb.mxu1 %v4558_v4  ;;  %v4564_v4 = vld [vmem:[%s5334_s2 + $0x128] sm:$0xff] }
 0x143   : > { %v1801_v22 = vpop.f32.mrf.mxu2  ;;  %v1705_v25 = vpop.f32.mrf.mxu0 }
 0x144   : > { %v1850_v23 = vpop.f32.mrf.mxu3  ;;  %v1802_v24 = vadd.f32 %v1801_v22, %v1753_v16  ;;  %v1754_v26 = vpop.f32.mrf.mxu1  ;;  %v856_v16 = vpack.c.bf16 %v756_v7, %v746_v6  ;;  %v4671_v22 = vld [vmem:[%s5334_s2 + $0x480] sm:$0xff]  ;;  %v793_v6 = vld [vmem:[#allocation5 + $0x4d0] sm:$0xff]  ;;  %v784_v7 = vld [vmem:[#allocation5 + $0x488] sm:$0xff] }
 0x145   : > { %v1755_v27 = vadd.f32 %v1754_v26, %v1705_v25  ;;  %2078 = vmatpush.bf16.msra.mxu0 %v4671_v22 }
 0x146   : > { %v5439_v28 = vadd.f32 %v1850_v23, %v1802_v24  ;;  %v4535_v23 = vld [vmem:[%s5334_s2 + $0x40] sm:$0xff] }
 0x147   : > { %2705 = vmatpush.bf16.msra.mxu3 %v4535_v23 }
 0x14b   : > { %v1803_v39 = vpop.f32.mrf.mxu2  ;;  %v1708_v44 = vpop.f32.mrf.mxu0 }
 0x14c   : > { %v1852_v40 = vpop.f32.mrf.mxu3  ;;  %v1804_v43 = vadd.f32 %v1803_v39, %v1755_v27  ;;  %v1757_v45 = vpop.f32.mrf.mxu1  ;;  %v775_v39 = vld [vmem:[#allocation5 + $0x440] sm:$0xff] }
 0x14d   : > { %v1758_v48 = vadd.f32 %v1757_v45, %v1708_v44  ;;  %v863_v44 = vpack.c.bf16 %v773_v35, %v763_v34  ;;  %v864_v45 = vpack.c.bf16 %v774_v37, %v764_v36  ;;  %v865_v51 = vpack.c.bf16 %v775_v39, %v765_v38 }
 0x14e   : > { %v5442_v49 = vadd.f32 %v1852_v40, %v1804_v43  ;;  %1903 = vmatmul.bf16.gmra.mxu0 %v843_v41  ;;  %v766_v40 = vld [vmem:[#allocation5 + $0x3f8] sm:$0xff]  ;;  %v776_v41 = vld [vmem:[#allocation5 + $0x448] sm:$0xff] }
 0x14f   : > { %1952 = vmatmul.bf16.gmra.mxu1 %v844_v42  ;;  %v866_v52 = vpack.c.bf16 %v776_v41, %v766_v40  ;;  %v4557_v40 = vld [vmem:[%s5334_s2 + $0xf0] sm:$0xff]  ;;  %v647_v41 = vld [vmem:[#allocation5 + $0x40] sm:$0xff] }
 0x150   : > { %2001 = vmatmul.bf16.gmra.mxu2 %v845_v46  ;;  %2797 = vmatpush.bf16.msrb.mxu1 %v4557_v40 }
 0x151   : > { %2050 = vmatmul.bf16.gmra.mxu3 %v846_v47 }
 0x153   : > { %v1806_v54 = vpop.f32.mrf.mxu2  ;;  %v1710_v57 = vpop.f32.mrf.mxu0 }
 0x154   : > { %v1855_v55 = vpop.f32.mrf.mxu3  ;;  %v1807_v56 = vadd.f32 %v1806_v54, %v1758_v48  ;;  %v1759_v58 = vpop.f32.mrf.mxu1 }
 0x155   : > { %v1760_v59 = vadd.f32 %v1759_v58, %v1710_v57  ;;  %v4574_v57 = vld [vmem:[%s5334_s2 + $0x178] sm:$0xff] }
 0x156   : > { %v5447_v61 = vadd.f32 %v1855_v55, %v1807_v56  ;;  %v4566_v55 = vld [vmem:[%s5334_s2 + $0x138] sm:$0xff]  ;;  %2894 = vmatpush.bf16.msrb.mxu3 %v4574_v57 }
 0x157   : > { %v4550_v56 = vld [vmem:[%s5334_s2 + $0xb8] sm:$0xff]  ;;  %2845 = vmatpush.bf16.msrb.mxu2 %v4566_v55 }
 0x158   : > { %2747 = vmatpush.bf16.msrb.mxu0 %v4550_v56 }
 0x15b   : > { %v1808_v8 = vpop.f32.mrf.mxu2  ;;  %v1713_v13 = vpop.f32.mrf.mxu0 }
 0x15c   : > { %v1857_v9 = vpop.f32.mrf.mxu3  ;;  %v1809_v12 = vadd.f32 %v1808_v8, %v1760_v59  ;;  %v1762_v14 = vpop.f32.mrf.mxu1  ;;  %v794_v8 = vld [vmem:[#allocation5 + $0x4d8] sm:$0xff] }
 0x15d   : > { %v1763_v18 = vadd.f32 %v1762_v14, %v1713_v13 }
 0x15e   : > { %v5450_v19 = vadd.f32 %v1857_v9, %v1809_v12  ;;  %1908 = vmatmul.bf16.gmra.mxu0 %v853_v10  ;;  %v785_v9 = vld [vmem:[#allocation5 + $0x490] sm:$0xff]  ;;  %v795_v10 = vld [vmem:[#allocation5 + $0x4e0] sm:$0xff]  ;;  %v796_v12 = vld [vmem:[#allocation5 + $0x4e8] sm:$0xff] }
 0x15f   : > { %1957 = vmatmul.bf16.gmra.mxu1 %v854_v11  ;;  %v786_v11 = vld [vmem:[#allocation5 + $0x498] sm:$0xff]  ;;  %v875_v23 = vpack.c.bf16 %v795_v10, %v785_v9 }
 0x160   : > { %2006 = vmatmul.bf16.gmra.mxu2 %v855_v15  ;;  %v873_v15 = vpack.c.bf16 %v793_v6, %v783_v5  ;;  %v4548_v5 = vld [vmem:[%s5334_s2 + $0xa8] sm:$0xff] }
 0x161   : > { %2055 = vmatmul.bf16.gmra.mxu3 %v856_v16  ;;  %v874_v16 = vpack.c.bf16 %v794_v8, %v784_v7  ;;  %v4572_v6 = vld [vmem:[%s5334_s2 + $0x168] sm:$0xff] }
 0x163   : > { %v1811_v24 = vpop.f32.mrf.mxu2  ;;  %v1715_v27 = vpop.f32.mrf.mxu0 }
 0x164   : > { %v1860_v25 = vpop.f32.mrf.mxu3  ;;  %v1812_v26 = vadd.f32 %v1811_v24, %v1763_v18  ;;  %v1764_v29 = vpop.f32.mrf.mxu1  ;;  %v876_v24 = vpack.c.bf16 %v796_v12, %v786_v11 }
 0x165   : > { %v1765_v31 = vadd.f32 %v1764_v29, %v1715_v27  ;;  %v4565_v27 = vld [vmem:[%s5334_s2 + $0x130] sm:$0xff] }
 0x166   : > { %v5455_v32 = vadd.f32 %v1860_v25, %v1812_v26  ;;  %v4549_v29 = vld [vmem:[%s5334_s2 + $0xb0] sm:$0xff]  ;;  %2846 = vmatpush.bf16.msrb.mxu2 %v4565_v27 }
 0x167   : > { %2748 = vmatpush.bf16.msrb.mxu0 %v4549_v29 }
 0x16a   : > { %2847 = vmatpush.bf16.msrb.mxu2 %v4564_v4  ;;  %v450_v4 = vld [vmem:[#allocation2 + $0x198] sm:$0xff] }
 0x16b   : > { %v1813_v42 = vpop.f32.mrf.mxu2  ;;  %v1718_v47 = vpop.f32.mrf.mxu0  ;;  %2749 = vmatpush.bf16.msrb.mxu0 %v4548_v5 }
 0x16c   : > { %v1862_v43 = vpop.f32.mrf.mxu3  ;;  %v1814_v46 = vadd.f32 %v1813_v42, %v1765_v31  ;;  %v1767_v48 = vpop.f32.mrf.mxu1  ;;  %v4573_v31 = vld [vmem:[%s5334_s2 + $0x170] sm:$0xff] }
 0x16d   : > { %v1768_v53 = vadd.f32 %v1767_v48, %v1718_v47  ;;  %2895 = vmatpush.bf16.msrb.mxu3 %v4573_v31  ;;  %v657_v42 = vld [vmem:[#allocation5 + $0x90] sm:$0xff]  ;;  %v400_v47 = vld [vmem:[#allocation2 + $0x8] sm:$0xff]  ;;  %v410_v48 = vld [vmem:[#allocation2 + $0x58] sm:$0xff] }
 0x16e   : > { %v5458_v54 = vadd.f32 %v1862_v43, %v1814_v46  ;;  %1913 = vmatmul.bf16.gmra.mxu0 %v863_v44  ;;  %v648_v43 = vld [vmem:[#allocation5 + $0x48] sm:$0xff]  ;;  %v658_v44 = vld [vmem:[#allocation5 + $0x98] sm:$0xff]  ;;  %v409_v46 = vld [vmem:[#allocation2 + $0x50] sm:$0xff] }
 0x16f   : > { %1962 = vmatmul.bf16.gmra.mxu1 %v864_v45  ;;  %v399_v45 = vld [vmem:[#allocation2] sm:$0xff]  ;;  %v808_v55 = vpack.c.bf16 %v658_v44, %v648_v43 }
 0x170   : > { %2011 = vmatmul.bf16.gmra.mxu2 %v865_v51  ;;  %v4547_v43 = vld [vmem:[%s5334_s2 + $0xa0] sm:$0xff] }
 0x171   : > { %2060 = vmatmul.bf16.gmra.mxu3 %v866_v52  ;;  %v4571_v44 = vld [vmem:[%s5334_s2 + $0x160] sm:$0xff]  ;;  %2750 = vmatpush.bf16.msrb.mxu0 %v4547_v43 }
 0x172   : > { %2896 = vmatpush.bf16.msrb.mxu3 %v4572_v6 }
 0x173   : > { %v1816_v58 = vpop.f32.mrf.mxu2  ;;  %v1720_v63 = vpop.f32.mrf.mxu0 }
 0x174   : > { %v1865_v59 = vpop.f32.mrf.mxu3  ;;  %v1817_v62 = vadd.f32 %v1816_v58, %v1768_v53  ;;  %v1769_v1 = vpop.f32.mrf.mxu1  ;;  %v807_v53 = vpack.c.bf16 %v657_v42, %v647_v41  ;;  %v4563_v42 = vld [vmem:[%s5334_s2 + $0x120] sm:$0xff] }
 0x175   : > { %v1770_v2 = vadd.f32 %v1769_v1, %v1720_v63  ;;  %2848 = vmatpush.bf16.msrb.mxu2 %v4563_v42  ;;  %v470_v42 = vld [vmem:[#allocation2 + $0x238] sm:$0xff] }
 0x176   : > { %v5463_v3 = vadd.f32 %v1865_v59, %v1817_v62  ;;  %v559_v59 = vpack.c.bf16 %v409_v46, %v399_v45  ;;  %v560_v62 = vpack.c.bf16 %v410_v48, %v400_v47  ;;  %2897 = vmatpush.bf16.msrb.mxu3 %v4571_v44 }
 0x17b   : > { %v1818_v13 = vpop.f32.mrf.mxu2  ;;  %v1723_v21 = vpop.f32.mrf.mxu0 }
 0x17c   : > { %v1867_v14 = vpop.f32.mrf.mxu3  ;;  %v1819_v18 = vadd.f32 %v1818_v13, %v1770_v2  ;;  %v1772_v22 = vpop.f32.mrf.mxu1  ;;  %v4556_v13 = vld [vmem:[%s5334_s2 + $0xe8] sm:$0xff] }
 0x17d   : > { %v1773_v25 = vadd.f32 %v1772_v22, %v1723_v21  ;;  %v678_v21 = vld [vmem:[#allocation5 + $0x138] sm:$0xff]  ;;  %v419_v22 = vld [vmem:[#allocation2 + $0xa0] sm:$0xff]  ;;  %2798 = vmatpush.bf16.msrb.mxu1 %v4556_v13 }
 0x17e   : > { %v5466_v26 = vadd.f32 %v1867_v14, %v1819_v18  ;;  %1918 = vmatmul.bf16.gmra.mxu0 %v873_v15  ;;  %v667_v15 = vld [vmem:[#allocation5 + $0xe0] sm:$0xff]  ;;  %v668_v18 = vld [vmem:[#allocation5 + $0xe8] sm:$0xff] }
 0x17f   : > { %1967 = vmatmul.bf16.gmra.mxu1 %v874_v16  ;;  %v677_v16 = vld [vmem:[#allocation5 + $0x130] sm:$0xff] }
 0x180   : > { %2016 = vmatmul.bf16.gmra.mxu2 %v875_v23  ;;  %v429_v23 = vld [vmem:[#allocation2 + $0xf0] sm:$0xff]  ;;  %v817_v31 = vpack.c.bf16 %v677_v16, %v667_v15  ;;  %v4562_v16 = vld [vmem:[%s5334_s2 + $0x118] sm:$0xff] }
 0x181   : > { %2065 = vmatmul.bf16.gmra.mxu3 %v876_v24  ;;  %v420_v24 = vld [vmem:[#allocation2 + $0xa8] sm:$0xff]  ;;  %2849 = vmatpush.bf16.msrb.mxu2 %v4562_v16  ;;  %v490_v16 = vld [vmem:[#allocation2 + $0x2d8] sm:$0xff] }
 0x183   : > { %v1821_v33 = vpop.f32.mrf.mxu2  ;;  %v1725_v36 = vpop.f32.mrf.mxu0 }
 0x184   : > { %v1870_v34 = vpop.f32.mrf.mxu3  ;;  %v1822_v35 = vadd.f32 %v1821_v33, %v1773_v25  ;;  %v1774_v37 = vpop.f32.mrf.mxu1  ;;  %v430_v25 = vld [vmem:[#allocation2 + $0xf8] sm:$0xff] }
 0x185   : > { %v1775_v38 = vadd.f32 %v1774_v37, %v1725_v36  ;;  %v569_v36 = vpack.c.bf16 %v429_v23, %v419_v22  ;;  %v570_v37 = vpack.c.bf16 %v430_v25, %v420_v24 }
 0x186   : > { %v5471_v39 = vadd.f32 %v1870_v34, %v1822_v35 }
 0x18b   : > { %v1823_v51 = vpop.f32.mrf.mxu2  ;;  %v1884_v57 = vpop.f32.mrf.mxu0 }
 0x18c   : > { %v1872_v52 = vpop.f32.mrf.mxu3  ;;  %v1824_v56 = vadd.f32 %v1823_v51, %v1775_v38  ;;  %v1933_v58 = vpop.f32.mrf.mxu1  ;;  %v1885_v63 = vadd.f32 %v1884_v57, %v5415_v0  ;;  %v697_v57 = vld [vmem:[#allocation5 + $0x1d0] sm:$0xff] }
 0x18e   : > { %v5475_v1 = vadd.f32 %v1872_v52, %v1824_v56  ;;  %v1934_v2 = vadd.f32 %v1933_v58, %v1885_v63  ;;  %2079 = vmatmul.bf16.vlgmr.msra.gmra.mxu0 %v807_v53  ;;  %v4555_v53 = vld [vmem:[%s5334_s2 + $0xe0] sm:$0xff]  ;;  %v688_v58 = vld [vmem:[#allocation5 + $0x188] sm:$0xff]  ;;  %v449_v63 = vld [vmem:[#allocation2 + $0x190] sm:$0xff] }
 0x18f   : > { %2128 = vmatmul.bf16.vlgmr.msra.gmra.mxu1 %v808_v55  ;;  %v687_v56 = vld [vmem:[#allocation5 + $0x180] sm:$0xff] }
 0x190   : > { %2657 = vmatmul.bf16.vlgmr.msra.gmra.mxu2 %v559_v59  ;;  %v698_v59 = vld [vmem:[#allocation5 + $0x1d8] sm:$0xff]  ;;  %2799 = vmatpush.bf16.msrb.mxu1 %v4555_v53 }
 0x191   : > { %2706 = vmatmul.bf16.vlgmr.msra.gmra.mxu3 %v560_v62  ;;  %v439_v62 = vld [vmem:[#allocation2 + $0x140] sm:$0xff] }
 0x193   : > { %v1982_v7 = vpop.f32.mrf.mxu2  ;;  %v1886_v10 = vpop.f32.mrf.mxu0 }
 0x194   : > { %v2031_v8 = vpop.f32.mrf.mxu3  ;;  %v1983_v9 = vadd.f32 %v1982_v7, %v1934_v2  ;;  %v1935_v11 = vpop.f32.mrf.mxu1  ;;  %v1887_v0 = vadd.f32 %v1886_v10, %v5418_v20  ;;  %v818_v20 = vpack.c.bf16 %v678_v21, %v668_v18  ;;  %v440_v2 = vld [vmem:[#allocation2 + $0x148] sm:$0xff]  ;;  %v827_v7 = vpack.c.bf16 %v697_v57, %v687_v56  ;;  %v4546_v18 = vld [vmem:[%s5334_s2 + $0x98] sm:$0xff]  ;;  %v4561_v57 = vld [vmem:[%s5334_s2 + $0x110] sm:$0xff] }
 0x195   : > { %v4570_v21 = vld [vmem:[%s5334_s2 + $0x158] sm:$0xff]  ;;  %2751 = vmatpush.bf16.msrb.mxu0 %v4546_v18  ;;  %2850 = vmatpush.bf16.msrb.mxu2 %v4561_v57 }
 0x196   : > { %v5481_v12 = vadd.f32 %v2031_v8, %v1983_v9  ;;  %v1936_v14 = vadd.f32 %v1935_v11, %v1887_v0  ;;  %v579_v11 = vpack.c.bf16 %v449_v63, %v439_v62  ;;  %v580_v0 = vpack.c.bf16 %v450_v4, %v440_v2  ;;  %2898 = vmatpush.bf16.msrb.mxu3 %v4570_v21  ;;  %v510_v57 = vld [vmem:[#allocation2 + $0x378] sm:$0xff] }
 0x19b   : > { %v1984_v27 = vpop.f32.mrf.mxu2  ;;  %v1889_v34 = vpop.f32.mrf.mxu0 }
 0x19c   : > { %v2033_v29 = vpop.f32.mrf.mxu3  ;;  %v1985_v33 = vadd.f32 %v1984_v27, %v1936_v14  ;;  %v1938_v35 = vpop.f32.mrf.mxu1  ;;  %v1890_v38 = vadd.f32 %v1889_v34, %v5423_v30  ;;  %v717_v34 = vld [vmem:[#allocation5 + $0x270] sm:$0xff] }
 0x19e   : > { %v5485_v40 = vadd.f32 %v2033_v29, %v1985_v33  ;;  %v1939_v41 = vadd.f32 %v1938_v35, %v1890_v38  ;;  %2084 = vmatmul.bf16.gmra.mxu0 %v817_v31  ;;  %v4554_v31 = vld [vmem:[%s5334_s2 + $0xd8] sm:$0xff]  ;;  %v707_v33 = vld [vmem:[#allocation5 + $0x220] sm:$0xff]  ;;  %v708_v35 = vld [vmem:[#allocation5 + $0x228] sm:$0xff] }
 0x19f   : > { %2133 = vmatmul.bf16.gmra.mxu1 %v818_v20  ;;  %v469_v38 = vld [vmem:[#allocation2 + $0x230] sm:$0xff] }
 0x1a0   : > { %2662 = vmatmul.bf16.gmra.mxu2 %v569_v36  ;;  %v718_v36 = vld [vmem:[#allocation5 + $0x278] sm:$0xff]  ;;  %2800 = vmatpush.bf16.msrb.mxu1 %v4554_v31 }
 0x1a1   : > { %2711 = vmatmul.bf16.gmra.mxu3 %v570_v37  ;;  %v459_v37 = vld [vmem:[#allocation2 + $0x1e0] sm:$0xff] }
 0x1a3   : > { %v1987_v45 = vpop.f32.mrf.mxu2  ;;  %v1891_v48 = vpop.f32.mrf.mxu0 }
 0x1a4   : > { %v2036_v46 = vpop.f32.mrf.mxu3  ;;  %v1988_v47 = vadd.f32 %v1987_v45, %v1939_v41  ;;  %v1940_v51 = vpop.f32.mrf.mxu1  ;;  %v1892_v30 = vadd.f32 %v1891_v48, %v5426_v50  ;;  %v828_v50 = vpack.c.bf16 %v698_v59, %v688_v58  ;;  %v460_v41 = vld [vmem:[#allocation2 + $0x1e8] sm:$0xff]  ;;  %v837_v45 = vpack.c.bf16 %v717_v34, %v707_v33  ;;  %v4545_v58 = vld [vmem:[%s5334_s2 + $0x90] sm:$0xff] }
 0x1a5   : > { %v4569_v59 = vld [vmem:[%s5334_s2 + $0x150] sm:$0xff]  ;;  %2752 = vmatpush.bf16.msrb.mxu0 %v4545_v58  ;;  %v4560_v34 = vld [vmem:[%s5334_s2 + $0x108] sm:$0xff] }
 0x1a6   : > { %v5491_v52 = vadd.f32 %v2036_v46, %v1988_v47  ;;  %v1941_v55 = vadd.f32 %v1940_v51, %v1892_v30  ;;  %v589_v51 = vpack.c.bf16 %v469_v38, %v459_v37  ;;  %v590_v30 = vpack.c.bf16 %v470_v42, %v460_v41  ;;  %2899 = vmatpush.bf16.msrb.mxu3 %v4569_v59 }
 0x1a7   : > { %2851 = vmatpush.bf16.msrb.mxu2 %v4560_v34  ;;  %v530_v34 = vld [vmem:[#allocation2 + $0x418] sm:$0xff] }
 0x1ab   : > { %v1989_v5 = vpop.f32.mrf.mxu2  ;;  %v1894_v9 = vpop.f32.mrf.mxu0 }
 0x1ac   : > { %v2038_v6 = vpop.f32.mrf.mxu3  ;;  %v1990_v8 = vadd.f32 %v1989_v5, %v1941_v55  ;;  %v1943_v10 = vpop.f32.mrf.mxu1  ;;  %v1895_v13 = vadd.f32 %v1894_v9, %v5431_v60  ;;  %v737_v9 = vld [vmem:[#allocation5 + $0x310] sm:$0xff] }
 0x1ae   : > { %v5495_v14 = vadd.f32 %v2038_v6, %v1990_v8  ;;  %v1944_v15 = vadd.f32 %v1943_v10, %v1895_v13  ;;  %2089 = vmatmul.bf16.gmra.mxu0 %v827_v7  ;;  %v4553_v7 = vld [vmem:[%s5334_s2 + $0xd0] sm:$0xff]  ;;  %v727_v8 = vld [vmem:[#allocation5 + $0x2c0] sm:$0xff]  ;;  %v728_v10 = vld [vmem:[#allocation5 + $0x2c8] sm:$0xff] }
 0x1af   : > { %2138 = vmatmul.bf16.gmra.mxu1 %v828_v50  ;;  %v489_v13 = vld [vmem:[#allocation2 + $0x2d0] sm:$0xff] }
 0x1b0   : > { %2667 = vmatmul.bf16.gmra.mxu2 %v579_v11  ;;  %v738_v11 = vld [vmem:[#allocation5 + $0x318] sm:$0xff]  ;;  %2801 = vmatpush.bf16.msrb.mxu1 %v4553_v7 }
 0x1b1   : > { %2716 = vmatmul.bf16.gmra.mxu3 %v580_v0  ;;  %v479_v0 = vld [vmem:[#allocation2 + $0x280] sm:$0xff] }
 0x1b3   : > { %v1992_v22 = vpop.f32.mrf.mxu2  ;;  %v1896_v25 = vpop.f32.mrf.mxu0 }
 0x1b4   : > { %v2041_v23 = vpop.f32.mrf.mxu3  ;;  %v1993_v24 = vadd.f32 %v1992_v22, %v1944_v15  ;;  %v1945_v27 = vpop.f32.mrf.mxu1  ;;  %v1897_v60 = vadd.f32 %v1896_v25, %v5434_v17  ;;  %v838_v17 = vpack.c.bf16 %v718_v36, %v708_v35  ;;  %v480_v15 = vld [vmem:[#allocation2 + $0x288] sm:$0xff]  ;;  %v847_v22 = vpack.c.bf16 %v737_v9, %v727_v8  ;;  %v4559_v9 = vld [vmem:[%s5334_s2 + $0x100] sm:$0xff] }
 0x1b5   : > { %v4544_v35 = vld [vmem:[%s5334_s2 + $0x88] sm:$0xff]  ;;  %2852 = vmatpush.bf16.msrb.mxu2 %v4559_v9  ;;  %v550_v9 = vld [vmem:[#allocation2 + $0x4b8] sm:$0xff] }
 0x1b6   : > { %v5501_v29 = vadd.f32 %v2041_v23, %v1993_v24  ;;  %v1946_v20 = vadd.f32 %v1945_v27, %v1897_v60  ;;  %v599_v27 = vpack.c.bf16 %v489_v13, %v479_v0  ;;  %v600_v60 = vpack.c.bf16 %v490_v16, %v480_v15  ;;  %v4568_v36 = vld [vmem:[%s5334_s2 + $0x148] sm:$0xff]  ;;  %2753 = vmatpush.bf16.msrb.mxu0 %v4544_v35 }
 0x1b7   : > { %2900 = vmatpush.bf16.msrb.mxu3 %v4568_v36 }
 0x1bb   : > { %v1994_v43 = vpop.f32.mrf.mxu2  ;;  %v1899_v47 = vpop.f32.mrf.mxu0 }
 0x1bc   : > { %v2043_v44 = vpop.f32.mrf.mxu3  ;;  %v1995_v46 = vadd.f32 %v1994_v43, %v1946_v20  ;;  %v1948_v48 = vpop.f32.mrf.mxu1  ;;  %v1900_v53 = vadd.f32 %v1899_v47, %v5439_v28  ;;  %v757_v47 = vld [vmem:[#allocation5 + $0x3b0] sm:$0xff] }
 0x1be   : > { %v5505_v55 = vadd.f32 %v2043_v44, %v1995_v46  ;;  %v1949_v56 = vadd.f32 %v1948_v48, %v1900_v53  ;;  %2094 = vmatmul.bf16.gmra.mxu0 %v837_v45  ;;  %v4552_v45 = vld [vmem:[%s5334_s2 + $0xc8] sm:$0xff]  ;;  %v747_v46 = vld [vmem:[#allocation5 + $0x360] sm:$0xff]  ;;  %v509_v53 = vld [vmem:[#allocation2 + $0x370] sm:$0xff] }
 0x1bf   : > { %2143 = vmatmul.bf16.gmra.mxu1 %v838_v17  ;;  %v748_v48 = vld [vmem:[#allocation5 + $0x368] sm:$0xff] }
 0x1c0   : > { %2672 = vmatmul.bf16.gmra.mxu2 %v589_v51  ;;  %v758_v51 = vld [vmem:[#allocation5 + $0x3b8] sm:$0xff]  ;;  %2802 = vmatpush.bf16.msrb.mxu1 %v4552_v45 }
 0x1c1   : > { %2721 = vmatmul.bf16.gmra.mxu3 %v590_v30  ;;  %v499_v30 = vld [vmem:[#allocation2 + $0x320] sm:$0xff] }
 0x1c3   : > { %v1997_v62 = vpop.f32.mrf.mxu2  ;;  %v1901_v4 = vpop.f32.mrf.mxu0 }
 0x1c4   : > { %v2046_v63 = vpop.f32.mrf.mxu3  ;;  %v1998_v2 = vadd.f32 %v1997_v62, %v1949_v56  ;;  %v1950_v5 = vpop.f32.mrf.mxu1  ;;  %v1902_v28 = vadd.f32 %v1901_v4, %v5442_v49  ;;  %v848_v49 = vpack.c.bf16 %v738_v11, %v728_v10  ;;  %v500_v56 = vld [vmem:[#allocation2 + $0x328] sm:$0xff]  ;;  %v857_v62 = vpack.c.bf16 %v757_v47, %v747_v46  ;;  %v4543_v10 = vld [vmem:[%s5334_s2 + $0x80] sm:$0xff]  ;;  %v4598_v47 = vld [vmem:[%s5334_s2 + $0x238] sm:$0xff] }
 0x1c5   : > { %v4567_v11 = vld [vmem:[%s5334_s2 + $0x140] sm:$0xff]  ;;  %2754 = vmatpush.bf16.msrb.mxu0 %v4543_v10  ;;  %3041 = vmatpush.bf16.msra.mxu2 %v4598_v47  ;;  %v414_v47 = vld [vmem:[#allocation2 + $0x78] sm:$0xff] }
 0x1c6   : > { %v5511_v6 = vadd.f32 %v2046_v63, %v1998_v2  ;;  %v1951_v50 = vadd.f32 %v1950_v5, %v1902_v28  ;;  %v609_v5 = vpack.c.bf16 %v509_v53, %v499_v30  ;;  %v610_v28 = vpack.c.bf16 %v510_v57, %v500_v56  ;;  %2901 = vmatpush.bf16.msrb.mxu3 %v4567_v11 }
 0x1cb   : > { %v1999_v18 = vpop.f32.mrf.mxu2  ;;  %v1904_v24 = vpop.f32.mrf.mxu0 }
 0x1cc   : > { %v2048_v21 = vpop.f32.mrf.mxu3  ;;  %v2000_v23 = vadd.f32 %v1999_v18, %v1951_v50  ;;  %v1953_v25 = vpop.f32.mrf.mxu1  ;;  %v1905_v31 = vadd.f32 %v1904_v24, %v5447_v61  ;;  %v777_v24 = vld [vmem:[#allocation5 + $0x450] sm:$0xff] }
 0x1ce   : > { %v5515_v20 = vadd.f32 %v2048_v21, %v2000_v23  ;;  %v1954_v33 = vadd.f32 %v1953_v25, %v1905_v31  ;;  %2099 = vmatmul.bf16.gmra.mxu0 %v847_v22  ;;  %v4551_v22 = vld [vmem:[%s5334_s2 + $0xc0] sm:$0xff]  ;;  %v768_v25 = vld [vmem:[#allocation5 + $0x408] sm:$0xff]  ;;  %v529_v31 = vld [vmem:[#allocation2 + $0x410] sm:$0xff] }
 0x1cf   : > { %2148 = vmatmul.bf16.gmra.mxu1 %v848_v49  ;;  %v767_v23 = vld [vmem:[#allocation5 + $0x400] sm:$0xff] }
 0x1d0   : > { %2677 = vmatmul.bf16.gmra.mxu2 %v599_v27  ;;  %v778_v27 = vld [vmem:[#allocation5 + $0x458] sm:$0xff]  ;;  %2803 = vmatpush.bf16.msrb.mxu1 %v4551_v22 }
 0x1d1   : > { %2726 = vmatmul.bf16.gmra.mxu3 %v600_v60  ;;  %v519_v60 = vld [vmem:[#allocation2 + $0x3c0] sm:$0xff] }
 0x1d3   : > { %v2002_v37 = vpop.f32.mrf.mxu2  ;;  %v1906_v42 = vpop.f32.mrf.mxu0 }
 0x1d4   : > { %v2051_v38 = vpop.f32.mrf.mxu3  ;;  %v2003_v41 = vadd.f32 %v2002_v37, %v1954_v33  ;;  %v1955_v43 = vpop.f32.mrf.mxu1  ;;  %v1907_v61 = vadd.f32 %v1906_v42, %v5450_v19  ;;  %v858_v19 = vpack.c.bf16 %v758_v51, %v748_v48  ;;  %v520_v33 = vld [vmem:[#allocation2 + $0x3c8] sm:$0xff]  ;;  %v867_v37 = vpack.c.bf16 %v777_v24, %v767_v23  ;;  %v4582_v48 = vld [vmem:[%s5334_s2 + $0x1b8] sm:$0xff]  ;;  %v4597_v24 = vld [vmem:[%s5334_s2 + $0x230] sm:$0xff] }
 0x1d5   : > { %v4606_v51 = vld [vmem:[%s5334_s2 + $0x278] sm:$0xff]  ;;  %2943 = vmatpush.bf16.msra.mxu0 %v4582_v48  ;;  %3042 = vmatpush.bf16.msra.mxu2 %v4597_v24 }
 0x1d6   : > { %v5521_v44 = vadd.f32 %v2051_v38, %v2003_v41  ;;  %v1956_v17 = vadd.f32 %v1955_v43, %v1907_v61  ;;  %v619_v43 = vpack.c.bf16 %v529_v31, %v519_v60  ;;  %v620_v61 = vpack.c.bf16 %v530_v34, %v520_v33  ;;  %3090 = vmatpush.bf16.msra.mxu3 %v4606_v51  ;;  %v434_v24 = vld [vmem:[#allocation2 + $0x118] sm:$0xff] }
 0x1db   : > { %v2004_v58 = vpop.f32.mrf.mxu2  ;;  %v1909_v2 = vpop.f32.mrf.mxu0 }
 0x1dc   : > { %v2053_v59 = vpop.f32.mrf.mxu3  ;;  %v2005_v63 = vadd.f32 %v2004_v58, %v1956_v17  ;;  %v1958_v4 = vpop.f32.mrf.mxu1  ;;  %v1910_v7 = vadd.f32 %v1909_v2, %v5455_v32  ;;  %v797_v2 = vld [vmem:[#allocation5 + $0x4f0] sm:$0xff] }
 0x1de   : > { %v5525_v50 = vadd.f32 %v2053_v59, %v2005_v63  ;;  %v1959_v8 = vadd.f32 %v1958_v4, %v1910_v7  ;;  %2104 = vmatmul.bf16.gmra.mxu0 %v857_v62  ;;  %v4590_v62 = vld [vmem:[%s5334_s2 + $0x1f8] sm:$0xff]  ;;  %v787_v63 = vld [vmem:[#allocation5 + $0x4a0] sm:$0xff]  ;;  %v788_v4 = vld [vmem:[#allocation5 + $0x4a8] sm:$0xff] }
 0x1df   : > { %2153 = vmatmul.bf16.gmra.mxu1 %v858_v19  ;;  %v549_v7 = vld [vmem:[#allocation2 + $0x4b0] sm:$0xff] }
 0x1e0   : > { %2682 = vmatmul.bf16.gmra.mxu2 %v609_v5  ;;  %v798_v5 = vld [vmem:[#allocation5 + $0x4f8] sm:$0xff]  ;;  %2992 = vmatpush.bf16.msra.mxu1 %v4590_v62 }
 0x1e1   : > { %2731 = vmatmul.bf16.gmra.mxu3 %v610_v28  ;;  %v539_v28 = vld [vmem:[#allocation2 + $0x460] sm:$0xff] }
 0x1e3   : > { %v2007_v0 = vpop.f32.mrf.mxu2  ;;  %v1911_v16 = vpop.f32.mrf.mxu0 }
 0x1e4   : > { %v2056_v13 = vpop.f32.mrf.mxu3  ;;  %v2008_v15 = vadd.f32 %v2007_v0, %v1959_v8  ;;  %v1960_v18 = vpop.f32.mrf.mxu1  ;;  %v1912_v32 = vadd.f32 %v1911_v16, %v5458_v54  ;;  %v868_v54 = vpack.c.bf16 %v778_v27, %v768_v25  ;;  %v540_v8 = vld [vmem:[#allocation2 + $0x468] sm:$0xff]  ;;  %v877_v0 = vpack.c.bf16 %v797_v2, %v787_v63  ;;  %v4581_v25 = vld [vmem:[%s5334_s2 + $0x1b0] sm:$0xff] }
 0x1e5   : > { %v4605_v27 = vld [vmem:[%s5334_s2 + $0x270] sm:$0xff]  ;;  %2944 = vmatpush.bf16.msra.mxu0 %v4581_v25  ;;  %v4596_v2 = vld [vmem:[%s5334_s2 + $0x228] sm:$0xff] }
 0x1e6   : > { %v5531_v21 = vadd.f32 %v2056_v13, %v2008_v15  ;;  %v1961_v49 = vadd.f32 %v1960_v18, %v1912_v32  ;;  %v629_v18 = vpack.c.bf16 %v549_v7, %v539_v28  ;;  %v630_v32 = vpack.c.bf16 %v550_v9, %v540_v8  ;;  %3091 = vmatpush.bf16.msra.mxu3 %v4605_v27 }
 0x1e7   : > { %3043 = vmatpush.bf16.msra.mxu2 %v4596_v2  ;;  %v454_v2 = vld [vmem:[#allocation2 + $0x1b8] sm:$0xff] }
 0x1eb   : > { %v2009_v35 = vpop.f32.mrf.mxu2  ;;  %v1914_v41 = vpop.f32.mrf.mxu0 }
 0x1ec   : > { %v2058_v36 = vpop.f32.mrf.mxu3  ;;  %v2010_v38 = vadd.f32 %v2009_v35, %v1961_v49  ;;  %v1963_v42 = vpop.f32.mrf.mxu1  ;;  %v1915_v45 = vadd.f32 %v1914_v41, %v5463_v3  ;;  %v411_v41 = vld [vmem:[#allocation2 + $0x60] sm:$0xff] }
 0x1ee   : > { %v5535_v17 = vadd.f32 %v2058_v36, %v2010_v38  ;;  %v1964_v46 = vadd.f32 %v1963_v42, %v1915_v45  ;;  %2109 = vmatmul.bf16.gmra.mxu0 %v867_v37  ;;  %v4589_v37 = vld [vmem:[%s5334_s2 + $0x1f0] sm:$0xff]  ;;  %v402_v42 = vld [vmem:[#allocation2 + $0x18] sm:$0xff] }
 0x1ef   : > { %2158 = vmatmul.bf16.gmra.mxu1 %v868_v54  ;;  %v401_v38 = vld [vmem:[#allocation2 + $0x10] sm:$0xff] }
 0x1f0   : > { %2687 = vmatmul.bf16.gmra.mxu2 %v619_v43  ;;  %v412_v43 = vld [vmem:[#allocation2 + $0x68] sm:$0xff]  ;;  %2993 = vmatpush.bf16.msra.mxu1 %v4589_v37  ;;  %v413_v45 = vld [vmem:[#allocation2 + $0x70] sm:$0xff] }
 0x1f1   : > { %2736 = vmatmul.bf16.gmra.mxu3 %v620_v61  ;;  %v403_v61 = vld [vmem:[#allocation2 + $0x20] sm:$0xff] }
 0x1f3   : > { %v2012_v30 = vpop.f32.mrf.mxu2  ;;  %v1916_v57 = vpop.f32.mrf.mxu0 }
 0x1f4   : > { %v2061_v53 = vpop.f32.mrf.mxu3  ;;  %v2013_v56 = vadd.f32 %v2012_v30, %v1964_v46  ;;  %v1965_v58 = vpop.f32.mrf.mxu1  ;;  %v1917_v3 = vadd.f32 %v1916_v57, %v5466_v26  ;;  %v878_v26 = vpack.c.bf16 %v798_v5, %v788_v4  ;;  %v404_v46 = vld [vmem:[#allocation2 + $0x28] sm:$0xff]  ;;  %v561_v30 = vpack.c.bf16 %v411_v41, %v401_v38  ;;  %v4595_v41 = vld [vmem:[%s5334_s2 + $0x220] sm:$0xff] }
 0x1f5   : > { %v4580_v4 = vld [vmem:[%s5334_s2 + $0x1a8] sm:$0xff]  ;;  %3044 = vmatpush.bf16.msra.mxu2 %v4595_v41  ;;  %v474_v41 = vld [vmem:[#allocation2 + $0x258] sm:$0xff] }
 0x1f6   : > { %v5541_v59 = vadd.f32 %v2061_v53, %v2013_v56  ;;  %v1966_v19 = vadd.f32 %v1965_v58, %v1917_v3  ;;  %v563_v58 = vpack.c.bf16 %v413_v45, %v403_v61  ;;  %v564_v3 = vpack.c.bf16 %v414_v47, %v404_v46  ;;  %v4604_v5 = vld [vmem:[%s5334_s2 + $0x268] sm:$0xff]  ;;  %2945 = vmatpush.bf16.msra.mxu0 %v4580_v4 }
 0x1f7   : > { %3092 = vmatpush.bf16.msra.mxu3 %v4604_v5 }
 0x1fb   : > { %v2014_v10 = vpop.f32.mrf.mxu2  ;;  %v1919_v15 = vpop.f32.mrf.mxu0 }
 0x1fc   : > { %v2063_v11 = vpop.f32.mrf.mxu3  ;;  %v2015_v13 = vadd.f32 %v2014_v10, %v1966_v19  ;;  %v1968_v16 = vpop.f32.mrf.mxu1  ;;  %v1920_v22 = vadd.f32 %v1919_v15, %v5471_v39  ;;  %v431_v15 = vld [vmem:[#allocation2 + $0x100] sm:$0xff] }
 0x1fe   : > { %v5545_v49 = vadd.f32 %v2063_v11, %v2015_v13  ;;  %v1969_v23 = vadd.f32 %v1968_v16, %v1920_v22  ;;  %2114 = vmatmul.bf16.gmra.mxu0 %v877_v0  ;;  %v4588_v0 = vld [vmem:[%s5334_s2 + $0x1e8] sm:$0xff]  ;;  %v421_v13 = vld [vmem:[#allocation2 + $0xb0] sm:$0xff]  ;;  %v422_v16 = vld [vmem:[#allocation2 + $0xb8] sm:$0xff] }
 0x1ff   : > { %2163 = vmatmul.bf16.gmra.mxu1 %v878_v26  ;;  %v433_v22 = vld [vmem:[#allocation2 + $0x110] sm:$0xff] }
 0x200   : > { %2692 = vmatmul.bf16.gmra.mxu2 %v629_v18  ;;  %v432_v18 = vld [vmem:[#allocation2 + $0x108] sm:$0xff]  ;;  %2994 = vmatpush.bf16.msra.mxu1 %v4588_v0 }
 0x201   : > { %2741 = vmatmul.bf16.gmra.mxu3 %v630_v32  ;;  %v423_v32 = vld [vmem:[#allocation2 + $0xc0] sm:$0xff] }
 0x203   : > { %v2017_v60 = vpop.f32.mrf.mxu2  ;;  %v1921_v34 = vpop.f32.mrf.mxu0 }
 0x204   : > { %v2066_v31 = vpop.f32.mrf.mxu3  ;;  %v2018_v33 = vadd.f32 %v2017_v60, %v1969_v23  ;;  %v1970_v35 = vpop.f32.mrf.mxu1  ;;  %v1922_v39 = vadd.f32 %v1921_v34, %v5475_v1  ;;  %v562_v1 = vpack.c.bf16 %v412_v43, %v402_v42  ;;  %v424_v23 = vld [vmem:[#allocation2 + $0xc8] sm:$0xff]  ;;  %v571_v60 = vpack.c.bf16 %v431_v15, %v421_v13  ;;  %v4579_v42 = vld [vmem:[%s5334_s2 + $0x1a0] sm:$0xff]  ;;  %v4594_v15 = vld [vmem:[%s5334_s2 + $0x218] sm:$0xff] }
 0x205   : > { %v4603_v43 = vld [vmem:[%s5334_s2 + $0x260] sm:$0xff]  ;;  %2946 = vmatpush.bf16.msra.mxu0 %v4579_v42  ;;  %3045 = vmatpush.bf16.msra.mxu2 %v4594_v15  ;;  %v494_v15 = vld [vmem:[#allocation2 + $0x2f8] sm:$0xff] }
 0x206   : > { %v5551_v36 = vadd.f32 %v2066_v31, %v2018_v33  ;;  %v1971_v54 = vadd.f32 %v1970_v35, %v1922_v39  ;;  %v573_v35 = vpack.c.bf16 %v433_v22, %v423_v32  ;;  %v574_v39 = vpack.c.bf16 %v434_v24, %v424_v23  ;;  %3093 = vmatpush.bf16.msra.mxu3 %v4603_v43 }
 0x20b   : > { %v2019_v48 = vpop.f32.mrf.mxu2  ;;  %v2080_v56 = vpop.f32.mrf.mxu0 }
 0x20c   : > { %v2068_v51 = vpop.f32.mrf.mxu3  ;;  %v2020_v53 = vadd.f32 %v2019_v48, %v1971_v54  ;;  %v2129_v57 = vpop.f32.mrf.mxu1  ;;  %v2081_v62 = vadd.f32 %v2080_v56, %v5481_v12  ;;  %v451_v56 = vld [vmem:[#allocation2 + $0x1a0] sm:$0xff] }
 0x20e   : > { %v5555_v19 = vadd.f32 %v2068_v51, %v2020_v53  ;;  %v2130_v63 = vadd.f32 %v2129_v57, %v2081_v62  ;;  %2755 = vmatmul.bf16.vlgmr.msrb.gmra.mxu0 %v561_v30  ;;  %v4587_v30 = vld [vmem:[%s5334_s2 + $0x1e0] sm:$0xff]  ;;  %v441_v53 = vld [vmem:[#allocation2 + $0x150] sm:$0xff]  ;;  %v442_v57 = vld [vmem:[#allocation2 + $0x158] sm:$0xff] }
 0x20f   : > { %2804 = vmatmul.bf16.vlgmr.msrb.gmra.mxu1 %v562_v1  ;;  %v453_v62 = vld [vmem:[#allocation2 + $0x1b0] sm:$0xff] }
 0x210   : > { %2853 = vmatmul.bf16.vlgmr.msrb.gmra.mxu2 %v563_v58  ;;  %v452_v58 = vld [vmem:[#allocation2 + $0x1a8] sm:$0xff]  ;;  %2995 = vmatpush.bf16.msra.mxu1 %v4587_v30 }
 0x211   : > { %2902 = vmatmul.bf16.vlgmr.msrb.gmra.mxu3 %v564_v3  ;;  %v443_v3 = vld [vmem:[#allocation2 + $0x160] sm:$0xff] }
 0x213   : > { %v2658_v28 = vpop.f32.mrf.mxu2  ;;  %v2082_v9 = vpop.f32.mrf.mxu0 }
 0x214   : > { %v2707_v7 = vpop.f32.mrf.mxu3  ;;  %v2659_v8 = vadd.f32 %v2658_v28, %v2130_v63  ;;  %v2131_v10 = vpop.f32.mrf.mxu1  ;;  %v2083_v12 = vadd.f32 %v2082_v9, %v5485_v40  ;;  %v572_v40 = vpack.c.bf16 %v432_v18, %v422_v16  ;;  %v444_v63 = vld [vmem:[#allocation2 + $0x168] sm:$0xff]  ;;  %v581_v28 = vpack.c.bf16 %v451_v56, %v441_v53  ;;  %v4578_v16 = vld [vmem:[%s5334_s2 + $0x198] sm:$0xff]  ;;  %v4593_v56 = vld [vmem:[%s5334_s2 + $0x210] sm:$0xff] }
 0x215   : > { %v4602_v18 = vld [vmem:[%s5334_s2 + $0x258] sm:$0xff]  ;;  %2947 = vmatpush.bf16.msra.mxu0 %v4578_v16  ;;  %3046 = vmatpush.bf16.msra.mxu2 %v4593_v56 }
 0x216   : > { %v5561_v11 = vadd.f32 %v2707_v7, %v2659_v8  ;;  %v2132_v26 = vadd.f32 %v2131_v10, %v2083_v12  ;;  %v583_v10 = vpack.c.bf16 %v453_v62, %v443_v3  ;;  %v584_v12 = vpack.c.bf16 %v454_v2, %v444_v63  ;;  %3094 = vmatpush.bf16.msra.mxu3 %v4602_v18  ;;  %v514_v56 = vld [vmem:[#allocation2 + $0x398] sm:$0xff] }
 0x21b   : > { %v2660_v25 = vpop.f32.mrf.mxu2  ;;  %v2085_v33 = vpop.f32.mrf.mxu0 }
 0x21c   : > { %v2709_v27 = vpop.f32.mrf.mxu3  ;;  %v2661_v31 = vadd.f32 %v2660_v25, %v2132_v26  ;;  %v2134_v34 = vpop.f32.mrf.mxu1  ;;  %v2086_v37 = vadd.f32 %v2085_v33, %v5491_v52  ;;  %v471_v33 = vld [vmem:[#allocation2 + $0x240] sm:$0xff] }
 0x21e   : > { %v5565_v54 = vadd.f32 %v2709_v27, %v2661_v31  ;;  %v2135_v38 = vadd.f32 %v2134_v34, %v2086_v37  ;;  %2760 = vmatmul.bf16.gmra.mxu0 %v571_v60  ;;  %v4586_v60 = vld [vmem:[%s5334_s2 + $0x1d8] sm:$0xff]  ;;  %v461_v31 = vld [vmem:[#allocation2 + $0x1f0] sm:$0xff] }
 0x21f   : > { %2809 = vmatmul.bf16.gmra.mxu1 %v572_v40  ;;  %v462_v34 = vld [vmem:[#allocation2 + $0x1f8] sm:$0xff]  ;;  %v473_v37 = vld [vmem:[#allocation2 + $0x250] sm:$0xff] }
 0x220   : > { %2858 = vmatmul.bf16.gmra.mxu2 %v573_v35  ;;  %v472_v35 = vld [vmem:[#allocation2 + $0x248] sm:$0xff]  ;;  %2996 = vmatpush.bf16.msra.mxu1 %v4586_v60 }
 0x221   : > { %2907 = vmatmul.bf16.gmra.mxu3 %v574_v39  ;;  %v463_v39 = vld [vmem:[#allocation2 + $0x200] sm:$0xff] }
 0x223   : > { %v2663_v61 = vpop.f32.mrf.mxu2  ;;  %v2087_v47 = vpop.f32.mrf.mxu0 }
 0x224   : > { %v2712_v45 = vpop.f32.mrf.mxu3  ;;  %v2664_v46 = vadd.f32 %v2663_v61, %v2135_v38  ;;  %v2136_v48 = vpop.f32.mrf.mxu1  ;;  %v2088_v52 = vadd.f32 %v2087_v47, %v5495_v14  ;;  %v582_v14 = vpack.c.bf16 %v452_v58, %v442_v57  ;;  %v464_v38 = vld [vmem:[#allocation2 + $0x208] sm:$0xff]  ;;  %v591_v61 = vpack.c.bf16 %v471_v33, %v461_v31  ;;  %v4577_v57 = vld [vmem:[%s5334_s2 + $0x190] sm:$0xff] }
 0x225   : > { %v4601_v58 = vld [vmem:[%s5334_s2 + $0x250] sm:$0xff]  ;;  %2948 = vmatpush.bf16.msra.mxu0 %v4577_v57  ;;  %v4592_v33 = vld [vmem:[%s5334_s2 + $0x208] sm:$0xff] }
 0x226   : > { %v5571_v51 = vadd.f32 %v2712_v45, %v2664_v46  ;;  %v2137_v1 = vadd.f32 %v2136_v48, %v2088_v52  ;;  %v593_v48 = vpack.c.bf16 %v473_v37, %v463_v39  ;;  %v594_v52 = vpack.c.bf16 %v474_v41, %v464_v38  ;;  %3095 = vmatpush.bf16.msra.mxu3 %v4601_v58 }
 0x227   : > { %3047 = vmatpush.bf16.msra.mxu2 %v4592_v33  ;;  %v534_v33 = vld [vmem:[#allocation2 + $0x438] sm:$0xff] }
 0x22b   : > { %v2665_v4 = vpop.f32.mrf.mxu2  ;;  %v2090_v8 = vpop.f32.mrf.mxu0 }
 0x22c   : > { %v2714_v5 = vpop.f32.mrf.mxu3  ;;  %v2666_v7 = vadd.f32 %v2665_v4, %v2137_v1  ;;  %v2139_v9 = vpop.f32.mrf.mxu1  ;;  %v2091_v0 = vadd.f32 %v2090_v8, %v5501_v29  ;;  %v491_v8 = vld [vmem:[#allocation2 + $0x2e0] sm:$0xff] }
 0x22e   : > { %v5575_v26 = vadd.f32 %v2714_v5, %v2666_v7  ;;  %v2140_v13 = vadd.f32 %v2139_v9, %v2091_v0  ;;  %2765 = vmatmul.bf16.gmra.mxu0 %v581_v28  ;;  %v4585_v28 = vld [vmem:[%s5334_s2 + $0x1d0] sm:$0xff]  ;;  %v482_v9 = vld [vmem:[#allocation2 + $0x298] sm:$0xff] }
 0x22f   : > { %2814 = vmatmul.bf16.gmra.mxu1 %v582_v14  ;;  %v481_v7 = vld [vmem:[#allocation2 + $0x290] sm:$0xff] }
 0x230   : > { %2863 = vmatmul.bf16.gmra.mxu2 %v583_v10  ;;  %v492_v10 = vld [vmem:[#allocation2 + $0x2e8] sm:$0xff]  ;;  %2997 = vmatpush.bf16.msra.mxu1 %v4585_v28  ;;  %v493_v0 = vld [vmem:[#allocation2 + $0x2f0] sm:$0xff] }
 0x231   : > { %2912 = vmatmul.bf16.gmra.mxu3 %v584_v12  ;;  %v483_v12 = vld [vmem:[#allocation2 + $0x2a0] sm:$0xff] }
 0x233   : > { %v2668_v32 = vpop.f32.mrf.mxu2  ;;  %v2092_v24 = vpop.f32.mrf.mxu0 }
 0x234   : > { %v2717_v22 = vpop.f32.mrf.mxu3  ;;  %v2669_v23 = vadd.f32 %v2668_v32, %v2140_v13  ;;  %v2141_v25 = vpop.f32.mrf.mxu1  ;;  %v2093_v29 = vadd.f32 %v2092_v24, %v5505_v55  ;;  %v592_v55 = vpack.c.bf16 %v472_v35, %v462_v34  ;;  %v484_v13 = vld [vmem:[#allocation2 + $0x2a8] sm:$0xff]  ;;  %v601_v32 = vpack.c.bf16 %v491_v8, %v481_v7  ;;  %v4591_v8 = vld [vmem:[%s5334_s2 + $0x200] sm:$0xff] }
 0x235   : > { %v4576_v34 = vld [vmem:[%s5334_s2 + $0x188] sm:$0xff]  ;;  %3048 = vmatpush.bf16.msra.mxu2 %v4591_v8 }
 0x236   : > { %v5581_v27 = vadd.f32 %v2717_v22, %v2669_v23  ;;  %v2142_v40 = vadd.f32 %v2141_v25, %v2093_v29  ;;  %v603_v25 = vpack.c.bf16 %v493_v0, %v483_v12  ;;  %v604_v29 = vpack.c.bf16 %v494_v15, %v484_v13  ;;  %v4600_v35 = vld [vmem:[%s5334_s2 + $0x248] sm:$0xff]  ;;  %2949 = vmatpush.bf16.msra.mxu0 %v4576_v34 }
 0x237   : > { %3096 = vmatpush.bf16.msra.mxu3 %v4600_v35 }
 0x23b   : > { %v2670_v42 = vpop.f32.mrf.mxu2  ;;  %v2095_v46 = vpop.f32.mrf.mxu0 }
 0x23c   : > { %v2719_v43 = vpop.f32.mrf.mxu3  ;;  %v2671_v45 = vadd.f32 %v2670_v42, %v2142_v40  ;;  %v2144_v47 = vpop.f32.mrf.mxu1  ;;  %v2096_v30 = vadd.f32 %v2095_v46, %v5511_v6  ;;  %v511_v46 = vld [vmem:[#allocation2 + $0x380] sm:$0xff] }
 0x23e   : > { %v5585_v1 = vadd.f32 %v2719_v43, %v2671_v45  ;;  %v2145_v53 = vadd.f32 %v2144_v47, %v2096_v30  ;;  %2770 = vmatmul.bf16.gmra.mxu0 %v591_v61  ;;  %v4584_v61 = vld [vmem:[%s5334_s2 + $0x1c8] sm:$0xff]  ;;  %v501_v45 = vld [vmem:[#allocation2 + $0x330] sm:$0xff]  ;;  %v502_v47 = vld [vmem:[#allocation2 + $0x338] sm:$0xff] }
 0x23f   : > { %2819 = vmatmul.bf16.gmra.mxu1 %v592_v55  ;;  %v513_v30 = vld [vmem:[#allocation2 + $0x390] sm:$0xff] }
 0x240   : > { %2868 = vmatmul.bf16.gmra.mxu2 %v593_v48  ;;  %v512_v48 = vld [vmem:[#allocation2 + $0x388] sm:$0xff]  ;;  %2998 = vmatpush.bf16.msra.mxu1 %v4584_v61 }
 0x241   : > { %2917 = vmatmul.bf16.gmra.mxu3 %v594_v52  ;;  %v503_v52 = vld [vmem:[#allocation2 + $0x340] sm:$0xff] }
 0x243   : > { %v2673_v3 = vpop.f32.mrf.mxu2  ;;  %v2097_v2 = vpop.f32.mrf.mxu0 }
 0x244   : > { %v2722_v62 = vpop.f32.mrf.mxu3  ;;  %v2674_v63 = vadd.f32 %v2673_v3, %v2145_v53  ;;  %v2146_v4 = vpop.f32.mrf.mxu1  ;;  %v2098_v6 = vadd.f32 %v2097_v2, %v5515_v20  ;;  %v602_v20 = vpack.c.bf16 %v492_v10, %v482_v9  ;;  %v504_v53 = vld [vmem:[#allocation2 + $0x348] sm:$0xff]  ;;  %v611_v3 = vpack.c.bf16 %v511_v46, %v501_v45  ;;  %v4575_v9 = vld [vmem:[%s5334_s2 + $0x180] sm:$0xff] }
 0x245   : > { %v4599_v10 = vld [vmem:[%s5334_s2 + $0x240] sm:$0xff]  ;;  %2950 = vmatpush.bf16.msra.mxu0 %v4575_v9 }
 0x246   : > { %v5591_v5 = vadd.f32 %v2722_v62, %v2674_v63  ;;  %v2147_v14 = vadd.f32 %v2146_v4, %v2098_v6  ;;  %v613_v4 = vpack.c.bf16 %v513_v30, %v503_v52  ;;  %v614_v6 = vpack.c.bf16 %v514_v56, %v504_v53  ;;  %3097 = vmatpush.bf16.msra.mxu3 %v4599_v10 }
 0x24b   : > { %v2675_v16 = vpop.f32.mrf.mxu2  ;;  %v2100_v23 = vpop.f32.mrf.mxu0 }
 0x24c   : > { %v2724_v18 = vpop.f32.mrf.mxu3  ;;  %v2676_v22 = vadd.f32 %v2675_v16, %v2147_v14  ;;  %v2149_v24 = vpop.f32.mrf.mxu1  ;;  %v2101_v60 = vadd.f32 %v2100_v23, %v5521_v44  ;;  %v531_v23 = vld [vmem:[#allocation2 + $0x420] sm:$0xff] }
 0x24e   : > { %v5595_v40 = vadd.f32 %v2724_v18, %v2676_v22  ;;  %v2150_v31 = vadd.f32 %v2149_v24, %v2101_v60  ;;  %2775 = vmatmul.bf16.gmra.mxu0 %v601_v32  ;;  %v4583_v32 = vld [vmem:[%s5334_s2 + $0x1c0] sm:$0xff]  ;;  %v521_v22 = vld [vmem:[#allocation2 + $0x3d0] sm:$0xff]  ;;  %v522_v24 = vld [vmem:[#allocation2 + $0x3d8] sm:$0xff] }
 0x24f   : > { %2824 = vmatmul.bf16.gmra.mxu1 %v602_v20  ;;  %v533_v60 = vld [vmem:[#allocation2 + $0x430] sm:$0xff] }
 0x250   : > { %2873 = vmatmul.bf16.gmra.mxu2 %v603_v25  ;;  %v532_v25 = vld [vmem:[#allocation2 + $0x428] sm:$0xff]  ;;  %2999 = vmatpush.bf16.msra.mxu1 %v4583_v32 }
 0x251   : > { %2922 = vmatmul.bf16.gmra.mxu3 %v604_v29  ;;  %v523_v29 = vld [vmem:[#allocation2 + $0x3e0] sm:$0xff] }
 0x253   : > { %v2678_v39 = vpop.f32.mrf.mxu2  ;;  %v2102_v41 = vpop.f32.mrf.mxu0 }
 0x254   : > { %v2727_v37 = vpop.f32.mrf.mxu3  ;;  %v2679_v38 = vadd.f32 %v2678_v39, %v2150_v31  ;;  %v2151_v42 = vpop.f32.mrf.mxu1  ;;  %v2103_v44 = vadd.f32 %v2102_v41, %v5525_v50  ;;  %v612_v50 = vpack.c.bf16 %v512_v48, %v502_v47  ;;  %v524_v31 = vld [vmem:[#allocation2 + $0x3e8] sm:$0xff]  ;;  %v621_v39 = vpack.c.bf16 %v531_v23, %v521_v22 }
 0x256   : > { %v5601_v43 = vadd.f32 %v2727_v37, %v2679_v38  ;;  %v2152_v55 = vadd.f32 %v2151_v42, %v2103_v44  ;;  %v622_v37 = vpack.c.bf16 %v532_v25, %v522_v24  ;;  %v623_v42 = vpack.c.bf16 %v533_v60, %v523_v29  ;;  %v405_v60 = vld [vmem:[#allocation2 + $0x30] sm:$0xff] }
 0x257   : > { %v624_v44 = vpack.c.bf16 %v534_v33, %v524_v31  ;;  %v415_v31 = vld [vmem:[#allocation2 + $0x80] sm:$0xff]  ;;  %v416_v33 = vld [vmem:[#allocation2 + $0x88] sm:$0xff] }
 0x25b   : > { %v2680_v57 = vpop.f32.mrf.mxu2  ;;  %v2105_v63 = vpop.f32.mrf.mxu0 }
 0x25c   : > { %v2729_v58 = vpop.f32.mrf.mxu3  ;;  %v2681_v62 = vadd.f32 %v2680_v57, %v2152_v55  ;;  %v2154_v2 = vpop.f32.mrf.mxu1  ;;  %v2106_v28 = vadd.f32 %v2105_v63, %v5531_v21  ;;  %v553_v63 = vld [vmem:[#allocation2 + $0x4d0] sm:$0xff] }
 0x25e   : > { %v5605_v14 = vadd.f32 %v2729_v58, %v2681_v62  ;;  %v2155_v7 = vadd.f32 %v2154_v2, %v2106_v28  ;;  %2780 = vmatmul.bf16.gmra.mxu0 %v611_v3  ;;  %v541_v58 = vld [vmem:[#allocation2 + $0x470] sm:$0xff]  ;;  %v551_v3 = vld [vmem:[#allocation2 + $0x4c0] sm:$0xff]  ;;  %v544_v2 = vld [vmem:[#allocation2 + $0x488] sm:$0xff] }
 0x25f   : > { %2829 = vmatmul.bf16.gmra.mxu1 %v612_v50  ;;  %v552_v50 = vld [vmem:[#allocation2 + $0x4c8] sm:$0xff]  ;;  %v543_v62 = vld [vmem:[#allocation2 + $0x480] sm:$0xff] }
 0x260   : > { %2878 = vmatmul.bf16.gmra.mxu2 %v613_v4  ;;  %v554_v4 = vld [vmem:[#allocation2 + $0x4d8] sm:$0xff] }
 0x261   : > { %2927 = vmatmul.bf16.gmra.mxu3 %v614_v6 }
 0x263   : > { %v2683_v12 = vpop.f32.mrf.mxu2  ;;  %v2107_v15 = vpop.f32.mrf.mxu0 }
 0x264   : > { %v2732_v0 = vpop.f32.mrf.mxu3  ;;  %v2684_v13 = vadd.f32 %v2683_v12, %v2155_v7  ;;  %v2156_v16 = vpop.f32.mrf.mxu1  ;;  %v2108_v21 = vadd.f32 %v2107_v15, %v5535_v17  ;;  %v631_v7 = vpack.c.bf16 %v551_v3, %v541_v58 }
 0x266   : > { %v5611_v18 = vadd.f32 %v2732_v0, %v2684_v13  ;;  %v2157_v20 = vadd.f32 %v2156_v16, %v2108_v21  ;;  %v633_v0 = vpack.c.bf16 %v553_v63, %v543_v62  ;;  %v425_v63 = vld [vmem:[#allocation2 + $0xd0] sm:$0xff] }
 0x26b   : > { %v2685_v34 = vpop.f32.mrf.mxu2  ;;  %v2110_v41 = vpop.f32.mrf.mxu0 }
 0x26c   : > { %v2734_v35 = vpop.f32.mrf.mxu3  ;;  %v2686_v38 = vadd.f32 %v2685_v34, %v2157_v20  ;;  %v2159_v17 = vpop.f32.mrf.mxu1  ;;  %v2111_v61 = vadd.f32 %v2110_v41, %v5541_v59  ;;  %v542_v59 = vld [vmem:[#allocation2 + $0x478] sm:$0xff]  ;;  %v407_v34 = vld [vmem:[#allocation2 + $0x40] sm:$0xff] }
 0x26d   : > { %v632_v8 = vpack.c.bf16 %v552_v50, %v542_v59 }
 0x26e   : > { %v5615_v55 = vadd.f32 %v2734_v35, %v2686_v38  ;;  %v2160_v45 = vadd.f32 %v2159_v17, %v2111_v61  ;;  %2785 = vmatmul.bf16.gmra.mxu0 %v621_v39  ;;  %v417_v35 = vld [vmem:[#allocation2 + $0x90] sm:$0xff]  ;;  %v408_v39 = vld [vmem:[#allocation2 + $0x48] sm:$0xff]  ;;  %v565_v17 = vpack.c.bf16 %v415_v31, %v405_v60 }
 0x26f   : > { %2834 = vmatmul.bf16.gmra.mxu1 %v622_v37  ;;  %v418_v37 = vld [vmem:[#allocation2 + $0x98] sm:$0xff] }
 0x270   : > { %2883 = vmatmul.bf16.gmra.mxu2 %v623_v42 }
 0x271   : > { %2932 = vmatmul.bf16.gmra.mxu3 %v624_v44 }
 0x273   : > { %v2688_v46 = vpop.f32.mrf.mxu2  ;;  %v2112_v52 = vpop.f32.mrf.mxu0 }
 0x274   : > { %v2737_v47 = vpop.f32.mrf.mxu3  ;;  %v2689_v48 = vadd.f32 %v2688_v46, %v2160_v45  ;;  %v2161_v30 = vpop.f32.mrf.mxu1  ;;  %v2113_v53 = vadd.f32 %v2112_v52, %v5545_v49  ;;  %v634_v49 = vpack.c.bf16 %v554_v4, %v544_v2  ;;  %v568_v46 = vpack.c.bf16 %v418_v37, %v408_v39  ;;  %v426_v2 = vld [vmem:[#allocation2 + $0xd8] sm:$0xff]  ;;  %v436_v4 = vld [vmem:[#allocation2 + $0x128] sm:$0xff]  ;;  %v455_v39 = vld [vmem:[#allocation2 + $0x1c0] sm:$0xff] }
 0x275   : > { %v456_v37 = vld [vmem:[#allocation2 + $0x1c8] sm:$0xff] }
 0x276   : > { %v5618_v56 = vadd.f32 %v2737_v47, %v2689_v48  ;;  %v2162_v57 = vadd.f32 %v2161_v30, %v2113_v53 }
 0x27b   : > { %v2690_v6 = vpop.f32.mrf.mxu2  ;;  %v2115_v10 = vpop.f32.mrf.mxu0 }
 0x27c   : > { %v2739_v28 = vpop.f32.mrf.mxu3  ;;  %v2691_v9 = vadd.f32 %v2690_v6, %v2162_v57  ;;  %v2164_v12 = vpop.f32.mrf.mxu1  ;;  %v2116_v13 = vadd.f32 %v2115_v10, %v5551_v36  ;;  %v406_v36 = vld [vmem:[#allocation2 + $0x38] sm:$0xff]  ;;  %v427_v6 = vld [vmem:[#allocation2 + $0xe0] sm:$0xff] }
 0x27d   : > { %v566_v42 = vpack.c.bf16 %v416_v33, %v406_v36 }
 0x27e   : > { %v5621_v15 = vadd.f32 %v2739_v28, %v2691_v9  ;;  %v2165_v16 = vadd.f32 %v2164_v12, %v2116_v13  ;;  %2790 = vmatmul.bf16.gmra.mxu0 %v631_v7  ;;  %v437_v28 = vld [vmem:[#allocation2 + $0x130] sm:$0xff]  ;;  %v428_v7 = vld [vmem:[#allocation2 + $0xe8] sm:$0xff] }
 0x27f   : > { %2839 = vmatmul.bf16.gmra.mxu1 %v632_v8  ;;  %v438_v8 = vld [vmem:[#allocation2 + $0x138] sm:$0xff] }
 0x280   : > { %2888 = vmatmul.bf16.gmra.mxu2 %v633_v0  ;;  %v576_v0 = vpack.c.bf16 %v436_v4, %v426_v2 }
 0x281   : > { %2937 = vmatmul.bf16.gmra.mxu3 %v634_v49 }
 0x283   : > { %v2693_v21 = vpop.f32.mrf.mxu2  ;;  %v2117_v22 = vpop.f32.mrf.mxu0 }
 0x284   : > { %v2742_v32 = vpop.f32.mrf.mxu3  ;;  %v2694_v20 = vadd.f32 %v2693_v21, %v2165_v16  ;;  %v2166_v23 = vpop.f32.mrf.mxu1  ;;  %v2118_v24 = vadd.f32 %v2117_v22, %v5555_v19  ;;  %v567_v19 = vpack.c.bf16 %v417_v35, %v407_v34  ;;  %v578_v21 = vpack.c.bf16 %v438_v8, %v428_v7  ;;  %v445_v35 = vld [vmem:[#allocation2 + $0x170] sm:$0xff]  ;;  %v475_v7 = vld [vmem:[#allocation2 + $0x260] sm:$0xff]  ;;  %v476_v8 = vld [vmem:[#allocation2 + $0x268] sm:$0xff] }
 0x286   : > { %v5624_v25 = vadd.f32 %v2742_v32, %v2694_v20  ;;  %v2167_v29 = vadd.f32 %v2166_v23, %v2118_v24 }
 0x28b   : > { %v2695_v38 = vpop.f32.mrf.mxu2  ;;  %v2756_v61 = vpop.f32.mrf.mxu0 }
 0x28c   : > { %v2744_v41 = vpop.f32.mrf.mxu3  ;;  %v2696_v44 = vadd.f32 %v2695_v38, %v2167_v29  ;;  %v2805_v45 = vpop.f32.mrf.mxu1  ;;  %v2757_v47 = vadd.f32 %v2756_v61, %v5561_v11  ;;  %v435_v11 = vld [vmem:[#allocation2 + $0x120] sm:$0xff] }
 0x28d   : > { %v575_v12 = vpack.c.bf16 %v435_v11, %v425_v63  ;;  %v447_v38 = vld [vmem:[#allocation2 + $0x180] sm:$0xff] }
 0x28e   : > { %v5627_v48 = vadd.f32 %v2744_v41, %v2696_v44  ;;  %v2806_v52 = vadd.f32 %v2805_v45, %v2757_v47  ;;  %2951 = vmatmul.bf16.vlgmr.msra.gmra.mxu0 %v565_v17  ;;  %v457_v41 = vld [vmem:[#allocation2 + $0x1d0] sm:$0xff]  ;;  %v448_v17 = vld [vmem:[#allocation2 + $0x188] sm:$0xff]  ;;  %v585_v45 = vpack.c.bf16 %v455_v39, %v445_v35 }
 0x28f   : > { %3000 = vmatmul.bf16.vlgmr.msra.gmra.mxu1 %v566_v42  ;;  %v458_v42 = vld [vmem:[#allocation2 + $0x1d8] sm:$0xff] }
 0x290   : > { %3049 = vmatmul.bf16.vlgmr.msra.gmra.mxu2 %v567_v19 }
 0x291   : > { %3098 = vmatmul.bf16.vlgmr.msra.gmra.mxu3 %v568_v46 }
 0x293   : > { %v2854_v30 = vpop.f32.mrf.mxu2  ;;  %v2758_v58 = vpop.f32.mrf.mxu0 }
 0x294   : > { %v2903_v53 = vpop.f32.mrf.mxu3  ;;  %v2855_v57 = vadd.f32 %v2854_v30, %v2806_v52  ;;  %v2807_v3 = vpop.f32.mrf.mxu1  ;;  %v2759_v59 = vadd.f32 %v2758_v58, %v5565_v54  ;;  %v577_v54 = vpack.c.bf16 %v437_v28, %v427_v6  ;;  %v587_v30 = vpack.c.bf16 %v457_v41, %v447_v38  ;;  %v465_v28 = vld [vmem:[#allocation2 + $0x210] sm:$0xff] }
 0x295   : > { %v485_v41 = vld [vmem:[#allocation2 + $0x2b0] sm:$0xff] }
 0x296   : > { %v5631_v50 = vadd.f32 %v2903_v53, %v2855_v57  ;;  %v2808_v62 = vadd.f32 %v2807_v3, %v2759_v59 }
 0x29b   : > { %v2856_v9 = vpop.f32.mrf.mxu2  ;;  %v2761_v13 = vpop.f32.mrf.mxu0 }
 0x29c   : > { %v2905_v10 = vpop.f32.mrf.mxu3  ;;  %v2857_v49 = vadd.f32 %v2856_v9, %v2808_v62  ;;  %v2810_v16 = vpop.f32.mrf.mxu1  ;;  %v2762_v32 = vadd.f32 %v2761_v13, %v5571_v51  ;;  %v446_v51 = vld [vmem:[#allocation2 + $0x178] sm:$0xff]  ;;  %v467_v9 = vld [vmem:[#allocation2 + $0x220] sm:$0xff] }
 0x29d   : > { %v586_v19 = vpack.c.bf16 %v456_v37, %v446_v51 }
 0x29e   : > { %v5634_v20 = vadd.f32 %v2905_v10, %v2857_v49  ;;  %v2811_v22 = vadd.f32 %v2810_v16, %v2762_v32  ;;  %2956 = vmatmul.bf16.gmra.mxu0 %v575_v12  ;;  %v477_v10 = vld [vmem:[#allocation2 + $0x270] sm:$0xff]  ;;  %v468_v12 = vld [vmem:[#allocation2 + $0x228] sm:$0xff]  ;;  %v595_v16 = vpack.c.bf16 %v475_v7, %v465_v28 }
 0x29f   : > { %3005 = vmatmul.bf16.gmra.mxu1 %v576_v0  ;;  %v478_v0 = vld [vmem:[#allocation2 + $0x278] sm:$0xff] }
 0x2a0   : > { %3054 = vmatmul.bf16.gmra.mxu2 %v577_v54 }
 0x2a1   : > { %3103 = vmatmul.bf16.gmra.mxu3 %v578_v21 }
 0x2a3   : > { %v2859_v23 = vpop.f32.mrf.mxu2  ;;  %v2763_v60 = vpop.f32.mrf.mxu0 }
 0x2a4   : > { %v2908_v24 = vpop.f32.mrf.mxu3  ;;  %v2860_v29 = vadd.f32 %v2859_v23, %v2811_v22  ;;  %v2812_v31 = vpop.f32.mrf.mxu1  ;;  %v2764_v36 = vadd.f32 %v2763_v60, %v5575_v26  ;;  %v588_v26 = vpack.c.bf16 %v458_v42, %v448_v17  ;;  %v597_v23 = vpack.c.bf16 %v477_v10, %v467_v9  ;;  %v495_v17 = vld [vmem:[#allocation2 + $0x300] sm:$0xff]  ;;  %v496_v42 = vld [vmem:[#allocation2 + $0x308] sm:$0xff]  ;;  %v505_v10 = vld [vmem:[#allocation2 + $0x350] sm:$0xff] }
 0x2a6   : > { %v5637_v33 = vadd.f32 %v2908_v24, %v2860_v29  ;;  %v2813_v34 = vadd.f32 %v2812_v31, %v2764_v36 }
 0x2ab   : > { %v2861_v44 = vpop.f32.mrf.mxu2  ;;  %v2766_v47 = vpop.f32.mrf.mxu0 }
 0x2ac   : > { %v2910_v61 = vpop.f32.mrf.mxu3  ;;  %v2862_v46 = vadd.f32 %v2861_v44, %v2813_v34  ;;  %v2815_v52 = vpop.f32.mrf.mxu1  ;;  %v2767_v53 = vadd.f32 %v2766_v47, %v5581_v27  ;;  %v466_v27 = vld [vmem:[#allocation2 + $0x218] sm:$0xff]  ;;  %v487_v44 = vld [vmem:[#allocation2 + $0x2c0] sm:$0xff] }
 0x2ad   : > { %v596_v54 = vpack.c.bf16 %v476_v8, %v466_v27 }
 0x2ae   : > { %v5640_v57 = vadd.f32 %v2910_v61, %v2862_v46  ;;  %v2816_v58 = vadd.f32 %v2815_v52, %v2767_v53  ;;  %2961 = vmatmul.bf16.gmra.mxu0 %v585_v45  ;;  %v497_v61 = vld [vmem:[#allocation2 + $0x310] sm:$0xff]  ;;  %v488_v45 = vld [vmem:[#allocation2 + $0x2c8] sm:$0xff]  ;;  %v605_v52 = vpack.c.bf16 %v495_v17, %v485_v41 }
 0x2af   : > { %3010 = vmatmul.bf16.gmra.mxu1 %v586_v19  ;;  %v498_v19 = vld [vmem:[#allocation2 + $0x318] sm:$0xff] }
 0x2b0   : > { %3059 = vmatmul.bf16.gmra.mxu2 %v587_v30 }
 0x2b1   : > { %3108 = vmatmul.bf16.gmra.mxu3 %v588_v26 }
 0x2b3   : > { %v2864_v3 = vpop.f32.mrf.mxu2  ;;  %v2768_v63 = vpop.f32.mrf.mxu0 }
 0x2b4   : > { %v2913_v59 = vpop.f32.mrf.mxu3  ;;  %v2865_v62 = vadd.f32 %v2864_v3, %v2816_v58  ;;  %v2817_v11 = vpop.f32.mrf.mxu1  ;;  %v2769_v2 = vadd.f32 %v2768_v63, %v5585_v1  ;;  %v598_v1 = vpack.c.bf16 %v478_v0, %v468_v12  ;;  %v607_v3 = vpack.c.bf16 %v497_v61, %v487_v44  ;;  %v515_v12 = vld [vmem:[#allocation2 + $0x3a0] sm:$0xff]  ;;  %v516_v0 = vld [vmem:[#allocation2 + $0x3a8] sm:$0xff]  ;;  %v525_v61 = vld [vmem:[#allocation2 + $0x3f0] sm:$0xff] }
 0x2b6   : > { %v5643_v4 = vadd.f32 %v2913_v59, %v2865_v62  ;;  %v2818_v6 = vadd.f32 %v2817_v11, %v2769_v2 }
 0x2bb   : > { %v2866_v49 = vpop.f32.mrf.mxu2  ;;  %v2771_v32 = vpop.f32.mrf.mxu0 }
 0x2bc   : > { %v2915_v13 = vpop.f32.mrf.mxu3  ;;  %v2867_v21 = vadd.f32 %v2866_v49, %v2818_v6  ;;  %v2820_v22 = vpop.f32.mrf.mxu1  ;;  %v2772_v24 = vadd.f32 %v2771_v32, %v5591_v5  ;;  %v486_v5 = vld [vmem:[#allocation2 + $0x2b8] sm:$0xff]  ;;  %v507_v49 = vld [vmem:[#allocation2 + $0x360] sm:$0xff] }
 0x2bd   : > { %v606_v30 = vpack.c.bf16 %v496_v42, %v486_v5 }
 0x2be   : > { %v5646_v29 = vadd.f32 %v2915_v13, %v2867_v21  ;;  %v2821_v60 = vadd.f32 %v2820_v22, %v2772_v24  ;;  %2966 = vmatmul.bf16.gmra.mxu0 %v595_v16  ;;  %v517_v13 = vld [vmem:[#allocation2 + $0x3b0] sm:$0xff]  ;;  %v508_v16 = vld [vmem:[#allocation2 + $0x368] sm:$0xff]  ;;  %v615_v22 = vpack.c.bf16 %v515_v12, %v505_v10 }
 0x2bf   : > { %3015 = vmatmul.bf16.gmra.mxu1 %v596_v54  ;;  %v518_v54 = vld [vmem:[#allocation2 + $0x3b8] sm:$0xff] }
 0x2c0   : > { %3064 = vmatmul.bf16.gmra.mxu2 %v597_v23 }
 0x2c1   : > { %3113 = vmatmul.bf16.gmra.mxu3 %v598_v1 }
 0x2c3   : > { %v2869_v31 = vpop.f32.mrf.mxu2  ;;  %v2773_v35 = vpop.f32.mrf.mxu0 }
 0x2c4   : > { %v2918_v36 = vpop.f32.mrf.mxu3  ;;  %v2870_v34 = vadd.f32 %v2869_v31, %v2821_v60  ;;  %v2822_v39 = vpop.f32.mrf.mxu1  ;;  %v2774_v51 = vadd.f32 %v2773_v35, %v5595_v40  ;;  %v608_v40 = vpack.c.bf16 %v498_v19, %v488_v45  ;;  %v617_v31 = vpack.c.bf16 %v517_v13, %v507_v49  ;;  %v535_v45 = vld [vmem:[#allocation2 + $0x440] sm:$0xff]  ;;  %v536_v19 = vld [vmem:[#allocation2 + $0x448] sm:$0xff]  ;;  %v545_v13 = vld [vmem:[#allocation2 + $0x490] sm:$0xff] }
 0x2c6   : > { %v5649_v37 = vadd.f32 %v2918_v36, %v2870_v34  ;;  %v2823_v38 = vadd.f32 %v2822_v39, %v2774_v51 }
 0x2cb   : > { %v2871_v46 = vpop.f32.mrf.mxu2  ;;  %v2776_v53 = vpop.f32.mrf.mxu0 }
 0x2cc   : > { %v2920_v47 = vpop.f32.mrf.mxu3  ;;  %v2872_v26 = vadd.f32 %v2871_v46, %v2823_v38  ;;  %v2825_v58 = vpop.f32.mrf.mxu1  ;;  %v2777_v59 = vadd.f32 %v2776_v53, %v5601_v43  ;;  %v506_v43 = vld [vmem:[#allocation2 + $0x358] sm:$0xff]  ;;  %v527_v46 = vld [vmem:[#allocation2 + $0x400] sm:$0xff] }
 0x2cd   : > { %v616_v23 = vpack.c.bf16 %v516_v0, %v506_v43 }
 0x2ce   : > { %v5652_v62 = vadd.f32 %v2920_v47, %v2872_v26  ;;  %v2826_v63 = vadd.f32 %v2825_v58, %v2777_v59  ;;  %2971 = vmatmul.bf16.gmra.mxu0 %v605_v52  ;;  %v537_v47 = vld [vmem:[#allocation2 + $0x450] sm:$0xff]  ;;  %v528_v52 = vld [vmem:[#allocation2 + $0x408] sm:$0xff]  ;;  %v625_v58 = vpack.c.bf16 %v535_v45, %v525_v61 }
 0x2cf   : > { %3020 = vmatmul.bf16.gmra.mxu1 %v606_v30  ;;  %v538_v30 = vld [vmem:[#allocation2 + $0x458] sm:$0xff] }
 0x2d0   : > { %3069 = vmatmul.bf16.gmra.mxu2 %v607_v3 }
 0x2d1   : > { %3118 = vmatmul.bf16.gmra.mxu3 %v608_v40 }
 0x2d3   : > { %v2874_v11 = vpop.f32.mrf.mxu2  ;;  %v2778_v28 = vpop.f32.mrf.mxu0 }
 0x2d4   : > { %v2923_v2 = vpop.f32.mrf.mxu3  ;;  %v2875_v6 = vadd.f32 %v2874_v11, %v2826_v63  ;;  %v2827_v7 = vpop.f32.mrf.mxu1  ;;  %v2779_v27 = vadd.f32 %v2778_v28, %v5605_v14  ;;  %v618_v14 = vpack.c.bf16 %v518_v54, %v508_v16  ;;  %v627_v11 = vpack.c.bf16 %v537_v47, %v527_v46  ;;  %v555_v16 = vld [vmem:[#allocation2 + $0x4e0] sm:$0xff]  ;;  %v556_v54 = vld [vmem:[#allocation2 + $0x4e8] sm:$0xff] }
 0x2d6   : > { %v5655_v8 = vadd.f32 %v2923_v2, %v2875_v6  ;;  %v2828_v9 = vadd.f32 %v2827_v7, %v2779_v27 }
 0x2db   : > { %v2876_v21 = vpop.f32.mrf.mxu2  ;;  %v2781_v24 = vpop.f32.mrf.mxu0 }
 0x2dc   : > { %v2925_v32 = vpop.f32.mrf.mxu3  ;;  %v2877_v1 = vadd.f32 %v2876_v21, %v2828_v9  ;;  %v2830_v60 = vpop.f32.mrf.mxu1  ;;  %v2782_v36 = vadd.f32 %v2781_v24, %v5611_v18  ;;  %v526_v18 = vld [vmem:[#allocation2 + $0x3f8] sm:$0xff]  ;;  %v547_v21 = vld [vmem:[#allocation2 + $0x4a0] sm:$0xff] }
 0x2dd   : > { %v626_v3 = vpack.c.bf16 %v536_v19, %v526_v18 }
 0x2de   : > { %v5658_v34 = vadd.f32 %v2925_v32, %v2877_v1  ;;  %v2831_v35 = vadd.f32 %v2830_v60, %v2782_v36  ;;  %2976 = vmatmul.bf16.gmra.mxu0 %v615_v22  ;;  %v557_v32 = vld [vmem:[#allocation2 + $0x4f0] sm:$0xff]  ;;  %v548_v22 = vld [vmem:[#allocation2 + $0x4a8] sm:$0xff]  ;;  %v635_v60 = vpack.c.bf16 %v555_v16, %v545_v13 }
 0x2df   : > { %3025 = vmatmul.bf16.gmra.mxu1 %v616_v23  ;;  %v558_v23 = vld [vmem:[#allocation2 + $0x4f8] sm:$0xff] }
 0x2e0   : > { %3074 = vmatmul.bf16.gmra.mxu2 %v617_v31 }
 0x2e1   : > { %3123 = vmatmul.bf16.gmra.mxu3 %v618_v14 }
 0x2e3   : > { %v2879_v39 = vpop.f32.mrf.mxu2  ;;  %v2783_v41 = vpop.f32.mrf.mxu0 }
 0x2e4   : > { %v2928_v51 = vpop.f32.mrf.mxu3  ;;  %v2880_v38 = vadd.f32 %v2879_v39, %v2831_v35  ;;  %v2832_v17 = vpop.f32.mrf.mxu1  ;;  %v2784_v5 = vadd.f32 %v2783_v41, %v5615_v55  ;;  %v628_v55 = vpack.c.bf16 %v538_v30, %v528_v52  ;;  %v637_v39 = vpack.c.bf16 %v557_v32, %v547_v21 }
 0x2e6   : > { %v5661_v42 = vadd.f32 %v2928_v51, %v2880_v38  ;;  %v2833_v44 = vadd.f32 %v2832_v17, %v2784_v5 }
 0x2eb   : > { %v2881_v26 = vpop.f32.mrf.mxu2  ;;  %v2786_v59 = vpop.f32.mrf.mxu0 }
 0x2ec   : > { %v2930_v53 = vpop.f32.mrf.mxu3  ;;  %v2882_v40 = vadd.f32 %v2881_v26, %v2833_v44  ;;  %v2835_v63 = vpop.f32.mrf.mxu1  ;;  %v2787_v2 = vadd.f32 %v2786_v59, %v5618_v56  ;;  %v546_v56 = vld [vmem:[#allocation2 + $0x498] sm:$0xff] }
 0x2ed   : > { %v636_v31 = vpack.c.bf16 %v556_v54, %v546_v56 }
 0x2ee   : > { %v5664_v6 = vadd.f32 %v2930_v53, %v2882_v40  ;;  %v2836_v28 = vadd.f32 %v2835_v63, %v2787_v2  ;;  %2981 = vmatmul.bf16.gmra.mxu0 %v625_v58 }
 0x2ef   : > { %3030 = vmatmul.bf16.gmra.mxu1 %v626_v3 }
 0x2f0   : > { %3079 = vmatmul.bf16.gmra.mxu2 %v627_v11 }
 0x2f1   : > { %3128 = vmatmul.bf16.gmra.mxu3 %v628_v55 }
 0x2f3   : > { %v2884_v7 = vpop.f32.mrf.mxu2  ;;  %v2788_v10 = vpop.f32.mrf.mxu0 }
 0x2f4   : > { %v2933_v27 = vpop.f32.mrf.mxu3  ;;  %v2885_v9 = vadd.f32 %v2884_v7, %v2836_v28  ;;  %v2837_v12 = vpop.f32.mrf.mxu1  ;;  %v2789_v43 = vadd.f32 %v2788_v10, %v5621_v15  ;;  %v638_v15 = vpack.c.bf16 %v558_v23, %v548_v22 }
 0x2f6   : > { %v5667_v0 = vadd.f32 %v2933_v27, %v2885_v9  ;;  %v2838_v49 = vadd.f32 %v2837_v12, %v2789_v43 }
 0x2fb   : > { %v2886_v1 = vpop.f32.mrf.mxu2  ;;  %v2791_v36 = vpop.f32.mrf.mxu0 }
 0x2fc   : > { %v2935_v24 = vpop.f32.mrf.mxu3  ;;  %v2887_v14 = vadd.f32 %v2886_v1, %v2838_v49  ;;  %v2840_v35 = vpop.f32.mrf.mxu1  ;;  %v2792_v51 = vadd.f32 %v2791_v36, %v5624_v25 }
 0x2fe   : > { %v5670_v38 = vadd.f32 %v2935_v24, %v2887_v14  ;;  %v2841_v41 = vadd.f32 %v2840_v35, %v2792_v51  ;;  %2986 = vmatmul.bf16.gmra.mxu0 %v635_v60 }
 0x2ff   : > { %3035 = vmatmul.bf16.gmra.mxu1 %v636_v31 }
 0x300   : > { %3084 = vmatmul.bf16.gmra.mxu2 %v637_v39 }
 0x301   : > { %3133 = vmatmul.bf16.gmra.mxu3 %v638_v15 }
 0x303   : > { %v2889_v17 = vpop.f32.mrf.mxu2  ;;  %v2793_v61 = vpop.f32.mrf.mxu0 }
 0x304   : > { %v2938_v5 = vpop.f32.mrf.mxu3  ;;  %v2890_v44 = vadd.f32 %v2889_v17, %v2841_v41  ;;  %v2842_v45 = vpop.f32.mrf.mxu1  ;;  %v2794_v18 = vadd.f32 %v2793_v61, %v5627_v48  ;;  %v5680_v48 = vld [vmem:[%s338_s8] ss:$0 sm:$0xff]  ;;  %s5047_s8 = scalar_lea.hbm %s6199_s6, 1280 }
 0x305   : > { %p5049_p1 = scmp.lt.s32.totalorder %s5047_s8, %s5043_s11 }
 0x306   : > { %v5673_v19 = vadd.f32 %v2938_v5, %v2890_v44  ;;  %v2843_v46 = vadd.f32 %v2842_v45, %v2794_v18 }
 0x307   : > { %p5050_p9 = por %p5049_p1, %p5048_p8 }
 0x309   : > { %p5051_p10 = pnand %p5050_p9, %p5046_p3 }
 0x30b   : > { %v2891_v47 = vpop.f32.mrf.mxu2  ;;  %v2952_v30 = vpop.f32.mrf.mxu0 }
 0x30c   : > { %v2940_v25 = vpop.f32.mrf.mxu3  ;;  %v2892_v52 = vadd.f32 %v2891_v47, %v2843_v46  ;;  %v3001_v26 = vpop.f32.mrf.mxu1  ;;  %v2953_v53 = vadd.f32 %v2952_v30, %v5631_v50 }
 0x30e   : > { %v5676_v58 = vadd.f32 %v2940_v25, %v2892_v52  ;;  %v3002_v3 = vadd.f32 %v3001_v26, %v2953_v53 }
 0x313   : > { %v3050_v40 = vpop.f32.mrf.mxu2  ;;  %v2954_v11 = vpop.f32.mrf.mxu0 }
 0x314   : > { %v3099_v59 = vpop.f32.mrf.mxu3  ;;  %v3051_v63 = vadd.f32 %v3050_v40, %v3002_v3  ;;  %v3003_v55 = vpop.f32.mrf.mxu1  ;;  %v2955_v2 = vadd.f32 %v2954_v11, %v5634_v20 }
 0x316   : > { %v3100_v28 = vadd.f32 %v3099_v59, %v3051_v63  ;;  %v3004_v7 = vadd.f32 %v3003_v55, %v2955_v2 }
 0x318   : > { %v3143_v27 = vadd.f32 %v5680_v48, %v3100_v28 }
 0x31a   : > { %v4505_v49 = vmul.f32 -1.442695, %v3143_v27 }
 0x31b   : > { %v3052_v9 = vpop.f32.mrf.mxu2  ;;  %v2957_v12 = vpop.f32.mrf.mxu0 }
 0x31c   : > { %v3101_v10 = vpop.f32.mrf.mxu3  ;;  %v3053_v50 = vadd.f32 %v3052_v9, %v3004_v7  ;;  %v3006_v43 = vpop.f32.mrf.mxu1  ;;  %v2958_v13 = vadd.f32 %v2957_v12, %v5637_v33  ;;  %4781 = vpow2.f32 %v4505_v49 }
 0x31e   : > { %v3102_v16 = vadd.f32 %v3101_v10, %v3053_v50  ;;  %v3007_v56 = vadd.f32 %v3006_v43, %v2958_v13 }
 0x320   : > { %v3144_v54 = vadd.f32 %v5680_v48, %v3102_v16 }
 0x322   : > { %v4506_v20 = vmul.f32 -1.442695, %v3144_v54  ;;  %v4782_v31 = vpop.eup %4781 }
 0x323   : > { %v3055_v21 = vpop.f32.mrf.mxu2  ;;  %v2959_v23 = vpop.f32.mrf.mxu0  ;;  %v5688_v33 = vadd.f32 1.0, %v4782_v31 }
 0x324   : > { %v3104_v32 = vpop.f32.mrf.mxu3  ;;  %v3056_v22 = vadd.f32 %v3055_v21, %v3007_v56  ;;  %v3008_v1 = vpop.f32.mrf.mxu1  ;;  %v2960_v60 = vadd.f32 %v2959_v23, %v5640_v57  ;;  %4783 = vpow2.f32 %v4506_v20 }
 0x325   : > { %4785 = vrcp.f32 %v5688_v33  ;;  %vm3228_vm1 = vweird.f32 %v5688_v33 }
 0x326   : > { %v3105_v24 = vadd.f32 %v3104_v32, %v3056_v22  ;;  %v3009_v36 = vadd.f32 %v3008_v1, %v2960_v60 }
 0x328   : > { %v3145_v14 = vadd.f32 %v5680_v48, %v3105_v24 }
 0x32a   : > { %v4507_v35 = vmul.f32 -1.442695, %v3145_v14  ;;  %v4784_v5 = vpop.eup %4783 }
 0x32b   : > { %v3057_v39 = vpop.f32.mrf.mxu2  ;;  %v2962_v41 = vpop.f32.mrf.mxu0  ;;  %v5693_v18 = vadd.f32 1.0, %v4784_v5  ;;  %v3467_v5 = vld [vmem:[%s5737_s27] sm:$0xff] }
 0x32c   : > { %v3106_v15 = vpop.f32.mrf.mxu3  ;;  %v3058_v51 = vadd.f32 %v3057_v39, %v3009_v36  ;;  %v3011_v17 = vpop.f32.mrf.mxu1  ;;  %v2963_v57 = vadd.f32 %v2962_v41, %v5643_v4  ;;  %4787 = vpow2.f32 %v4507_v35  ;;  %v3234_v41 = vand.u32 2147483648, %v5688_v33 }
 0x32d   : > { %v5696_v52 = vpop.eup %4785  ;;  %4789 = vrcp.f32 %v5693_v18  ;;  %vm3243_vm5 = vweird.f32 %v5693_v18 }
 0x32e   : > { %v3107_v44 = vadd.f32 %v3106_v15, %v3058_v51  ;;  %v3012_v45 = vadd.f32 %v3011_v17, %v2963_v57  ;;  %v3224_v4 = vmul.f32 %v5696_v52, %v5688_v33  ;;  %vm3229_vm0 = vweird.f32 %v5696_v52 }
 0x32f   : > { %v3232_v51 = vand.u32 2147483647, %v5688_v33  ;;  %vm5733_vm2 = vmor %vm3228_vm1, %vm3229_vm0 }
 0x330   : > { %v3146_v61 = vadd.f32 %v5680_v48, %v3107_v44  ;;  %v3225_v7 = vsub.f32 1.0, %v3224_v4  ;;  %v3485_v44 = vld [vmem:[%s5740_s29] sm:$0xff]  ;;  %v3468_v4 = vld [vmem:[%s5737_s27 + $0x50] sm:$0xff] }
 0x331   : > { %vm3233_vm4 = vcmp.eq.f32.partialorder %v3232_v51, 8.507059e+37 }
 0x332   : > { %v4508_v46 = vmul.f32 -1.442695, %v3146_v61  ;;  %v4788_v53 = vpop.eup %4787  ;;  %v3226_v13 = vmul.f32 %v5696_v52, %v3225_v7 }
 0x333   : > { %v3060_v47 = vpop.f32.mrf.mxu2  ;;  %v2964_v30 = vpop.f32.mrf.mxu0  ;;  %v5701_v40 = vadd.f32 1.0, %v4788_v53 }
 0x334   : > { %v3109_v25 = vpop.f32.mrf.mxu3  ;;  %v3013_v26 = vpop.f32.mrf.mxu1  ;;  %v3061_v3 = vadd.f32 %v3060_v47, %v3012_v45  ;;  %4791 = vpow2.f32 %v4508_v46  ;;  %v2965_v63 = vadd.f32 %v2964_v30, %v5646_v29  ;;  %v3227_v24 = vadd.f32 %v5696_v52, %v3226_v13  ;;  %v3469_v13 = vld [vmem:[%s5737_s27 + $0xa0] sm:$0xff] }
 0x335   : > { %v5705_v55 = vpop.eup %4789  ;;  %4793 = vrcp.f32 %v5701_v40  ;;  %v3501_v30 = vsub.f32 %v3467_v5, %v3485_v44  ;;  %vm3258_vm9 = vweird.f32 %v5701_v40 }
 0x336   : > { %v3110_v59 = vadd.f32 %v3109_v25, %v3061_v3  ;;  %v3014_v12 = vadd.f32 %v3013_v26, %v2965_v63  ;;  %v3239_v43 = vmul.f32 %v5705_v55, %v5693_v18  ;;  %v3231_v57 = vsel %vm5733_vm2, %v5696_v52, %v3227_v24 }
 0x337   : > { %vm3244_vm3 = vweird.f32 %v5705_v55  ;;  %v3235_v25 = vor.u32 1.1754944e-38, %v3234_v41  ;;  %v3249_v26 = vand.u32 2147483648, %v5693_v18  ;;  %v3247_v3 = vand.u32 2147483647, %v5693_v18 }
 0x338   : > { %v3147_v11 = vadd.f32 %v5680_v48, %v3110_v59  ;;  %v3240_v21 = vsub.f32 1.0, %v3239_v43  ;;  %v3486_v59 = vld [vmem:[%s5740_s29 + $0x50] sm:$0xff]  ;;  %vm5759_vm6 = vmor %vm3243_vm5, %vm3244_vm3 }
 0x339   : > { %v3236_v7 = vsel %vm3233_vm4, %v3235_v25, %v3231_v57  ;;  %vm3248_vm7 = vcmp.eq.f32.partialorder %v3247_v3, 8.507059e+37 }
 0x33a   : > { %v4509_v27 = vmul.f32 -1.442695, %v3147_v11  ;;  %v4792_v50 = vpop.eup %4791  ;;  %v3241_v39 = vmul.f32 %v5705_v55, %v3240_v21 }
 0x33b   : > { %v3062_v2 = vpop.f32.mrf.mxu2  ;;  %v2967_v9 = vpop.f32.mrf.mxu0  ;;  %v5715_v16 = vadd.f32 1.0, %v4792_v50 }
 0x33c   : > { %v3111_v28 = vpop.f32.mrf.mxu3  ;;  %v3016_v10 = vpop.f32.mrf.mxu1  ;;  %4795 = vpow2.f32 %v4509_v27  ;;  %v3063_v29 = vadd.f32 %v3062_v2, %v3014_v12  ;;  %v2968_v49 = vadd.f32 %v2967_v9, %v5649_v37  ;;  %v3242_v45 = vadd.f32 %v5705_v55, %v3241_v39 }
 0x33d   : > { %v5717_v54 = vpop.eup %4793  ;;  %4797 = vrcp.f32 %v5715_v16  ;;  %vm3273_vm13 = vweird.f32 %v5715_v16 }
 0x33e   : > { %v3112_v56 = vadd.f32 %v3111_v28, %v3063_v29  ;;  %v3017_v20 = vadd.f32 %v3016_v10, %v2968_v49  ;;  %v3254_v31 = vmul.f32 %v5717_v54, %v5701_v40  ;;  %v3246_v50 = vsel %vm5759_vm6, %v5705_v55, %v3242_v45  ;;  %v5781_v55 = vld [vmem:[%s5737_s27 + $0xf0] sm:$0xff] }
 0x33f   : > { %v3250_v29 = vor.u32 1.1754944e-38, %v3249_v26  ;;  %v3502_v49 = vsub.f32 %v3468_v4, %v3486_v59  ;;  %vm3259_vm8 = vweird.f32 %v5717_v54 }
 0x340   : > { %v3148_v32 = vadd.f32 %v5680_v48, %v3112_v56  ;;  %v3255_v33 = vsub.f32 1.0, %v3254_v31  ;;  %vm5800_vm10 = vmor %vm3258_vm9, %vm3259_vm8 }
 0x342   : > { %v4796_v1 = vpop.eup %4795  ;;  %v4510_v36 = vmul.f32 -1.442695, %v3148_v32  ;;  %v3256_v9 = vmul.f32 %v5717_v54, %v3255_v33  ;;  %v3517_v32 = vmul.f32 %v3501_v30, %v3236_v7  ;;  %v5812_v30 = vld [vmem:[%s5740_s29 + $0x140] sm:$0xff] }
 0x343   : > { %v3065_v22 = vpop.f32.mrf.mxu2  ;;  %v2969_v37 = vpop.f32.mrf.mxu0  ;;  %v5726_v14 = vadd.f32 1.0, %v4796_v1 }
 0x344   : > { %v3114_v23 = vpop.f32.mrf.mxu3  ;;  %v3018_v60 = vpop.f32.mrf.mxu1  ;;  %v3066_v35 = vadd.f32 %v3065_v22, %v3017_v20  ;;  %v2970_v15 = vadd.f32 %v2969_v37, %v5652_v62  ;;  %4799 = vpow2.f32 %v4510_v36  ;;  %v3264_v20 = vand.u32 2147483648, %v5701_v40  ;;  %v5778_v22 = vld [vmem:[%s5740_s29 + $0xa0] sm:$0xff] }
 0x345   : > { %4801 = vrcp.f32 %v5726_v14  ;;  %v5747_v61 = vpop.eup %4797  ;;  %v3257_v1 = vadd.f32 %v5717_v54, %v3256_v9  ;;  %v3262_v36 = vand.u32 2147483647, %v5701_v40  ;;  %v5796_v17 = vadd.f32 %v3517_v32, %v3485_v44  ;;  %v5809_v44 = vld [vmem:[%s5737_s27 + $0x140] sm:$0xff]  ;;  %v5833_v9 = vld [vmem:[%s5737_s27 + $0x190] sm:$0xff] }
 0x346   : > { %v3115_v62 = vadd.f32 %v3114_v23, %v3066_v35  ;;  %v3019_v47 = vadd.f32 %v3018_v60, %v2970_v15  ;;  %v3269_v18 = vmul.f32 %v5747_v61, %v5715_v16  ;;  %v5784_v23 = vld [vmem:[%s5740_s29 + $0xf0] sm:$0xff]  ;;  %v3503_v35 = vsub.f32 %v3469_v13, %v5778_v22 }
 0x347   : > { %v3504_v39 = vsub.f32 %v5781_v55, %v5784_v23  ;;  %vm3263_vm11 = vcmp.eq.f32.partialorder %v3262_v36, 8.507059e+37  ;;  %vm3274_vm12 = vweird.f32 %v5747_v61  ;;  %vm3288_vm0 = vweird.f32 %v5726_v14 }
 0x348   : > { %v3149_v46 = vadd.f32 %v5680_v48, %v3115_v62  ;;  %v3270_v24 = vsub.f32 1.0, %v3269_v18  ;;  %v5836_v18 = vld [vmem:[%s5740_s29 + $0x190] sm:$0xff]  ;;  %vm5849_vm15 = vmor %vm3273_vm13, %vm3274_vm12 }
 0x34a   : > { %v4511_v63 = vmul.f32 -1.442695, %v3149_v46  ;;  %v4800_v10 = vpop.eup %4799  ;;  %v3261_v46 = vsel %vm5800_vm10, %v5717_v54, %v3257_v1  ;;  %v3271_v25 = vmul.f32 %v5747_v61, %v3270_v24  ;;  %v3277_v54 = vand.u32 2147483647, %v5715_v16 }
 0x34b   : > { %v3067_v52 = vpop.f32.mrf.mxu2  ;;  %v2972_v2 = vpop.f32.mrf.mxu0  ;;  %v5773_v56 = vadd.f32 1.0, %v4800_v10  ;;  %v3506_v24 = vsub.f32 %v5833_v9, %v5836_v18 }
 0x34c   : > { %v3116_v53 = vpop.f32.mrf.mxu3  ;;  %v3068_v11 = vadd.f32 %v3067_v52, %v3019_v47  ;;  %v3021_v28 = vpop.f32.mrf.mxu1  ;;  %4803 = vpow2.f32 %v4511_v63  ;;  %v2973_v12 = vadd.f32 %v2972_v2, %v5655_v8  ;;  %v3251_v8 = vsel %vm3248_vm7, %v3250_v29, %v3246_v50 }
 0x34d   : > { %v5770_v43 = vpop.eup %4801  ;;  %4805 = vrcp.f32 %v5773_v56  ;;  %v3518_v5 = vmul.f32 %v3502_v49, %v3251_v8  ;;  %v3265_v47 = vor.u32 1.1754944e-38, %v3264_v20  ;;  %v3279_v63 = vand.u32 2147483648, %v5715_v16 }
 0x34e   : > { %v3117_v21 = vadd.f32 %v3116_v53, %v3068_v11  ;;  %v3284_v37 = vmul.f32 %v5770_v43, %v5726_v14  ;;  %v3022_v31 = vadd.f32 %v3021_v28, %v2973_v12  ;;  %v3505_v28 = vsub.f32 %v5809_v44, %v5812_v30 }
 0x34f   : > { %v5822_v11 = vadd.f32 %v3518_v5, %v3486_v59  ;;  %v3266_v2 = vsel %vm3263_vm11, %v3265_v47, %v3261_v46  ;;  %v3272_v27 = vadd.f32 %v5747_v61, %v3271_v25  ;;  %vm5841_vm14 = vcmp.eq.f32.partialorder %v3277_v54, 8.507059e+37 }
 0x350   : > { %v3150_v60 = vadd.f32 %v5680_v48, %v3117_v21  ;;  %v3285_v52 = vsub.f32 1.0, %v3284_v37  ;;  %v3519_v29 = vmul.f32 %v3503_v35, %v3266_v2  ;;  %v3280_v13 = vor.u32 1.1754944e-38, %v3279_v63 }
 0x351   : > { %v3572_v1 = vmul.f32 %v5822_v11, %v5822_v11  ;;  %v3276_v35 = vsel %vm5849_vm15, %v5747_v61, %v3272_v27  ;;  %vm3289_vm1 = vweird.f32 %v5770_v43  ;;  %v3294_v5 = vand.u32 2147483648, %v5726_v14 }
 0x352   : > { %v4804_v41 = vpop.eup %4803  ;;  %v4512_v40 = vmul.f32 -1.442695, %v3150_v60  ;;  %v3286_v10 = vmul.f32 %v5770_v43, %v3285_v52  ;;  %v3549_v25 = vadd.f32 %v5822_v11, %v5796_v17  ;;  %vm5882_vm2 = vmor %vm3288_vm0, %vm3289_vm1  ;;  %vm3303_vm4 = vweird.f32 %v5773_v56 }
 0x353   : > { %v3070_v15 = vpop.f32.mrf.mxu2  ;;  %v2974_v33 = vpop.f32.mrf.mxu0  ;;  %v5814_v26 = vadd.f32 1.0, %v4804_v41 }
 0x354   : > { %v3119_v51 = vpop.f32.mrf.mxu3  ;;  %v3071_v57 = vadd.f32 %v3070_v15, %v3022_v31  ;;  %v3023_v45 = vpop.f32.mrf.mxu1  ;;  %4807 = vpow2.f32 %v4512_v40  ;;  %v2975_v3 = vadd.f32 %v2974_v33, %v5658_v34  ;;  %v3571_v34 = vmul.f32 %v5796_v17, %v5796_v17 }
 0x355   : > { %v5817_v4 = vpop.eup %4805  ;;  %4809 = vrcp.f32 %v5814_v26  ;;  %v3287_v41 = vadd.f32 %v5770_v43, %v3286_v10  ;;  %v5870_v40 = vadd.f32 %v3519_v29, %v5778_v22  ;;  %v3281_v33 = vsel %vm5841_vm14, %v3280_v13, %v3276_v35 }
 0x356   : > { %v3120_v53 = vadd.f32 %v3119_v51, %v3071_v57  ;;  %v3299_v7 = vmul.f32 %v5817_v4, %v5773_v56  ;;  %v3024_v12 = vadd.f32 %v3023_v45, %v2975_v3  ;;  %v3292_v57 = vand.u32 2147483647, %v5726_v14 }
 0x357   : > { %v3309_v45 = vand.u32 2147483648, %v5773_v56  ;;  %v3587_v52 = vadd.f32 %v3572_v1, %v3571_v34  ;;  %vm3304_vm3 = vweird.f32 %v5817_v4  ;;  %v3295_v3 = vor.u32 1.1754944e-38, %v3294_v5  ;;  %v5939_v5 = vld [vmem:[%s5740_s29 + $0x230] sm:$0xff] }
 0x358   : > { %v3151_v59 = vadd.f32 %v5680_v48, %v3120_v53  ;;  %v3300_v50 = vsub.f32 1.0, %v3299_v7  ;;  %v3520_v14 = vmul.f32 %v3504_v39, %v3281_v33  ;;  %v3307_v7 = vand.u32 2147483647, %v5773_v56  ;;  %vm5900_vm6 = vmor %vm3303_vm4, %vm3304_vm3 }
 0x359   : > { %vm3293_vm5 = vcmp.eq.f32.partialorder %v3292_v57, 8.507059e+37  ;;  %vm3318_vm9 = vweird.f32 %v5814_v26  ;;  %v3550_v57 = vadd.f32 %v3549_v25, %v5870_v40 }
 0x35a   : > { %v4513_v21 = vmul.f32 -1.442695, %v3151_v59  ;;  %v4808_v8 = vpop.eup %4807  ;;  %v3301_v15 = vmul.f32 %v5817_v4, %v3300_v50  ;;  %v3310_v50 = vor.u32 1.1754944e-38, %v3309_v45  ;;  %vm3308_vm8 = vcmp.eq.f32.partialorder %v3307_v7, 8.507059e+37 }
 0x35b   : > { %v3072_v32 = vpop.f32.mrf.mxu2  ;;  %v2977_v60 = vpop.f32.mrf.mxu0  ;;  %v5862_v51 = vadd.f32 1.0, %v4808_v8  ;;  %v5915_v8 = vld [vmem:[%s5740_s29 + $0x1e0] sm:$0xff] }
 0x35c   : > { %v3121_v20 = vpop.f32.mrf.mxu3  ;;  %v3073_v37 = vadd.f32 %v3072_v32, %v3024_v12  ;;  %v3026_v31 = vpop.f32.mrf.mxu1  ;;  %4811 = vpow2.f32 %v4513_v21  ;;  %v2978_v61 = vadd.f32 %v2977_v60, %v5661_v42  ;;  %v3302_v53 = vadd.f32 %v5817_v4, %v3301_v15 }
 0x35d   : > { %v5856_v36 = vpop.eup %4809  ;;  %4813 = vrcp.f32 %v5862_v51  ;;  %v3291_v42 = vsel %vm5882_vm2, %v5770_v43, %v3287_v41  ;;  %v3573_v43 = vmul.f32 %v5870_v40, %v5870_v40  ;;  %v5936_v41 = vld [vmem:[%s5737_s27 + $0x230] sm:$0xff]  ;;  %vm3333_vm13 = vweird.f32 %v5862_v51 }
 0x35e   : > { %v3314_v62 = vmul.f32 %v5856_v36, %v5814_v26  ;;  %v3122_v47 = vadd.f32 %v3121_v20, %v3073_v37  ;;  %v3027_v34 = vadd.f32 %v3026_v31, %v2978_v61  ;;  %v3296_v56 = vsel %vm3293_vm5, %v3295_v3, %v3291_v42  ;;  %v3473_v20 = vld [vmem:[%s5737_s27 + $0x1e0] sm:$0xff] }
 0x35f   : > { %v3306_v49 = vsel %vm5900_vm6, %v5817_v4, %v3302_v53  ;;  %vm3319_vm7 = vweird.f32 %v5856_v36  ;;  %v5921_v37 = vadd.f32 %v3520_v14, %v5784_v23  ;;  %v3324_v4 = vand.u32 2147483648, %v5814_v26 }
 0x360   : > { %v3315_v46 = vsub.f32 1.0, %v3314_v62  ;;  %v3152_v63 = vadd.f32 %v5680_v48, %v3122_v47  ;;  %v3311_v60 = vsel %vm3308_vm8, %v3310_v50, %v3306_v49  ;;  %v3322_v31 = vand.u32 2147483647, %v5814_v26  ;;  %vm5930_vm10 = vmor %vm3318_vm9, %vm3319_vm7 }
 0x361   : > { %v3521_v15 = vmul.f32 %v3505_v28, %v3296_v56  ;;  %v3507_v23 = vsub.f32 %v3473_v20, %v5915_v8  ;;  %v3588_v61 = vadd.f32 %v3587_v52, %v3573_v43  ;;  %v3522_v33 = vmul.f32 %v3506_v24, %v3311_v60  ;;  %v5994_v60 = vld [vmem:[%s5740_s29 + $0x280] sm:$0xff] }
 0x362   : > { %v3316_v54 = vmul.f32 %v5856_v36, %v3315_v46  ;;  %v4812_v2 = vpop.eup %4811  ;;  %v4514_v13 = vmul.f32 -1.442695, %v3152_v63  ;;  %v3325_v45 = vor.u32 1.1754944e-38, %v3324_v4  ;;  %v3574_v25 = vmul.f32 %v5921_v37, %v5921_v37 }
 0x363   : > { %v3075_v27 = vpop.f32.mrf.mxu2  ;;  %v5904_v55 = vadd.f32 1.0, %v4812_v2  ;;  %v2979_v39 = vpop.f32.mrf.mxu0  ;;  %vm3323_vm11 = vcmp.eq.f32.partialorder %v3322_v31, 8.507059e+37  ;;  %v5957_v52 = vadd.f32 %v3521_v15, %v5812_v30  ;;  %v3337_v24 = vand.u32 2147483647, %v5862_v51 }
 0x364   : > { %v3124_v59 = vpop.f32.mrf.mxu3  ;;  %v3028_v12 = vpop.f32.mrf.mxu1  ;;  %v3076_v21 = vadd.f32 %v3075_v27, %v3027_v34  ;;  %v3317_v32 = vadd.f32 %v5856_v36, %v3316_v54  ;;  %v2980_v16 = vadd.f32 %v2979_v39, %v5664_v6  ;;  %v5966_v27 = vadd.f32 %v3522_v33, %v5836_v18 }
 0x365   : > { %v5906_v29 = vpop.eup %4813  ;;  %4815 = vrcp.f32 %v5904_v55  ;;  %v3339_v30 = vand.u32 2147483648, %v5862_v51  ;;  %v3551_v43 = vadd.f32 %v3550_v57, %v5921_v37  ;;  %v3589_v39 = vadd.f32 %v3588_v61, %v3574_v25  ;;  %v6002_v57 = vld [vmem:[%s5740_s29 + $0x2d0] sm:$0xff] }
 0x366   : > { %v3329_v1 = vmul.f32 %v5906_v29, %v5862_v51  ;;  %4817 = vpow2.f32 %v4514_v13  ;;  %v3125_v62 = vadd.f32 %v3124_v59, %v3076_v21  ;;  %v3321_v26 = vsel %vm5930_vm10, %v5856_v36, %v3317_v32 }
 0x367   : > { %v3029_v28 = vadd.f32 %v3028_v12, %v2980_v16  ;;  %v3508_v36 = vsub.f32 %v5936_v41, %v5939_v5  ;;  %v3326_v9 = vsel %vm3323_vm11, %v3325_v45, %v3321_v26  ;;  %vm3334_vm12 = vweird.f32 %v5906_v29 }
 0x368   : > { %v3330_v35 = vsub.f32 1.0, %v3329_v1  ;;  %v3153_v46 = vadd.f32 %v5680_v48, %v3125_v62  ;;  %v3575_v12 = vmul.f32 %v5957_v52, %v5957_v52  ;;  %vm5977_vm14 = vmor %vm3333_vm13, %vm3334_vm12  ;;  %v3576_v21 = vmul.f32 %v5966_v27, %v5966_v27  ;;  %v5999_v62 = vld [vmem:[%s5737_s27 + $0x2d0] sm:$0xff] }
 0x369   : > { %vm3338_vm15 = vcmp.eq.f32.partialorder %v3337_v24, 8.507059e+37  ;;  %v3340_v32 = vor.u32 1.1754944e-38, %v3339_v30  ;;  %vm3348_vm0 = vweird.f32 %v5904_v55  ;;  %v3354_v41 = vand.u32 2147483648, %v5904_v55 }
 0x36a   : > { %v3331_v44 = vmul.f32 %v5906_v29, %v3330_v35  ;;  %v4515_v54 = vmul.f32 -1.442695, %v3153_v46  ;;  %v3552_v33 = vadd.f32 %v3551_v43, %v5957_v52  ;;  %v3590_v45 = vadd.f32 %v3589_v39, %v3575_v12 }
 0x36b   : > { %v3077_v47 = vpop.f32.mrf.mxu2  ;;  %v2982_v42 = vpop.f32.mrf.mxu0  ;;  %v3355_v24 = vor.u32 1.1754944e-38, %v3354_v41 }
 0x36c   : > { %v3126_v22 = vpop.f32.mrf.mxu3  ;;  %v3078_v53 = vadd.f32 %v3077_v47, %v3029_v28  ;;  %v5954_v3 = vpop.eup %4815  ;;  %v3332_v2 = vadd.f32 %v5906_v29, %v3331_v44  ;;  %v2983_v7 = vadd.f32 %v2982_v42, %v5667_v0  ;;  %4819 = vpow2.f32 %v4515_v54  ;;  %v6027_v42 = vld [vmem:[%s5737_s27 + $0x320] sm:$0xff] }
 0x36d   : > { %v3031_v63 = vpop.f32.mrf.mxu1  ;;  %v3344_v14 = vmul.f32 %v5954_v3, %v5904_v55  ;;  %v4818_v34 = vpop.eup %4817  ;;  %v3523_v0 = vmul.f32 %v3507_v23, %v3326_v9  ;;  %vm3349_vm1 = vweird.f32 %v5954_v3  ;;  %v3352_v23 = vand.u32 2147483647, %v5904_v55  ;;  %v6030_v55 = vld [vmem:[%s5740_s29 + $0x320] sm:$0xff] }
 0x36e   : > { %v3127_v59 = vadd.f32 %v3126_v22, %v3078_v53  ;;  %v5971_v50 = vadd.f32 1.0, %v4818_v34  ;;  %v3336_v51 = vsel %vm5977_vm14, %v5906_v29, %v3332_v2  ;;  %v3032_v13 = vadd.f32 %v3031_v63, %v2983_v7  ;;  %v3475_v29 = vld [vmem:[%s5737_s27 + $0x280] sm:$0xff]  ;;  %vm6015_vm2 = vmor %vm3348_vm0, %vm3349_vm1 }
 0x36f   : > { %v3345_v10 = vsub.f32 1.0, %v3344_v14  ;;  %v3341_v6 = vsel %vm3338_vm15, %v3340_v32, %v3336_v51  ;;  %v6005_v26 = vadd.f32 %v3523_v0, %v5915_v8  ;;  %v3509_v47 = vsub.f32 %v3475_v29, %v5994_v60 }
 0x370   : > { %v3154_v56 = vadd.f32 %v5680_v48, %v3127_v59  ;;  %4821 = vrcp.f32 %v5971_v50  ;;  %v3524_v25 = vmul.f32 %v3508_v36, %v3341_v6  ;;  %v3510_v53 = vsub.f32 %v5999_v62, %v6002_v57 }
 0x371   : > { %v3346_v49 = vmul.f32 %v5954_v3, %v3345_v10  ;;  %v3553_v9 = vadd.f32 %v3552_v33, %v5966_v27  ;;  %v3591_v63 = vadd.f32 %v3590_v45, %v3576_v21  ;;  %vm3353_vm3 = vcmp.eq.f32.partialorder %v3352_v23, 8.507059e+37 }
 0x372   : > { %v4516_v20 = vmul.f32 -1.442695, %v3154_v56  ;;  %v4820_v15 = vpop.eup %4819  ;;  %v3511_v30 = vsub.f32 %v6027_v42, %v6030_v55  ;;  %v6040_v39 = vadd.f32 %v3524_v25, %v5939_v5  ;;  %v3369_v12 = vand.u32 2147483648, %v5971_v50 }
 0x373   : > { %v3080_v1 = vpop.f32.mrf.mxu2  ;;  %v3347_v4 = vadd.f32 %v5954_v3, %v3346_v49  ;;  %v2984_v35 = vpop.f32.mrf.mxu0  ;;  %v6007_v44 = vadd.f32 1.0, %v4820_v15  ;;  %v3367_v49 = vand.u32 2147483647, %v5971_v50  ;;  %v3554_v21 = vadd.f32 %v3553_v9, %v6005_v26 }
 0x374   : > { %v3129_v16 = vpop.f32.mrf.mxu3  ;;  %v3081_v31 = vadd.f32 %v3080_v1, %v3032_v13  ;;  %4823 = vpow2.f32 %v4516_v20  ;;  %v2985_v61 = vadd.f32 %v2984_v35, %v5670_v38  ;;  %vm3363_vm5 = vweird.f32 %v5971_v50 }
 0x375   : > { %v3033_v8 = vpop.f32.mrf.mxu1  ;;  %v3351_v38 = vsel %vm6015_vm2, %v5954_v3, %v3347_v4  ;;  %4825 = vrcp.f32 %v6007_v44  ;;  %v3577_v3 = vmul.f32 %v6005_v26, %v6005_v26  ;;  %v3555_v4 = vadd.f32 %v3554_v21, %v6040_v39 }
 0x376   : > { %v3130_v28 = vadd.f32 %v3129_v16, %v3081_v31  ;;  %v4822_v22 = vpop.eup %4821  ;;  %v3034_v2 = vadd.f32 %v3033_v8, %v2985_v61  ;;  %v3356_v7 = vsel %vm3353_vm3, %v3355_v24, %v3351_v38  ;;  %v3578_v29 = vmul.f32 %v6040_v39, %v6040_v39 }
 0x377   : > { %v3359_v54 = vmul.f32 %v4822_v22, %v5971_v50  ;;  %vm3364_vm4 = vweird.f32 %v4822_v22  ;;  %v3592_v32 = vadd.f32 %v3591_v63, %v3577_v3  ;;  %v3525_v20 = vmul.f32 %v3509_v47, %v3356_v7  ;;  %v3496_v7 = vld [vmem:[%s5740_s29 + $0x370] sm:$0xff] }
 0x378   : > { %v3155_v36 = vadd.f32 %v5680_v48, %v3130_v28  ;;  %vm3365_vm6 = vmor %vm3363_vm5, %vm3364_vm4  ;;  %v3370_v31 = vor.u32 1.1754944e-38, %v3369_v12  ;;  %vm3368_vm7 = vcmp.eq.f32.partialorder %v3367_v49, 8.507059e+37  ;;  %v3382_v23 = vand.u32 2147483647, %v6007_v44 }
 0x379   : > { %v3360_v34 = vsub.f32 1.0, %v3359_v54  ;;  %v6056_v50 = vadd.f32 %v3525_v20, %v5994_v60  ;;  %vm3378_vm9 = vweird.f32 %v6007_v44 }
 0x37a   : > { %v4824_v14 = vpop.eup %4823  ;;  %v4517_v59 = vmul.f32 -1.442695, %v3155_v36  ;;  %vm3383_vm11 = vcmp.eq.f32.partialorder %v3382_v23, 8.507059e+37 }
 0x37b   : > { %v3082_v43 = vpop.f32.mrf.mxu2  ;;  %v6043_v0 = vadd.f32 1.0, %v4824_v14  ;;  %v2987_v56 = vpop.f32.mrf.mxu0  ;;  %v3361_v51 = vmul.f32 %v4822_v22, %v3360_v34  ;;  %v3579_v36 = vmul.f32 %v6056_v50, %v6056_v50  ;;  %v3478_v14 = vld [vmem:[%s5737_s27 + $0x370] sm:$0xff] }
 0x37c   : > { %v3131_v10 = vpop.f32.mrf.mxu3  ;;  %v3083_v18 = vadd.f32 %v3082_v43, %v3034_v2  ;;  %4827 = vpow2.f32 %v4517_v59  ;;  %v4826_v13 = vpop.eup %4825  ;;  %v2988_v16 = vadd.f32 %v2987_v56, %v5673_v19  ;;  %v3384_v19 = vand.u32 2147483648, %v6007_v44 }
 0x37d   : > { %4829 = vrcp.f32 %v6043_v0  ;;  %v3362_v5 = vadd.f32 %v4822_v22, %v3361_v51  ;;  %v3374_v1 = vmul.f32 %v4826_v13, %v6007_v44  ;;  %v3036_v41 = vpop.f32.mrf.mxu1  ;;  %vm3379_vm8 = vweird.f32 %v4826_v13 }
 0x37e   : > { %v3132_v35 = vadd.f32 %v3131_v10, %v3083_v18  ;;  %v3037_v46 = vadd.f32 %v3036_v41, %v2988_v16  ;;  %vm3380_vm10 = vmor %vm3378_vm9, %vm3379_vm8  ;;  %v3385_v63 = vor.u32 1.1754944e-38, %v3384_v19  ;;  %v3556_v44 = vadd.f32 %v3555_v4, %v6056_v50 }
 0x37f   : > { %v3366_v15 = vsel %vm3365_vm6, %v4822_v22, %v3362_v5  ;;  %v3375_v6 = vsub.f32 1.0, %v3374_v1  ;;  %v3593_v22 = vadd.f32 %v3592_v32, %v3578_v29  ;;  %v3399_v10 = vand.u32 2147483648, %v6043_v0 }
 0x380   : > { %v3371_v62 = vsel %vm3368_vm7, %v3370_v31, %v3366_v15  ;;  %v3156_v28 = vadd.f32 %v5680_v48, %v3132_v35  ;;  %vm3393_vm13 = vweird.f32 %v6043_v0  ;;  %v3512_v49 = vsub.f32 %v3478_v14, %v3496_v7 }
 0x381   : > { %v3526_v33 = vmul.f32 %v3510_v53, %v3371_v62  ;;  %v3376_v45 = vmul.f32 %v4826_v13, %v3375_v6  ;;  %v3594_v51 = vadd.f32 %v3593_v22, %v3579_v36 }
 0x382   : > { %v4828_v61 = vpop.eup %4827  ;;  %v4518_v60 = vmul.f32 -1.442695, %v3156_v28  ;;  %v3479_v28 = vld [vmem:[%s5737_s27 + $0x3c0] sm:$0xff] }
 0x383   : > { %v3085_v47 = vpop.f32.mrf.mxu2  ;;  %v4830_v8 = vpop.eup %4829  ;;  %v6061_v25 = vadd.f32 1.0, %v4828_v61  ;;  %v6064_v38 = vadd.f32 %v3526_v33, %v6002_v57  ;;  %v3377_v9 = vadd.f32 %v4826_v13, %v3376_v45  ;;  %v3397_v57 = vand.u32 2147483647, %v6043_v0  ;;  %v3497_v61 = vld [vmem:[%s5740_s29 + $0x3c0] sm:$0xff] }
 0x384   : > { %v3389_v24 = vmul.f32 %v4830_v8, %v6043_v0  ;;  %v3086_v53 = vadd.f32 %v3085_v47, %v3037_v46  ;;  %v3134_v54 = vpop.f32.mrf.mxu3  ;;  %v2989_v34 = vpop.f32.mrf.mxu0  ;;  %vm3394_vm12 = vweird.f32 %v4830_v8  ;;  %v3400_v0 = vor.u32 1.1754944e-38, %v3399_v10 }
 0x385   : > { %4831 = vrcp.f32 %v6061_v25  ;;  %v3381_v3 = vsel %vm3380_vm10, %v4826_v13, %v3377_v9  ;;  %v3580_v59 = vmul.f32 %v6064_v38, %v6064_v38  ;;  %v2990_v13 = vadd.f32 %v2989_v34, %v5676_v58  ;;  %v3038_v1 = vpop.f32.mrf.mxu1  ;;  %vm3395_vm14 = vmor %vm3393_vm13, %vm3394_vm12 }
 0x386   : > { %v3390_v2 = vsub.f32 1.0, %v3389_v24  ;;  %v3386_v43 = vsel %vm3383_vm11, %v3385_v63, %v3381_v3  ;;  %4833 = vpow2.f32 %v4518_v60  ;;  %v3135_v56 = vadd.f32 %v3134_v54, %v3086_v53 }
 0x387   : > { %v3527_v12 = vmul.f32 %v3511_v30, %v3386_v43  ;;  %v3557_v21 = vadd.f32 %v3556_v44, %v6064_v38  ;;  %v3595_v16 = vadd.f32 %v3594_v51, %v3580_v59  ;;  %vm3398_vm15 = vcmp.eq.f32.partialorder %v3397_v57, 8.507059e+37  ;;  %v3498_v51 = vld [vmem:[%s5740_s29 + $0x410] sm:$0xff] }
 0x388   : > { %v3391_v18 = vmul.f32 %v4830_v8, %v3390_v2  ;;  %v3157_v5 = vadd.f32 %v5680_v48, %v3135_v56  ;;  %v3039_v4 = vadd.f32 %v3038_v1, %v2990_v13  ;;  %v3412_v46 = vand.u32 2147483647, %v6061_v25  ;;  %v3480_v56 = vld [vmem:[%s5737_s27 + $0x410] sm:$0xff] }
 0x389   : > { %v6084_v32 = vadd.f32 %v3527_v12, %v6030_v55  ;;  %v3414_v47 = vand.u32 2147483648, %v6061_v25  ;;  %v3513_v9 = vsub.f32 %v3479_v28, %v3497_v61  ;;  %vm3408_vm1 = vweird.f32 %v6061_v25 }
 0x38a   : > { %v3392_v20 = vadd.f32 %v4830_v8, %v3391_v18  ;;  %v4519_v6 = vmul.f32 -1.442695, %v3157_v5  ;;  %vm3413_vm3 = vcmp.eq.f32.partialorder %v3412_v46, 8.507059e+37 }
 0x38b   : > { %v3087_v42 = vpop.f32.mrf.mxu2  ;;  %v4832_v30 = vpop.eup %4831  ;;  %v3558_v58 = vadd.f32 %v3557_v21, %v6084_v32  ;;  %v3581_v29 = vmul.f32 %v6084_v32, %v6084_v32  ;;  %v3415_v63 = vor.u32 1.1754944e-38, %v3414_v47 }
 0x38c   : > { %v3396_v55 = vsel %vm3395_vm14, %v4830_v8, %v3392_v20  ;;  %v3404_v31 = vmul.f32 %v4832_v30, %v6061_v25  ;;  %v4834_v35 = vpop.eup %4833  ;;  %v3088_v23 = vadd.f32 %v3087_v42, %v3039_v4  ;;  %v3136_v45 = vpop.f32.mrf.mxu3  ;;  %4835 = vpow2.f32 %v4519_v6 }
 0x38d   : > { %v3401_v15 = vsel %vm3398_vm15, %v3400_v0, %v3396_v55  ;;  %v3596_v41 = vadd.f32 %v3595_v16, %v3581_v29  ;;  %v3220_v33 = vadd.f32 1.0, %v4834_v35  ;;  %vm3409_vm0 = vweird.f32 %v4832_v30  ;;  %v3499_v35 = vld [vmem:[%s5740_s29 + $0x460] sm:$0xff] }
 0x38e   : > { %v3528_v62 = vmul.f32 %v3512_v49, %v3401_v15  ;;  %v3405_v19 = vsub.f32 1.0, %v3404_v31  ;;  %v3137_v22 = vadd.f32 %v3136_v45, %v3088_v23  ;;  %vm3410_vm2 = vmor %vm3408_vm1, %vm3409_vm0  ;;  %v3514_v42 = vsub.f32 %v3480_v56, %v3498_v51  ;;  %v3481_v31 = vld [vmem:[%s5737_s27 + $0x460] sm:$0xff] }
 0x38f   : > { %4837 = vrcp.f32 %v3220_v33  ;;  %v3429_v18 = vand.u32 2147483648, %v3220_v33  ;;  %v3427_v21 = vand.u32 2147483647, %v3220_v33  ;;  %vm3423_vm5 = vweird.f32 %v3220_v33 }
 0x390   : > { %v6095_v8 = vadd.f32 %v3528_v62, %v3496_v7  ;;  %v3406_v60 = vmul.f32 %v4832_v30, %v3405_v19  ;;  %v3158_v24 = vadd.f32 %v5680_v48, %v3137_v22  ;;  %v3515_v19 = vsub.f32 %v3481_v31, %v3499_v35 }
 0x391   : > { %v3430_v16 = vor.u32 1.1754944e-38, %v3429_v18  ;;  %vm3428_vm7 = vcmp.eq.f32.partialorder %v3427_v21, 8.507059e+37 }
 0x392   : > { %v3559_v53 = vadd.f32 %v3558_v58, %v6095_v8  ;;  %v3582_v54 = vmul.f32 %v6095_v8, %v6095_v8  ;;  %v3407_v36 = vadd.f32 %v4832_v30, %v3406_v60  ;;  %v4520_v44 = vmul.f32 -1.442695, %v3158_v24  ;;  %v4836_v57 = vpop.eup %4835 }
 0x393   : > { %v3221_v34 = vadd.f32 1.0, %v4836_v57 }
 0x394   : > { %v3597_v3 = vadd.f32 %v3596_v41, %v3582_v54  ;;  %v3411_v2 = vsel %vm3410_vm2, %v4832_v30, %v3407_v36  ;;  %4839 = vpow2.f32 %v4520_v44  ;;  %v3500_v54 = vld [vmem:[%s5740_s29 + $0x4b0] sm:$0xff] }
 0x395   : > { %v3416_v14 = vsel %vm3413_vm3, %v3415_v63, %v3411_v2  ;;  %v4838_v48 = vpop.eup %4837  ;;  %4841 = vrcp.f32 %v3221_v34  ;;  %v3444_v15 = vand.u32 2147483648, %v3221_v34  ;;  %v3442_v41 = vand.u32 2147483647, %v3221_v34 }
 0x396   : > { %v3529_v7 = vmul.f32 %v3513_v9, %v3416_v14  ;;  %v3419_v59 = vmul.f32 %v4838_v48, %v3220_v33  ;;  %vm3424_vm4 = vweird.f32 %v4838_v48  ;;  %vm3438_vm9 = vweird.f32 %v3221_v34 }
 0x397   : > { %vm3425_vm6 = vmor %vm3423_vm5, %vm3424_vm4  ;;  %v3445_v46 = vor.u32 1.1754944e-38, %v3444_v15  ;;  %vm3443_vm11 = vcmp.eq.f32.partialorder %v3442_v41, 8.507059e+37 }
 0x398   : > { %v6102_v43 = vadd.f32 %v3529_v7, %v3497_v61  ;;  %v3420_v10 = vsub.f32 1.0, %v3419_v59 }
 0x39a   : > { %v3560_v25 = vadd.f32 %v3559_v53, %v6102_v43  ;;  %v3583_v12 = vmul.f32 %v6102_v43, %v6102_v43  ;;  %v4840_v49 = vpop.eup %4839  ;;  %v3421_v13 = vmul.f32 %v4838_v48, %v3420_v10  ;;  %v3482_v53 = vld [vmem:[%s5737_s27 + $0x4b0] sm:$0xff] }
 0x39b   : > { %v3222_v5 = vadd.f32 1.0, %v4840_v49  ;;  %v4842_v30 = vpop.eup %4841  ;;  %v3516_v57 = vsub.f32 %v3482_v53, %v3500_v54  ;;  %v4780_v53 = vld [vmem:[%s356_s15] ss:$0 sm:$0xff] }
 0x39c   : > { %v3598_v20 = vadd.f32 %v3597_v3, %v3583_v12  ;;  %v3422_v1 = vadd.f32 %v4838_v48, %v3421_v13  ;;  %v3434_v4 = vmul.f32 %v4842_v30, %v3221_v34  ;;  %vm3439_vm8 = vweird.f32 %v4842_v30 }
 0x39d   : > { %4843 = vrcp.f32 %v3222_v5  ;;  %vm3440_vm10 = vmor %vm3438_vm9, %vm3439_vm8  ;;  %v3459_v24 = vand.u32 2147483648, %v3222_v5  ;;  %v3457_v44 = vand.u32 2147483647, %v3222_v5  ;;  %vm3453_vm13 = vweird.f32 %v3222_v5 }
 0x39e   : > { %v3426_v0 = vsel %vm3425_vm6, %v4838_v48, %v3422_v1  ;;  %v3435_v55 = vsub.f32 1.0, %v3434_v4 }
 0x39f   : > { %v3431_v58 = vsel %vm3428_vm7, %v3430_v16, %v3426_v0  ;;  %v3460_v14 = vor.u32 1.1754944e-38, %v3459_v24  ;;  %vm3458_vm15 = vcmp.eq.f32.partialorder %v3457_v44, 8.507059e+37 }
 0x3a0   : > { %v3530_v29 = vmul.f32 %v3514_v42, %v3431_v58  ;;  %v3436_v23 = vmul.f32 %v4842_v30, %v3435_v55 }
 0x3a2   : > { %v6111_v6 = vadd.f32 %v3530_v29, %v3498_v51  ;;  %v3437_v33 = vadd.f32 %v4842_v30, %v3436_v23 }
 0x3a3   : > { %v4844_v62 = vpop.eup %4843 }
 0x3a4   : > { %v3561_v28 = vadd.f32 %v3560_v25, %v6111_v6  ;;  %v3584_v61 = vmul.f32 %v6111_v6, %v6111_v6  ;;  %v3449_v45 = vmul.f32 %v4844_v62, %v3222_v5  ;;  %v3441_v22 = vsel %vm3440_vm10, %v4842_v30, %v3437_v33 }
 0x3a5   : > { %v3446_v9 = vsel %vm3443_vm11, %v3445_v46, %v3441_v22  ;;  %vm3454_vm12 = vweird.f32 %v4844_v62 }
 0x3a6   : > { %v3599_v47 = vadd.f32 %v3598_v20, %v3584_v61  ;;  %v3450_v60 = vsub.f32 1.0, %v3449_v45  ;;  %v3531_v36 = vmul.f32 %v3515_v19, %v3446_v9  ;;  %vm3455_vm14 = vmor %vm3453_vm13, %vm3454_vm12 }
 0x3a8   : > { %v3451_v63 = vmul.f32 %v4844_v62, %v3450_v60  ;;  %v6118_v3 = vadd.f32 %v3531_v36, %v3499_v35 }
 0x3aa   : > { %v3452_v2 = vadd.f32 %v4844_v62, %v3451_v63  ;;  %v3562_v48 = vadd.f32 %v3561_v28, %v6118_v3  ;;  %v3585_v7 = vmul.f32 %v6118_v3, %v6118_v3 }
 0x3ac   : > { %v3456_v34 = vsel %vm3455_vm14, %v4844_v62, %v3452_v2  ;;  %v3600_v10 = vadd.f32 %v3599_v47, %v3585_v7 }
 0x3ad   : > { %v3461_v59 = vsel %vm3458_vm15, %v3460_v14, %v3456_v34 }
 0x3ae   : > { %v3532_v25 = vmul.f32 %v3516_v57, %v3461_v59 }
 0x3b0   : > { %v3548_v12 = vadd.f32 %v3532_v25, %v3500_v54 }
 0x3b2   : > { %v3563_v18 = vadd.f32 %v3562_v48, %v3548_v12  ;;  %v3586_v56 = vmul.f32 %v3548_v12, %v3548_v12 }
 0x3b4   : > { %v3564_v51 = vrot.slane %v3563_v18, 4  ;;  %v3601_v49 = vadd.f32 %v3600_v10, %v3586_v56 }
 0x3b6   : > { %v3565_v13 = vadd.f32 %v3564_v51, %v3563_v18  ;;  %v3602_v21 = vrot.slane %v3601_v49, 4 }
 0x3b8   : > { %v3566_v20 = vrot.slane %v3565_v13, 2  ;;  %v3603_v5 = vadd.f32 %v3602_v21, %v3601_v49 }
 0x3ba   : > { %v3567_v1 = vadd.f32 %v3566_v20, %v3565_v13  ;;  %v3604_v42 = vrot.slane %v3603_v5, 2 }
 0x3bc   : > { %v3568_v30 = vrot.slane %v3567_v1, 1  ;;  %v3605_v16 = vadd.f32 %v3604_v42, %v3603_v5 }
 0x3be   : > { %v3569_v0 = vadd.f32 %v3568_v30, %v3567_v1  ;;  %v3606_v4 = vrot.slane %v3605_v16, 1 }
 0x3c0   : > { %v3570_v58 = vmul.f32 0.0078125, %v3569_v0  ;;  %v3607_v29 = vadd.f32 %v3606_v4, %v3605_v16 }
 0x3c2   : > { %v3608_v55 = vmul.f32 0.0078125, %v3607_v29  ;;  %v3609_v31 = vmul.f32 %v3570_v58, %v3570_v58  ;;  %v3639_v35 = vsub.f32 %v3548_v12, %v3570_v58  ;;  %v3633_v23 = vsub.f32 %v6064_v38, %v3570_v58  ;;  %v3611_v38 = vld [vmem:[%s347_s10] sm:$0x1] }
 0x3c3   : > { %v3634_v41 = vsub.f32 %v6084_v32, %v3570_v58  ;;  %v3635_v62 = vsub.f32 %v6095_v8, %v3570_v58  ;;  %v3636_v28 = vsub.f32 %v6102_v43, %v3570_v58  ;;  %v3637_v61 = vsub.f32 %v6111_v6, %v3570_v58 }
 0x3c4   : > { %v3610_v15 = vsub.f32 %v3608_v55, %v3609_v31  ;;  %v3638_v33 = vsub.f32 %v6118_v3, %v3570_v58  ;;  %v3624_v6 = vsub.f32 %v5796_v17, %v3570_v58  ;;  %v3625_v9 = vsub.f32 %v5822_v11, %v3570_v58 }
 0x3c5   : > { %v3626_v54 = vsub.f32 %v5870_v40, %v3570_v58  ;;  %v3627_v36 = vsub.f32 %v5921_v37, %v3570_v58  ;;  %v3628_v63 = vsub.f32 %v5957_v52, %v3570_v58  ;;  %v3629_v44 = vsub.f32 %v5966_v27, %v3570_v58 }
 0x3c6   : > { %v3612_v19 = vadd.f32 1e-05, %v3610_v15  ;;  %v3630_v3 = vsub.f32 %v6005_v26, %v3570_v58  ;;  %v3631_v2 = vsub.f32 %v6040_v39, %v3570_v58  ;;  %v3632_v17 = vsub.f32 %v6056_v50, %v3570_v58 }
 0x3c8   : > { %4845 = vrsqrt.f32 %v3612_v19  ;;  %vm3619_vm1 = vweird.f32 %v3612_v19 }
 0x3ce   : > { %v4846_v45 = vpop.eup %4845 }
 0x3cf   : > { %v3614_v46 = vmul.f32 %v4846_v45, %v3612_v19  ;;  %vm3620_vm0 = vweird.f32 %v4846_v45 }
 0x3d0   : > { %vm3621_vm2 = vmor %vm3619_vm1, %vm3620_vm0 }
 0x3d1   : > { %v3615_v47 = vmul.f32 %v4846_v45, %v3614_v46 }
 0x3d3   : > { %v3616_v22 = vmul.f32 0.5, %v3615_v47 }
 0x3d5   : > { %v3617_v60 = vsub.f32 1.5, %v3616_v22 }
 0x3d7   : > { %v3618_v32 = vmul.f32 %v4846_v45, %v3617_v60 }
 0x3d9   : > { %v3622_v8 = vsel %vm3621_vm2, %v4846_v45, %v3618_v32 }
 0x3da   : > { %v3623_v43 = vmul.f32 %v3622_v8, %v3611_v38 }
 0x3dc   : > { %v3641_v24 = vperm.slane %v3623_v43, 0 }
 0x3de   : > { %v3658_v57 = vmul.f32 %v3641_v24, %v3639_v35  ;;  %v3643_v11 = vmul.f32 %v3641_v24, %v3624_v6  ;;  %v3644_v14 = vmul.f32 %v3641_v24, %v3625_v9  ;;  %v3645_v48 = vmul.f32 %v3641_v24, %v3626_v54 }
 0x3df   : > { %v3646_v7 = vmul.f32 %v3641_v24, %v3627_v36  ;;  %v3647_v34 = vmul.f32 %v3641_v24, %v3628_v63  ;;  %v3648_v59 = vmul.f32 %v3641_v24, %v3629_v44  ;;  %v3649_v40 = vmul.f32 %v3641_v24, %v3630_v3 }
 0x3e0   : > { %v3678_v10 = vadd.f32 %v4780_v53, %v3658_v57  ;;  %v3650_v37 = vmul.f32 %v3641_v24, %v3631_v2  ;;  %v3651_v25 = vmul.f32 %v3641_v24, %v3632_v17  ;;  %v3652_v52 = vmul.f32 %v3641_v24, %v3633_v23 }
 0x3e1   : > { %v3653_v12 = vmul.f32 %v3641_v24, %v3634_v41  ;;  %v3654_v27 = vmul.f32 %v3641_v24, %v3635_v62  ;;  %v3655_v26 = vmul.f32 %v3641_v24, %v3636_v28  ;;  %v3656_v18 = vmul.f32 %v3641_v24, %v3637_v61 }
 0x3e2   : > { %3694 = vst [vmem:[%s6142_s18 + $0x78] sm:$0xff] %v3678_v10  ;;  %v3657_v39 = vmul.f32 %v3641_v24, %v3638_v33  ;;  %v3663_v50 = vadd.f32 %v4780_v53, %v3643_v11  ;;  %v3664_v56 = vadd.f32 %v4780_v53, %v3644_v14  ;;  %v3665_v51 = vadd.f32 %v4780_v53, %v3645_v48 }
 0x3e3   : > { %v3666_v49 = vadd.f32 %v4780_v53, %v3646_v7  ;;  %v3667_v13 = vadd.f32 %v4780_v53, %v3647_v34  ;;  %v3668_v21 = vadd.f32 %v4780_v53, %v3648_v59  ;;  %v3669_v20 = vadd.f32 %v4780_v53, %v3649_v40 }
 0x3e4   : > { %3679 = vst [vmem:[%s6142_s18] sm:$0xff] %v3663_v50  ;;  %v3670_v5 = vadd.f32 %v4780_v53, %v3650_v37  ;;  %v3671_v1 = vadd.f32 %v4780_v53, %v3651_v25  ;;  %v3672_v42 = vadd.f32 %v4780_v53, %v3652_v52  ;;  %v3673_v30 = vadd.f32 %v4780_v53, %v3653_v12 }
 0x3e5   : > { %3680 = vst [vmem:[%s6142_s18 + $0x8] sm:$0xff] %v3664_v56  ;;  %v3674_v16 = vadd.f32 %v4780_v53, %v3654_v27  ;;  %v3675_v0 = vadd.f32 %v4780_v53, %v3655_v26  ;;  %v3676_v4 = vadd.f32 %v4780_v53, %v3656_v18  ;;  %v3677_v58 = vadd.f32 %v4780_v53, %v3657_v39 }
 0x3e6   : > { %3681 = vst [vmem:[%s6142_s18 + $0x10] sm:$0xff] %v3665_v51 }
 0x3e7   : > { %3682 = vst [vmem:[%s6142_s18 + $0x18] sm:$0xff] %v3666_v49 }
 0x3e8   : > { %3683 = vst [vmem:[%s6142_s18 + $0x20] sm:$0xff] %v3667_v13 }
 0x3e9   : > { %3684 = vst [vmem:[%s6142_s18 + $0x28] sm:$0xff] %v3668_v21 }
 0x3ea   : > { %3685 = vst [vmem:[%s6142_s18 + $0x30] sm:$0xff] %v3669_v20 }
 0x3eb   : > { %3686 = vst [vmem:[%s6142_s18 + $0x38] sm:$0xff] %v3670_v5 }
 0x3ec   : > { %3687 = vst [vmem:[%s6142_s18 + $0x40] sm:$0xff] %v3671_v1 }
 0x3ed   : > { %3688 = vst [vmem:[%s6142_s18 + $0x48] sm:$0xff] %v3672_v42 }
 0x3ee   : > { %3689 = vst [vmem:[%s6142_s18 + $0x50] sm:$0xff] %v3673_v30 }
 0x3ef   : > { %3690 = vst [vmem:[%s6142_s18 + $0x58] sm:$0xff] %v3674_v16 }
 0x3f0   : > { %3691 = vst [vmem:[%s6142_s18 + $0x60] sm:$0xff] %v3675_v0 }
 0x3f1   : > { %3692 = vst [vmem:[%s6142_s18 + $0x68] sm:$0xff] %v3676_v4 }
 0x3f2   : > { %3693 = vst [vmem:[%s6142_s18 + $0x70] sm:$0xff] %v3677_v58 }
 0x3f3   : > { %5054 = shalt.err (!%p5051_p10)
}
 0x3f4   : > { %s5110_s28 = smov 128   ;;  %s5111_s16 = smov 1280  }
 0x3f5   : > { %s5112_s0 = smov 8  }
 0x3f6   : > { %4705 = dma.vmem_to_hbm [thread:$0]  (%p5200_p11), %s3708_s25, 2048, %s3710_s23, %s3696_s12, %s5110_s28, %s5111_s16, %s5112_s0  }
 0x3f7 PF: > { %p4736_p0 = scmp.ge.s32.totalorder %s5101_s24, 2  ;;  %s3724_s29 = sand.u32 1, %s5089_s21  }
 0x3f8   : > { %s3725_s10 = scalar_lea.sflag [#allocation4], %s3724_s29 }
 0x3f9   : > { %p4728_p7 = pnand %p4736_p0, %p5204_p12 }
 0x3fb   : > { %p4729_p2 = pneg %p4728_p7 }
 0x3fd   : > { %5084 = dma.done.wait (%p4729_p2), %s3725_s10, 2048  }
 0x3fe   : > { %5086 = vsyncadd (%p4729_p2), %s3725_s10, 4294965248  ;;  %s6249_s24 = sld [smem:[#allocation17_spill]]  ;;  %s6252_s21 = smov %s5093_s22 }
 0x3ff   : > { %s6250_s19 = sld [smem:[#allocation16_spill]] }
 0x400   : > { %s6251_s23 = sld [smem:[#allocation18_spill]] }
 0x404   : > { %p18_p4 = scmp.ge.s32.totalorder %s6249_s24, 12  }
 0x405   : > { %s6253_s22 = smov %s6250_s19 }
 0x406   :  { %20 = sbr.rel (!%p18_p4) target bundleno = 8 (0x8), region = 131 }
 0x40b   :  { %3731 = vsyncpa [#allocation3], 1 }
 0x40c   :  { %3733 = vsyncpa [#allocation3 + $0x1], 1 }
 0x40d   :  { %3734 = vsyncpa [#allocation6], 1 }
 0x40e   :  { %3735 = vsyncpa [#allocation4], 1 }
 0x40f   :  { %3737 = vsyncpa [#allocation4 + $0x1], 1 }

</bundles_post_ra>
